<compile_context>
chip_gen: v5e
topology: v5e:2x2
jax: 0.10.0
libtpu: 0.0.40
codegen_flags: <defaults>
</compile_context>

<pallas_src>
import functools
import math

import jax
import jax.numpy as jnp
from jax.experimental import pallas as pl
from jax.experimental.pallas import tpu as pltpu

VMEM_SPEC = pl.BlockSpec(memory_space=pltpu.MemorySpace.VMEM)


# ------------------------------------------------------------------ fused kernel
def _encoder_fused_kernel(
    emb_ref, mask_ref,
    wq_ref, bq_ref, wk_ref, bk_ref, wv_ref, bv_ref, wo_ref, bo_ref,
    w1_ref, b1_ref, w2_ref, b2_ref,
    g1_ref, be1_ref, g2_ref, be2_ref,
    eh_w_ref, eh_b_ref, he_w_ref, he_b_ref,
    cw_ref, cb_ref,
    o_ref,
    *, n_layers, n_heads, kernel_size, scale):
  f32 = jnp.float32
  bf16 = jnp.bfloat16

  x = emb_ref[...].astype(f32)                       # [B, L, D] (emb + PE)
  B, L, D = x.shape
  dh = D // n_heads
  inv_sqrt_dh = 1.0 / math.sqrt(dh)
  hidden = eh_w_ref.shape[1]
  two_h = cb_ref.shape[-1]                           # 2 * hidden
  pad = (kernel_size - 1) // 2

  # Key-side padding mask -> additive bias, computed once, reused by every layer/head.
  maskf = mask_ref[...]                              # [B, L] (1 keep, 0 masked)
  neg_bias = jnp.where(maskf > 0.0, 0.0, -1e9).astype(f32)[:, None, :]   # [B,1,L]

  def layer_norm(y, g, b):                           # f32 elementwise (v5e-safe)
    mu = jnp.mean(y, axis=-1, keepdims=True)
    var = jnp.mean((y - mu) ** 2, axis=-1, keepdims=True)
    return (y - mu) * jax.lax.rsqrt(var + 1e-5) * g[None] + b[None]

  def proj(y_bf, w_bf, b_f32):                       # bf16 matmul, f32 accumulate
    return (jnp.einsum('bld,de->ble', y_bf, w_bf,
                       preferred_element_type=f32) + b_f32[None])

  # ---------------- transformer encoder blocks (post-LN) ----------------
  y = x
  for l in range(n_layers):                          # static layer loop
    y_bf = y.astype(bf16)
    q = proj(y_bf, wq_ref[l], bq_ref[l])             # single full-D projections
    k = proj(y_bf, wk_ref[l], bk_ref[l])
    v = proj(y_bf, wv_ref[l], bv_ref[l])
    wo_l = wo_ref[l]                                 # [D, D] bf16

    attn = jnp.zeros_like(y)
    for h in range(n_heads):                         # static per-head loop (see header)
      sl = slice(h * dh, (h + 1) * dh)
      qh = q[:, :, sl].astype(bf16)
      kh = k[:, :, sl].astype(bf16)
      vh = v[:, :, sl].astype(bf16)
      s = jnp.einsum('bqd,bkd->bqk', qh, kh,
                     preferred_element_type=f32) * inv_sqrt_dh
      s = s + neg_bias
      s = s - jnp.max(s, axis=-1, keepdims=True)
      p = jnp.exp(s)                                 # f32, unnormalized
      denom = jnp.sum(p, axis=-1, keepdims=True)     # [B, L, 1]
      ctx = jnp.einsum('bqk,bkd->bqd', p.astype(bf16), vh,
                       preferred_element_type=f32)
      # deferred softmax normalization on the EUP (reciprocal of L x 1, not L x L)
      ctx = ctx * pl.reciprocal(denom, approx=True)
      # concat(ctx_h) @ Wo  ==  sum_h ctx_h @ Wo[h*dh:(h+1)*dh, :]  (single projection,
      # decomposed so no lane-concat / head transpose is needed)
      attn = attn + jnp.einsum('bqd,de->bqe', ctx.astype(bf16), wo_l[sl, :],
                               preferred_element_type=f32)
    attn = attn + bo_ref[l][None]

    h1 = layer_norm(y + attn, g1_ref[l], be1_ref[l])

    # position-wise FFN: Linear(D->H) -> ReLU -> Linear(H->D)
    f = proj(h1.astype(bf16), w1_ref[l], b1_ref[l])
    f = jnp.maximum(f, 0.0)
    f = proj(f.astype(bf16), w2_ref[l], b2_ref[l])
    y = layer_norm(h1 + f, g2_ref[l], be2_ref[l])

  # ---------------- conv / GLU path (channels-last, fully in-kernel) ----------------
  conv = proj(x.astype(bf16), eh_w_ref[...], eh_b_ref[...])     # [B, L, H]
  l_idx = jax.lax.broadcasted_iota(jnp.int32, (1, L, 1), 1)      # seq positions
  for l in range(n_layers):                          # static conv-layer loop
    # ONE matmul against the tap-concatenated weight [H, K*2H]
    yk = jnp.einsum('blc,co->blo', conv.astype(bf16), cw_ref[l],
                    preferred_element_type=f32)       # [B, L, K*2H]
    acc = jnp.zeros((B, L, two_h), f32)
    for k in range(kernel_size):                     # tap combine: XLU roll + mask + add
      yk_k = yk[:, :, k * two_h:(k + 1) * two_h]      # [B, L, 2H]
      s_off = k - pad                                 # out[l] needs in[l + s_off]
      if s_off == 0:
        acc = acc + yk_k
      else:
        rolled = pltpu.roll(yk_k, shift=(-s_off) % L, axis=1)
        valid = (l_idx + s_off >= 0) & (l_idx + s_off <= L - 1)   # zero-padding halo
        acc = acc + jnp.where(valid, rolled, 0.0)
    acc = acc + cb_ref[l][None]
    a = acc[:, :, :hidden]
    g = acc[:, :, hidden:]
    glu = a * jax.nn.sigmoid(g)                       # F.glu over channel dim (f32)
    conv = (glu + conv) * scale

  # ---------------- project back to d_model and fuse with attention path ------------
  out = y + proj(conv.astype(bf16), he_w_ref[...], he_b_ref[...])
  # NOTE: D=32 => 32-lane (masked) final store; at real sizes pad D to 128 for a
  # lane-dense out_spec.  Here it is a single 2 KiB store, negligible.
  o_ref[...] = out.astype(o_ref.dtype)


# ------------------------------------------------------------------ params / glue
def sinusoidal_pe(max_len, d_model):
  pos = jnp.arange(max_len, dtype=jnp.float32)[:, None]
  i = jnp.arange(0, d_model, 2, dtype=jnp.float32)
  div = jnp.exp(-jnp.log(10000.0) * i / d_model)
  pe = jnp.zeros((max_len, d_model), jnp.float32)
  pe = pe.at[:, 0::2].set(jnp.sin(pos * div))
  pe = pe.at[:, 1::2].set(jnp.cos(pos * div))
  return pe


def init_params(key, vocab_size, max_len, d_model, n_heads, hidden_size,
                kernel_size, n_layers):
  """Per-layer weights stacked along a leading n_layers axis; matmul weights in bf16."""
  bf = jnp.bfloat16

  def nrm(k, shape, s=0.02):
    return (s * jax.random.normal(k, shape)).astype(jnp.float32)

  keys = iter(jax.random.split(key, 64))
  p = {
      'embedding': nrm(next(keys), (vocab_size, d_model), 1.0),
      'pe': sinusoidal_pe(max_len, d_model),
      # encoder blocks (stacked over layers)
      'wq': nrm(next(keys), (n_layers, d_model, d_model)).astype(bf),
      'bq': jnp.zeros((n_layers, 1, d_model), jnp.float32),
      'wk': nrm(next(keys), (n_layers, d_model, d_model)).astype(bf),
      'bk': jnp.zeros((n_layers, 1, d_model), jnp.float32),
      'wv': nrm(next(keys), (n_layers, d_model, d_model)).astype(bf),
      'bv': jnp.zeros((n_layers, 1, d_model), jnp.float32),
      'wo': nrm(next(keys), (n_layers, d_model, d_model)).astype(bf),
      'bo': jnp.zeros((n_layers, 1, d_model), jnp.float32),
      'w1': nrm(next(keys), (n_layers, d_model, hidden_size)).astype(bf),
      'b1': jnp.zeros((n_layers, 1, hidden_size), jnp.float32),
      'w2': nrm(next(keys), (n_layers, hidden_size, d_model)).astype(bf),
      'b2': jnp.zeros((n_layers, 1, d_model), jnp.float32),
      'g1': jnp.ones((n_layers, 1, d_model), jnp.float32),
      'be1': jnp.zeros((n_layers, 1, d_model), jnp.float32),
      'g2': jnp.ones((n_layers, 1, d_model), jnp.float32),
      'be2': jnp.zeros((n_layers, 1, d_model), jnp.float32),
      # conv path
      'eh_w': nrm(next(keys), (d_model, hidden_size)).astype(bf),
      'eh_b': nrm(next(keys), (1, hidden_size)),
      'he_w': nrm(next(keys), (hidden_size, d_model)).astype(bf),
      'he_b': nrm(next(keys), (1, d_model)),
      # Conv1d weights, tap-concatenated: cw[l][:, k*2H:(k+1)*2H] == W_torch[l][:, :, k].T
      'cw': nrm(next(keys), (n_layers, hidden_size,
                             kernel_size * 2 * hidden_size)).astype(bf),
      'cb': nrm(next(keys), (n_layers, 1, 2 * hidden_size)),
  }
  return p


def encoder_forward(params, src_sequences, src_mask, *, n_heads, kernel_size, scale):
  B, L = src_sequences.shape
  d_model = params['embedding'].shape[1]
  n_layers = params['wq'].shape[0]

  # embedding gather + positional encoding (XLA glue; dropout == identity, inference)
  emb = params['embedding'][src_sequences] + params['pe'][:L][None]     # [B, L, D] f32
  maskf = src_mask.astype(jnp.float32)

  kern = functools.partial(_encoder_fused_kernel,
                           n_layers=n_layers, n_heads=n_heads,
                           kernel_size=kernel_size, scale=float(scale))
  args = (emb, maskf,
          params['wq'], params['bq'], params['wk'], params['bk'],
          params['wv'], params['bv'], params['wo'], params['bo'],
          params['w1'], params['b1'], params['w2'], params['b2'],
          params['g1'], params['be1'], params['g2'], params['be2'],
          params['eh_w'], params['eh_b'], params['he_w'], params['he_b'],
          params['cw'], params['cb'])
  return pl.pallas_call(
      kern,
      out_shape=jax.ShapeDtypeStruct((B, L, d_model), jnp.float32),
      in_specs=[VMEM_SPEC] * len(args),
      out_specs=VMEM_SPEC,
  )(*args)


# ------------------------------------------------------------------ main
if __name__ == "__main__":
  vocab_size = 50
  max_len = 16
  d_model = 32
  n_heads = 4
  hidden_size = 32
  kernel_size = 3
  dropout = 0.0            # inference: dropout is identity
  n_layers = 2
  scale = math.sqrt(0.5)
  seq_thresh = 0           # TODO(synk): seq_thresh undefined in reference EncoderBlockLayer

  B, L = 2, 8

  key = jax.random.PRNGKey(0)
  k_param, k_tok = jax.random.split(key)
  params = init_params(k_param, vocab_size, max_len, d_model, n_heads,
                       hidden_size, kernel_size, n_layers)

  src_sequences = jax.random.randint(k_tok, (B, L), 0, vocab_size, dtype=jnp.int32)
  lengths = jnp.array([L, L - 2], dtype=jnp.int32)
  src_mask = (jnp.arange(L)[None, :] < lengths[:, None]).astype(jnp.int32)   # [B, L]

  fwd = jax.jit(functools.partial(encoder_forward, n_heads=n_heads,
                                  kernel_size=kernel_size, scale=scale))
  out = jax.block_until_ready(fwd(params, src_sequences, src_mask))
  assert out.shape == (B, L, d_model)
  assert bool(jnp.all(jnp.isfinite(out)))
  print("KERNEL_OK")
</pallas_src>

<mosaic_0001>
module attributes {stable_mosaic.version = 11 : i64} {
  func.func @_encoder_fused_kernel(%arg0: memref<2x8x32xf32, #tpu.memory_space<vmem>>, %arg1: memref<2x8xf32, #tpu.memory_space<vmem>>, %arg2: memref<2x32x32xbf16, #tpu.memory_space<vmem>>, %arg3: memref<2x1x32xf32, #tpu.memory_space<vmem>>, %arg4: memref<2x32x32xbf16, #tpu.memory_space<vmem>>, %arg5: memref<2x1x32xf32, #tpu.memory_space<vmem>>, %arg6: memref<2x32x32xbf16, #tpu.memory_space<vmem>>, %arg7: memref<2x1x32xf32, #tpu.memory_space<vmem>>, %arg8: memref<2x32x32xbf16, #tpu.memory_space<vmem>>, %arg9: memref<2x1x32xf32, #tpu.memory_space<vmem>>, %arg10: memref<2x32x32xbf16, #tpu.memory_space<vmem>>, %arg11: memref<2x1x32xf32, #tpu.memory_space<vmem>>, %arg12: memref<2x32x32xbf16, #tpu.memory_space<vmem>>, %arg13: memref<2x1x32xf32, #tpu.memory_space<vmem>>, %arg14: memref<2x1x32xf32, #tpu.memory_space<vmem>>, %arg15: memref<2x1x32xf32, #tpu.memory_space<vmem>>, %arg16: memref<2x1x32xf32, #tpu.memory_space<vmem>>, %arg17: memref<2x1x32xf32, #tpu.memory_space<vmem>>, %arg18: memref<32x32xbf16, #tpu.memory_space<vmem>>, %arg19: memref<1x32xf32, #tpu.memory_space<vmem>>, %arg20: memref<32x32xbf16, #tpu.memory_space<vmem>>, %arg21: memref<1x32xf32, #tpu.memory_space<vmem>>, %arg22: memref<2x32x192xbf16, #tpu.memory_space<vmem>>, %arg23: memref<2x1x64xf32, #tpu.memory_space<vmem>>, %arg24: memref<2x8x32xf32, #tpu.memory_space<vmem>>) attributes {dimension_semantics = [], scalar_prefetch = 0 : i64, scratch_operands = 0 : i64, tpu.core_type = #tpu.core_type<tc>} {
    %c0 = arith.constant 0 : index
    %c0_0 = arith.constant 0 : index
    %c0_1 = arith.constant 0 : index
    %0 = vector.load %arg0[%c0, %c0_0, %c0_1] : memref<2x8x32xf32, #tpu.memory_space<vmem>>, vector<2x8x32xf32>
    %c0_2 = arith.constant 0 : index
    %c0_3 = arith.constant 0 : index
    %1 = vector.load %arg1[%c0_2, %c0_3] : memref<2x8xf32, #tpu.memory_space<vmem>>, vector<2x8xf32>
    %cst = arith.constant 0.000000e+00 : f32
    %2 = vector.broadcast %cst : f32 to vector<2x8xf32>
    %3 = arith.cmpf ogt, %1, %2 : vector<2x8xf32>
    %cst_4 = arith.constant 0.000000e+00 : f32
    %cst_5 = arith.constant -1.000000e+09 : f32
    %4 = vector.broadcast %cst_4 : f32 to vector<2x8xf32>
    %5 = vector.broadcast %cst_5 : f32 to vector<2x8xf32>
    %6 = arith.select %3, %4, %5 : vector<2x8xi1>, vector<2x8xf32>
    %7 = vector.shape_cast %6 : vector<2x8xf32> to vector<2x1x8xf32>
    %8 = arith.truncf %0 : vector<2x8x32xf32> to vector<2x8x32xbf16>
    %c0_6 = arith.constant 0 : index
    %c0_7 = arith.constant 0 : index
    %c0_8 = arith.constant 0 : index
    %9 = vector.load %arg2[%c0_6, %c0_7, %c0_8] : memref<2x32x32xbf16, #tpu.memory_space<vmem>>, vector<1x32x32xbf16>
    %10 = vector.shape_cast %9 : vector<1x32x32xbf16> to vector<32x32xbf16>
    %c0_9 = arith.constant 0 : index
    %c0_10 = arith.constant 0 : index
    %c0_11 = arith.constant 0 : index
    %11 = vector.load %arg3[%c0_9, %c0_10, %c0_11] : memref<2x1x32xf32, #tpu.memory_space<vmem>>, vector<1x1x32xf32>
    %12 = vector.shape_cast %11 : vector<1x1x32xf32> to vector<1x32xf32>
    "tpu.trace_start"() <{level = 10 : i32, message = "bld,de->ble"}> : () -> ()
    %cst_12 = arith.constant dense<0.000000e+00> : vector<2x8x32xf32>
    %13 = tpu.matmul %8, %10, %cst_12 {dimension_numbers = #tpu.dot_dimension_numbers<[2], [0], [0, 1], [1], [0, 0, 0, 1, 1, 1], [], []>} : vector<2x8x32xbf16>, vector<32x32xbf16>, vector<2x8x32xf32> -> vector<2x8x32xf32>
    "tpu.trace_stop"() : () -> ()
    %14 = vector.shape_cast %12 : vector<1x32xf32> to vector<1x1x32xf32>
    %15 = vector.broadcast %14 : vector<1x1x32xf32> to vector<2x8x32xf32>
    %16 = arith.addf %13, %15 : vector<2x8x32xf32>
    %c0_13 = arith.constant 0 : index
    %c0_14 = arith.constant 0 : index
    %c0_15 = arith.constant 0 : index
    %17 = vector.load %arg4[%c0_13, %c0_14, %c0_15] : memref<2x32x32xbf16, #tpu.memory_space<vmem>>, vector<1x32x32xbf16>
    %18 = vector.shape_cast %17 : vector<1x32x32xbf16> to vector<32x32xbf16>
    %c0_16 = arith.constant 0 : index
    %c0_17 = arith.constant 0 : index
    %c0_18 = arith.constant 0 : index
    %19 = vector.load %arg5[%c0_16, %c0_17, %c0_18] : memref<2x1x32xf32, #tpu.memory_space<vmem>>, vector<1x1x32xf32>
    %20 = vector.shape_cast %19 : vector<1x1x32xf32> to vector<1x32xf32>
    "tpu.trace_start"() <{level = 10 : i32, message = "bld,de->ble"}> : () -> ()
    %cst_19 = arith.constant dense<0.000000e+00> : vector<2x8x32xf32>
    %21 = tpu.matmul %8, %18, %cst_19 {dimension_numbers = #tpu.dot_dimension_numbers<[2], [0], [0, 1], [1], [0, 0, 0, 1, 1, 1], [], []>} : vector<2x8x32xbf16>, vector<32x32xbf16>, vector<2x8x32xf32> -> vector<2x8x32xf32>
    "tpu.trace_stop"() : () -> ()
    %22 = vector.shape_cast %20 : vector<1x32xf32> to vector<1x1x32xf32>
    %23 = vector.broadcast %22 : vector<1x1x32xf32> to vector<2x8x32xf32>
    %24 = arith.addf %21, %23 : vector<2x8x32xf32>
    %c0_20 = arith.constant 0 : index
    %c0_21 = arith.constant 0 : index
    %c0_22 = arith.constant 0 : index
    %25 = vector.load %arg6[%c0_20, %c0_21, %c0_22] : memref<2x32x32xbf16, #tpu.memory_space<vmem>>, vector<1x32x32xbf16>
    %26 = vector.shape_cast %25 : vector<1x32x32xbf16> to vector<32x32xbf16>
    %c0_23 = arith.constant 0 : index
    %c0_24 = arith.constant 0 : index
    %c0_25 = arith.constant 0 : index
    %27 = vector.load %arg7[%c0_23, %c0_24, %c0_25] : memref<2x1x32xf32, #tpu.memory_space<vmem>>, vector<1x1x32xf32>
    %28 = vector.shape_cast %27 : vector<1x1x32xf32> to vector<1x32xf32>
    "tpu.trace_start"() <{level = 10 : i32, message = "bld,de->ble"}> : () -> ()
    %cst_26 = arith.constant dense<0.000000e+00> : vector<2x8x32xf32>
    %29 = tpu.matmul %8, %26, %cst_26 {dimension_numbers = #tpu.dot_dimension_numbers<[2], [0], [0, 1], [1], [0, 0, 0, 1, 1, 1], [], []>} : vector<2x8x32xbf16>, vector<32x32xbf16>, vector<2x8x32xf32> -> vector<2x8x32xf32>
    "tpu.trace_stop"() : () -> ()
    %30 = vector.shape_cast %28 : vector<1x32xf32> to vector<1x1x32xf32>
    %31 = vector.broadcast %30 : vector<1x1x32xf32> to vector<2x8x32xf32>
    %32 = arith.addf %29, %31 : vector<2x8x32xf32>
    %c0_27 = arith.constant 0 : index
    %c0_28 = arith.constant 0 : index
    %c0_29 = arith.constant 0 : index
    %33 = vector.load %arg8[%c0_27, %c0_28, %c0_29] : memref<2x32x32xbf16, #tpu.memory_space<vmem>>, vector<1x32x32xbf16>
    %34 = vector.shape_cast %33 : vector<1x32x32xbf16> to vector<32x32xbf16>
    %cst_30 = arith.constant 0.000000e+00 : f32
    %35 = vector.broadcast %cst_30 : f32 to vector<2x8x32xf32>
    %36 = vector.extract_strided_slice %16 {offsets = [0, 0, 0], sizes = [2, 8, 8], strides = [1, 1, 1]} : vector<2x8x32xf32> to vector<2x8x8xf32>
    %37 = arith.truncf %36 : vector<2x8x8xf32> to vector<2x8x8xbf16>
    %38 = vector.extract_strided_slice %24 {offsets = [0, 0, 0], sizes = [2, 8, 8], strides = [1, 1, 1]} : vector<2x8x32xf32> to vector<2x8x8xf32>
    %39 = arith.truncf %38 : vector<2x8x8xf32> to vector<2x8x8xbf16>
    %40 = vector.extract_strided_slice %32 {offsets = [0, 0, 0], sizes = [2, 8, 8], strides = [1, 1, 1]} : vector<2x8x32xf32> to vector<2x8x8xf32>
    %41 = arith.truncf %40 : vector<2x8x8xf32> to vector<2x8x8xbf16>
    "tpu.trace_start"() <{level = 10 : i32, message = "bqd,bkd->bqk"}> : () -> ()
    %cst_31 = arith.constant dense<0.000000e+00> : vector<2x8x8xf32>
    %42 = tpu.matmul %37, %39, %cst_31 {dimension_numbers = #tpu.dot_dimension_numbers<[2], [2], [1], [1], [0, 0, 0, 1, 1, 1], [0], [0]>} : vector<2x8x8xbf16>, vector<2x8x8xbf16>, vector<2x8x8xf32> -> vector<2x8x8xf32>
    "tpu.trace_stop"() : () -> ()
    %cst_32 = arith.constant 0.353553385 : f32
    %43 = vector.broadcast %cst_32 : f32 to vector<2x8x8xf32>
    %44 = arith.mulf %42, %43 : vector<2x8x8xf32>
    %45 = vector.broadcast %7 : vector<2x1x8xf32> to vector<2x8x8xf32>
    %46 = arith.addf %44, %45 : vector<2x8x8xf32>
    %cst_33 = arith.constant dense<0xFF800000> : vector<2x8xf32>
    %47 = vector.multi_reduction <maximumf>, %46, %cst_33 [2] : vector<2x8x8xf32> to vector<2x8xf32>
    %48 = vector.shape_cast %47 : vector<2x8xf32> to vector<2x8x1xf32>
    %49 = vector.broadcast %48 : vector<2x8x1xf32> to vector<2x8x8xf32>
    %50 = arith.subf %46, %49 : vector<2x8x8xf32>
    %51 = math.exp %50 : vector<2x8x8xf32>
    %cst_34 = arith.constant dense<0.000000e+00> : vector<2x8xf32>
    %52 = vector.multi_reduction <add>, %51, %cst_34 [2] : vector<2x8x8xf32> to vector<2x8xf32>
    %53 = vector.shape_cast %52 : vector<2x8xf32> to vector<2x8x1xf32>
    %54 = arith.truncf %51 : vector<2x8x8xf32> to vector<2x8x8xbf16>
    "tpu.trace_start"() <{level = 10 : i32, message = "bqk,bkd->bqd"}> : () -> ()
    %cst_35 = arith.constant dense<0.000000e+00> : vector<2x8x8xf32>
    %55 = tpu.matmul %54, %41, %cst_35 {dimension_numbers = #tpu.dot_dimension_numbers<[2], [1], [1], [2], [0, 0, 0, 1, 1, 2], [0], [0]>} : vector<2x8x8xbf16>, vector<2x8x8xbf16>, vector<2x8x8xf32> -> vector<2x8x8xf32>
    "tpu.trace_stop"() : () -> ()
    %56 = tpu.reciprocal %53 {approx = true} : vector<2x8x1xf32> -> vector<2x8x1xf32>
    %57 = vector.broadcast %56 : vector<2x8x1xf32> to vector<2x8x8xf32>
    %58 = arith.mulf %55, %57 : vector<2x8x8xf32>
    %59 = arith.truncf %58 : vector<2x8x8xf32> to vector<2x8x8xbf16>
    %60 = vector.extract_strided_slice %34 {offsets = [0, 0], sizes = [8, 32], strides = [1, 1]} : vector<32x32xbf16> to vector<8x32xbf16>
    "tpu.trace_start"() <{level = 10 : i32, message = "bqd,de->bqe"}> : () -> ()
    %cst_36 = arith.constant dense<0.000000e+00> : vector<2x8x32xf32>
    %61 = tpu.matmul %59, %60, %cst_36 {dimension_numbers = #tpu.dot_dimension_numbers<[2], [0], [0, 1], [1], [0, 0, 0, 1, 1, 1], [], []>} : vector<2x8x8xbf16>, vector<8x32xbf16>, vector<2x8x32xf32> -> vector<2x8x32xf32>
    "tpu.trace_stop"() : () -> ()
    %62 = arith.addf %35, %61 : vector<2x8x32xf32>
    %63 = vector.extract_strided_slice %16 {offsets = [0, 0, 8], sizes = [2, 8, 8], strides = [1, 1, 1]} : vector<2x8x32xf32> to vector<2x8x8xf32>
    %64 = arith.truncf %63 : vector<2x8x8xf32> to vector<2x8x8xbf16>
    %65 = vector.extract_strided_slice %24 {offsets = [0, 0, 8], sizes = [2, 8, 8], strides = [1, 1, 1]} : vector<2x8x32xf32> to vector<2x8x8xf32>
    %66 = arith.truncf %65 : vector<2x8x8xf32> to vector<2x8x8xbf16>
    %67 = vector.extract_strided_slice %32 {offsets = [0, 0, 8], sizes = [2, 8, 8], strides = [1, 1, 1]} : vector<2x8x32xf32> to vector<2x8x8xf32>
    %68 = arith.truncf %67 : vector<2x8x8xf32> to vector<2x8x8xbf16>
    "tpu.trace_start"() <{level = 10 : i32, message = "bqd,bkd->bqk"}> : () -> ()
    %cst_37 = arith.constant dense<0.000000e+00> : vector<2x8x8xf32>
    %69 = tpu.matmul %64, %66, %cst_37 {dimension_numbers = #tpu.dot_dimension_numbers<[2], [2], [1], [1], [0, 0, 0, 1, 1, 1], [0], [0]>} : vector<2x8x8xbf16>, vector<2x8x8xbf16>, vector<2x8x8xf32> -> vector<2x8x8xf32>
    "tpu.trace_stop"() : () -> ()
    %cst_38 = arith.constant 0.353553385 : f32
    %70 = vector.broadcast %cst_38 : f32 to vector<2x8x8xf32>
    %71 = arith.mulf %69, %70 : vector<2x8x8xf32>
    %72 = vector.broadcast %7 : vector<2x1x8xf32> to vector<2x8x8xf32>
    %73 = arith.addf %71, %72 : vector<2x8x8xf32>
    %cst_39 = arith.constant dense<0xFF800000> : vector<2x8xf32>
    %74 = vector.multi_reduction <maximumf>, %73, %cst_39 [2] : vector<2x8x8xf32> to vector<2x8xf32>
    %75 = vector.shape_cast %74 : vector<2x8xf32> to vector<2x8x1xf32>
    %76 = vector.broadcast %75 : vector<2x8x1xf32> to vector<2x8x8xf32>
    %77 = arith.subf %73, %76 : vector<2x8x8xf32>
    %78 = math.exp %77 : vector<2x8x8xf32>
    %cst_40 = arith.constant dense<0.000000e+00> : vector<2x8xf32>
    %79 = vector.multi_reduction <add>, %78, %cst_40 [2] : vector<2x8x8xf32> to vector<2x8xf32>
    %80 = vector.shape_cast %79 : vector<2x8xf32> to vector<2x8x1xf32>
    %81 = arith.truncf %78 : vector<2x8x8xf32> to vector<2x8x8xbf16>
    "tpu.trace_start"() <{level = 10 : i32, message = "bqk,bkd->bqd"}> : () -> ()
    %cst_41 = arith.constant dense<0.000000e+00> : vector<2x8x8xf32>
    %82 = tpu.matmul %81, %68, %cst_41 {dimension_numbers = #tpu.dot_dimension_numbers<[2], [1], [1], [2], [0, 0, 0, 1, 1, 2], [0], [0]>} : vector<2x8x8xbf16>, vector<2x8x8xbf16>, vector<2x8x8xf32> -> vector<2x8x8xf32>
    "tpu.trace_stop"() : () -> ()
    %83 = tpu.reciprocal %80 {approx = true} : vector<2x8x1xf32> -> vector<2x8x1xf32>
    %84 = vector.broadcast %83 : vector<2x8x1xf32> to vector<2x8x8xf32>
    %85 = arith.mulf %82, %84 : vector<2x8x8xf32>
    %86 = arith.truncf %85 : vector<2x8x8xf32> to vector<2x8x8xbf16>
    %87 = vector.extract_strided_slice %34 {offsets = [8, 0], sizes = [8, 32], strides = [1, 1]} : vector<32x32xbf16> to vector<8x32xbf16>
    "tpu.trace_start"() <{level = 10 : i32, message = "bqd,de->bqe"}> : () -> ()
    %cst_42 = arith.constant dense<0.000000e+00> : vector<2x8x32xf32>
    %88 = tpu.matmul %86, %87, %cst_42 {dimension_numbers = #tpu.dot_dimension_numbers<[2], [0], [0, 1], [1], [0, 0, 0, 1, 1, 1], [], []>} : vector<2x8x8xbf16>, vector<8x32xbf16>, vector<2x8x32xf32> -> vector<2x8x32xf32>
    "tpu.trace_stop"() : () -> ()
    %89 = arith.addf %62, %88 : vector<2x8x32xf32>
    %90 = vector.extract_strided_slice %16 {offsets = [0, 0, 16], sizes = [2, 8, 8], strides = [1, 1, 1]} : vector<2x8x32xf32> to vector<2x8x8xf32>
    %91 = arith.truncf %90 : vector<2x8x8xf32> to vector<2x8x8xbf16>
    %92 = vector.extract_strided_slice %24 {offsets = [0, 0, 16], sizes = [2, 8, 8], strides = [1, 1, 1]} : vector<2x8x32xf32> to vector<2x8x8xf32>
    %93 = arith.truncf %92 : vector<2x8x8xf32> to vector<2x8x8xbf16>
    %94 = vector.extract_strided_slice %32 {offsets = [0, 0, 16], sizes = [2, 8, 8], strides = [1, 1, 1]} : vector<2x8x32xf32> to vector<2x8x8xf32>
    %95 = arith.truncf %94 : vector<2x8x8xf32> to vector<2x8x8xbf16>
    "tpu.trace_start"() <{level = 10 : i32, message = "bqd,bkd->bqk"}> : () -> ()
    %cst_43 = arith.constant dense<0.000000e+00> : vector<2x8x8xf32>
    %96 = tpu.matmul %91, %93, %cst_43 {dimension_numbers = #tpu.dot_dimension_numbers<[2], [2], [1], [1], [0, 0, 0, 1, 1, 1], [0], [0]>} : vector<2x8x8xbf16>, vector<2x8x8xbf16>, vector<2x8x8xf32> -> vector<2x8x8xf32>
    "tpu.trace_stop"() : () -> ()
    %cst_44 = arith.constant 0.353553385 : f32
    %97 = vector.broadcast %cst_44 : f32 to vector<2x8x8xf32>
    %98 = arith.mulf %96, %97 : vector<2x8x8xf32>
    %99 = vector.broadcast %7 : vector<2x1x8xf32> to vector<2x8x8xf32>
    %100 = arith.addf %98, %99 : vector<2x8x8xf32>
    %cst_45 = arith.constant dense<0xFF800000> : vector<2x8xf32>
    %101 = vector.multi_reduction <maximumf>, %100, %cst_45 [2] : vector<2x8x8xf32> to vector<2x8xf32>
    %102 = vector.shape_cast %101 : vector<2x8xf32> to vector<2x8x1xf32>
    %103 = vector.broadcast %102 : vector<2x8x1xf32> to vector<2x8x8xf32>
    %104 = arith.subf %100, %103 : vector<2x8x8xf32>
    %105 = math.exp %104 : vector<2x8x8xf32>
    %cst_46 = arith.constant dense<0.000000e+00> : vector<2x8xf32>
    %106 = vector.multi_reduction <add>, %105, %cst_46 [2] : vector<2x8x8xf32> to vector<2x8xf32>
    %107 = vector.shape_cast %106 : vector<2x8xf32> to vector<2x8x1xf32>
    %108 = arith.truncf %105 : vector<2x8x8xf32> to vector<2x8x8xbf16>
    "tpu.trace_start"() <{level = 10 : i32, message = "bqk,bkd->bqd"}> : () -> ()
    %cst_47 = arith.constant dense<0.000000e+00> : vector<2x8x8xf32>
    %109 = tpu.matmul %108, %95, %cst_47 {dimension_numbers = #tpu.dot_dimension_numbers<[2], [1], [1], [2], [0, 0, 0, 1, 1, 2], [0], [0]>} : vector<2x8x8xbf16>, vector<2x8x8xbf16>, vector<2x8x8xf32> -> vector<2x8x8xf32>
    "tpu.trace_stop"() : () -> ()
    %110 = tpu.reciprocal %107 {approx = true} : vector<2x8x1xf32> -> vector<2x8x1xf32>
    %111 = vector.broadcast %110 : vector<2x8x1xf32> to vector<2x8x8xf32>
    %112 = arith.mulf %109, %111 : vector<2x8x8xf32>
    %113 = arith.truncf %112 : vector<2x8x8xf32> to vector<2x8x8xbf16>
    %114 = vector.extract_strided_slice %34 {offsets = [16, 0], sizes = [8, 32], strides = [1, 1]} : vector<32x32xbf16> to vector<8x32xbf16>
    "tpu.trace_start"() <{level = 10 : i32, message = "bqd,de->bqe"}> : () -> ()
    %cst_48 = arith.constant dense<0.000000e+00> : vector<2x8x32xf32>
    %115 = tpu.matmul %113, %114, %cst_48 {dimension_numbers = #tpu.dot_dimension_numbers<[2], [0], [0, 1], [1], [0, 0, 0, 1, 1, 1], [], []>} : vector<2x8x8xbf16>, vector<8x32xbf16>, vector<2x8x32xf32> -> vector<2x8x32xf32>
    "tpu.trace_stop"() : () -> ()
    %116 = arith.addf %89, %115 : vector<2x8x32xf32>
    %117 = vector.extract_strided_slice %16 {offsets = [0, 0, 24], sizes = [2, 8, 8], strides = [1, 1, 1]} : vector<2x8x32xf32> to vector<2x8x8xf32>
    %118 = arith.truncf %117 : vector<2x8x8xf32> to vector<2x8x8xbf16>
    %119 = vector.extract_strided_slice %24 {offsets = [0, 0, 24], sizes = [2, 8, 8], strides = [1, 1, 1]} : vector<2x8x32xf32> to vector<2x8x8xf32>
    %120 = arith.truncf %119 : vector<2x8x8xf32> to vector<2x8x8xbf16>
    %121 = vector.extract_strided_slice %32 {offsets = [0, 0, 24], sizes = [2, 8, 8], strides = [1, 1, 1]} : vector<2x8x32xf32> to vector<2x8x8xf32>
    %122 = arith.truncf %121 : vector<2x8x8xf32> to vector<2x8x8xbf16>
    "tpu.trace_start"() <{level = 10 : i32, message = "bqd,bkd->bqk"}> : () -> ()
    %cst_49 = arith.constant dense<0.000000e+00> : vector<2x8x8xf32>
    %123 = tpu.matmul %118, %120, %cst_49 {dimension_numbers = #tpu.dot_dimension_numbers<[2], [2], [1], [1], [0, 0, 0, 1, 1, 1], [0], [0]>} : vector<2x8x8xbf16>, vector<2x8x8xbf16>, vector<2x8x8xf32> -> vector<2x8x8xf32>
    "tpu.trace_stop"() : () -> ()
    %cst_50 = arith.constant 0.353553385 : f32
    %124 = vector.broadcast %cst_50 : f32 to vector<2x8x8xf32>
    %125 = arith.mulf %123, %124 : vector<2x8x8xf32>
    %126 = vector.broadcast %7 : vector<2x1x8xf32> to vector<2x8x8xf32>
    %127 = arith.addf %125, %126 : vector<2x8x8xf32>
    %cst_51 = arith.constant dense<0xFF800000> : vector<2x8xf32>
    %128 = vector.multi_reduction <maximumf>, %127, %cst_51 [2] : vector<2x8x8xf32> to vector<2x8xf32>
    %129 = vector.shape_cast %128 : vector<2x8xf32> to vector<2x8x1xf32>
    %130 = vector.broadcast %129 : vector<2x8x1xf32> to vector<2x8x8xf32>
    %131 = arith.subf %127, %130 : vector<2x8x8xf32>
    %132 = math.exp %131 : vector<2x8x8xf32>
    %cst_52 = arith.constant dense<0.000000e+00> : vector<2x8xf32>
    %133 = vector.multi_reduction <add>, %132, %cst_52 [2] : vector<2x8x8xf32> to vector<2x8xf32>
    %134 = vector.shape_cast %133 : vector<2x8xf32> to vector<2x8x1xf32>
    %135 = arith.truncf %132 : vector<2x8x8xf32> to vector<2x8x8xbf16>
    "tpu.trace_start"() <{level = 10 : i32, message = "bqk,bkd->bqd"}> : () -> ()
    %cst_53 = arith.constant dense<0.000000e+00> : vector<2x8x8xf32>
    %136 = tpu.matmul %135, %122, %cst_53 {dimension_numbers = #tpu.dot_dimension_numbers<[2], [1], [1], [2], [0, 0, 0, 1, 1, 2], [0], [0]>} : vector<2x8x8xbf16>, vector<2x8x8xbf16>, vector<2x8x8xf32> -> vector<2x8x8xf32>
    "tpu.trace_stop"() : () -> ()
    %137 = tpu.reciprocal %134 {approx = true} : vector<2x8x1xf32> -> vector<2x8x1xf32>
    %138 = vector.broadcast %137 : vector<2x8x1xf32> to vector<2x8x8xf32>
    %139 = arith.mulf %136, %138 : vector<2x8x8xf32>
    %140 = arith.truncf %139 : vector<2x8x8xf32> to vector<2x8x8xbf16>
    %141 = vector.extract_strided_slice %34 {offsets = [24, 0], sizes = [8, 32], strides = [1, 1]} : vector<32x32xbf16> to vector<8x32xbf16>
    "tpu.trace_start"() <{level = 10 : i32, message = "bqd,de->bqe"}> : () -> ()
    %cst_54 = arith.constant dense<0.000000e+00> : vector<2x8x32xf32>
    %142 = tpu.matmul %140, %141, %cst_54 {dimension_numbers = #tpu.dot_dimension_numbers<[2], [0], [0, 1], [1], [0, 0, 0, 1, 1, 1], [], []>} : vector<2x8x8xbf16>, vector<8x32xbf16>, vector<2x8x32xf32> -> vector<2x8x32xf32>
    "tpu.trace_stop"() : () -> ()
    %143 = arith.addf %116, %142 : vector<2x8x32xf32>
    %c0_55 = arith.constant 0 : index
    %c0_56 = arith.constant 0 : index
    %c0_57 = arith.constant 0 : index
    %144 = vector.load %arg9[%c0_55, %c0_56, %c0_57] : memref<2x1x32xf32, #tpu.memory_space<vmem>>, vector<1x1x32xf32>
    %145 = vector.shape_cast %144 : vector<1x1x32xf32> to vector<1x32xf32>
    %146 = vector.shape_cast %145 : vector<1x32xf32> to vector<1x1x32xf32>
    %147 = vector.broadcast %146 : vector<1x1x32xf32> to vector<2x8x32xf32>
    %148 = arith.addf %143, %147 : vector<2x8x32xf32>
    %149 = arith.addf %0, %148 : vector<2x8x32xf32>
    %c0_58 = arith.constant 0 : index
    %c0_59 = arith.constant 0 : index
    %c0_60 = arith.constant 0 : index
    %150 = vector.load %arg14[%c0_58, %c0_59, %c0_60] : memref<2x1x32xf32, #tpu.memory_space<vmem>>, vector<1x1x32xf32>
    %151 = vector.shape_cast %150 : vector<1x1x32xf32> to vector<1x32xf32>
    %c0_61 = arith.constant 0 : index
    %c0_62 = arith.constant 0 : index
    %c0_63 = arith.constant 0 : index
    %152 = vector.load %arg15[%c0_61, %c0_62, %c0_63] : memref<2x1x32xf32, #tpu.memory_space<vmem>>, vector<1x1x32xf32>
    %153 = vector.shape_cast %152 : vector<1x1x32xf32> to vector<1x32xf32>
    %cst_64 = arith.constant dense<0.000000e+00> : vector<2x8xf32>
    %154 = vector.multi_reduction <add>, %149, %cst_64 [2] : vector<2x8x32xf32> to vector<2x8xf32>
    %155 = vector.shape_cast %154 : vector<2x8xf32> to vector<2x8x1xf32>
    %cst_65 = arith.constant 3.200000e+01 : f32
    %156 = vector.broadcast %cst_65 : f32 to vector<2x8x1xf32>
    %157 = arith.divf %155, %156 : vector<2x8x1xf32>
    %158 = vector.broadcast %157 : vector<2x8x1xf32> to vector<2x8x32xf32>
    %159 = arith.subf %149, %158 : vector<2x8x32xf32>
    %160 = arith.mulf %159, %159 : vector<2x8x32xf32>
    %cst_66 = arith.constant dense<0.000000e+00> : vector<2x8xf32>
    %161 = vector.multi_reduction <add>, %160, %cst_66 [2] : vector<2x8x32xf32> to vector<2x8xf32>
    %162 = vector.shape_cast %161 : vector<2x8xf32> to vector<2x8x1xf32>
    %cst_67 = arith.constant 3.200000e+01 : f32
    %163 = vector.broadcast %cst_67 : f32 to vector<2x8x1xf32>
    %164 = arith.divf %162, %163 : vector<2x8x1xf32>
    %165 = vector.broadcast %157 : vector<2x8x1xf32> to vector<2x8x32xf32>
    %166 = arith.subf %149, %165 : vector<2x8x32xf32>
    %cst_68 = arith.constant 9.99999974E-6 : f32
    %167 = vector.broadcast %cst_68 : f32 to vector<2x8x1xf32>
    %168 = arith.addf %164, %167 : vector<2x8x1xf32>
    %169 = math.rsqrt %168 : vector<2x8x1xf32>
    %170 = vector.broadcast %169 : vector<2x8x1xf32> to vector<2x8x32xf32>
    %171 = arith.mulf %166, %170 : vector<2x8x32xf32>
    %172 = vector.shape_cast %151 : vector<1x32xf32> to vector<1x1x32xf32>
    %173 = vector.broadcast %172 : vector<1x1x32xf32> to vector<2x8x32xf32>
    %174 = arith.mulf %171, %173 : vector<2x8x32xf32>
    %175 = vector.shape_cast %153 : vector<1x32xf32> to vector<1x1x32xf32>
    %176 = vector.broadcast %175 : vector<1x1x32xf32> to vector<2x8x32xf32>
    %177 = arith.addf %174, %176 : vector<2x8x32xf32>
    %178 = arith.truncf %177 : vector<2x8x32xf32> to vector<2x8x32xbf16>
    %c0_69 = arith.constant 0 : index
    %c0_70 = arith.constant 0 : index
    %c0_71 = arith.constant 0 : index
    %179 = vector.load %arg10[%c0_69, %c0_70, %c0_71] : memref<2x32x32xbf16, #tpu.memory_space<vmem>>, vector<1x32x32xbf16>
    %180 = vector.shape_cast %179 : vector<1x32x32xbf16> to vector<32x32xbf16>
    %c0_72 = arith.constant 0 : index
    %c0_73 = arith.constant 0 : index
    %c0_74 = arith.constant 0 : index
    %181 = vector.load %arg11[%c0_72, %c0_73, %c0_74] : memref<2x1x32xf32, #tpu.memory_space<vmem>>, vector<1x1x32xf32>
    %182 = vector.shape_cast %181 : vector<1x1x32xf32> to vector<1x32xf32>
    "tpu.trace_start"() <{level = 10 : i32, message = "bld,de->ble"}> : () -> ()
    %cst_75 = arith.constant dense<0.000000e+00> : vector<2x8x32xf32>
    %183 = tpu.matmul %178, %180, %cst_75 {dimension_numbers = #tpu.dot_dimension_numbers<[2], [0], [0, 1], [1], [0, 0, 0, 1, 1, 1], [], []>} : vector<2x8x32xbf16>, vector<32x32xbf16>, vector<2x8x32xf32> -> vector<2x8x32xf32>
    "tpu.trace_stop"() : () -> ()
    %184 = vector.shape_cast %182 : vector<1x32xf32> to vector<1x1x32xf32>
    %185 = vector.broadcast %184 : vector<1x1x32xf32> to vector<2x8x32xf32>
    %186 = arith.addf %183, %185 : vector<2x8x32xf32>
    %cst_76 = arith.constant 0.000000e+00 : f32
    %187 = vector.broadcast %cst_76 : f32 to vector<2x8x32xf32>
    %188 = arith.maximumf %186, %187 : vector<2x8x32xf32>
    %189 = arith.truncf %188 : vector<2x8x32xf32> to vector<2x8x32xbf16>
    %c0_77 = arith.constant 0 : index
    %c0_78 = arith.constant 0 : index
    %c0_79 = arith.constant 0 : index
    %190 = vector.load %arg12[%c0_77, %c0_78, %c0_79] : memref<2x32x32xbf16, #tpu.memory_space<vmem>>, vector<1x32x32xbf16>
    %191 = vector.shape_cast %190 : vector<1x32x32xbf16> to vector<32x32xbf16>
    %c0_80 = arith.constant 0 : index
    %c0_81 = arith.constant 0 : index
    %c0_82 = arith.constant 0 : index
    %192 = vector.load %arg13[%c0_80, %c0_81, %c0_82] : memref<2x1x32xf32, #tpu.memory_space<vmem>>, vector<1x1x32xf32>
    %193 = vector.shape_cast %192 : vector<1x1x32xf32> to vector<1x32xf32>
    "tpu.trace_start"() <{level = 10 : i32, message = "bld,de->ble"}> : () -> ()
    %cst_83 = arith.constant dense<0.000000e+00> : vector<2x8x32xf32>
    %194 = tpu.matmul %189, %191, %cst_83 {dimension_numbers = #tpu.dot_dimension_numbers<[2], [0], [0, 1], [1], [0, 0, 0, 1, 1, 1], [], []>} : vector<2x8x32xbf16>, vector<32x32xbf16>, vector<2x8x32xf32> -> vector<2x8x32xf32>
    "tpu.trace_stop"() : () -> ()
    %195 = vector.shape_cast %193 : vector<1x32xf32> to vector<1x1x32xf32>
    %196 = vector.broadcast %195 : vector<1x1x32xf32> to vector<2x8x32xf32>
    %197 = arith.addf %194, %196 : vector<2x8x32xf32>
    %198 = arith.addf %177, %197 : vector<2x8x32xf32>
    %c0_84 = arith.constant 0 : index
    %c0_85 = arith.constant 0 : index
    %c0_86 = arith.constant 0 : index
    %199 = vector.load %arg16[%c0_84, %c0_85, %c0_86] : memref<2x1x32xf32, #tpu.memory_space<vmem>>, vector<1x1x32xf32>
    %200 = vector.shape_cast %199 : vector<1x1x32xf32> to vector<1x32xf32>
    %c0_87 = arith.constant 0 : index
    %c0_88 = arith.constant 0 : index
    %c0_89 = arith.constant 0 : index
    %201 = vector.load %arg17[%c0_87, %c0_88, %c0_89] : memref<2x1x32xf32, #tpu.memory_space<vmem>>, vector<1x1x32xf32>
    %202 = vector.shape_cast %201 : vector<1x1x32xf32> to vector<1x32xf32>
    %cst_90 = arith.constant dense<0.000000e+00> : vector<2x8xf32>
    %203 = vector.multi_reduction <add>, %198, %cst_90 [2] : vector<2x8x32xf32> to vector<2x8xf32>
    %204 = vector.shape_cast %203 : vector<2x8xf32> to vector<2x8x1xf32>
    %cst_91 = arith.constant 3.200000e+01 : f32
    %205 = vector.broadcast %cst_91 : f32 to vector<2x8x1xf32>
    %206 = arith.divf %204, %205 : vector<2x8x1xf32>
    %207 = vector.broadcast %206 : vector<2x8x1xf32> to vector<2x8x32xf32>
    %208 = arith.subf %198, %207 : vector<2x8x32xf32>
    %209 = arith.mulf %208, %208 : vector<2x8x32xf32>
    %cst_92 = arith.constant dense<0.000000e+00> : vector<2x8xf32>
    %210 = vector.multi_reduction <add>, %209, %cst_92 [2] : vector<2x8x32xf32> to vector<2x8xf32>
    %211 = vector.shape_cast %210 : vector<2x8xf32> to vector<2x8x1xf32>
    %cst_93 = arith.constant 3.200000e+01 : f32
    %212 = vector.broadcast %cst_93 : f32 to vector<2x8x1xf32>
    %213 = arith.divf %211, %212 : vector<2x8x1xf32>
    %214 = vector.broadcast %206 : vector<2x8x1xf32> to vector<2x8x32xf32>
    %215 = arith.subf %198, %214 : vector<2x8x32xf32>
    %cst_94 = arith.constant 9.99999974E-6 : f32
    %216 = vector.broadcast %cst_94 : f32 to vector<2x8x1xf32>
    %217 = arith.addf %213, %216 : vector<2x8x1xf32>
    %218 = math.rsqrt %217 : vector<2x8x1xf32>
    %219 = vector.broadcast %218 : vector<2x8x1xf32> to vector<2x8x32xf32>
    %220 = arith.mulf %215, %219 : vector<2x8x32xf32>
    %221 = vector.shape_cast %200 : vector<1x32xf32> to vector<1x1x32xf32>
    %222 = vector.broadcast %221 : vector<1x1x32xf32> to vector<2x8x32xf32>
    %223 = arith.mulf %220, %222 : vector<2x8x32xf32>
    %224 = vector.shape_cast %202 : vector<1x32xf32> to vector<1x1x32xf32>
    %225 = vector.broadcast %224 : vector<1x1x32xf32> to vector<2x8x32xf32>
    %226 = arith.addf %223, %225 : vector<2x8x32xf32>
    %227 = arith.truncf %226 : vector<2x8x32xf32> to vector<2x8x32xbf16>
    %c1 = arith.constant 1 : index
    %c0_95 = arith.constant 0 : index
    %c0_96 = arith.constant 0 : index
    %228 = vector.load %arg2[%c1, %c0_95, %c0_96] : memref<2x32x32xbf16, #tpu.memory_space<vmem>>, vector<1x32x32xbf16>
    %229 = vector.shape_cast %228 : vector<1x32x32xbf16> to vector<32x32xbf16>
    %c1_97 = arith.constant 1 : index
    %c0_98 = arith.constant 0 : index
    %c0_99 = arith.constant 0 : index
    %230 = vector.load %arg3[%c1_97, %c0_98, %c0_99] : memref<2x1x32xf32, #tpu.memory_space<vmem>>, vector<1x1x32xf32>
    %231 = vector.shape_cast %230 : vector<1x1x32xf32> to vector<1x32xf32>
    "tpu.trace_start"() <{level = 10 : i32, message = "bld,de->ble"}> : () -> ()
    %cst_100 = arith.constant dense<0.000000e+00> : vector<2x8x32xf32>
    %232 = tpu.matmul %227, %229, %cst_100 {dimension_numbers = #tpu.dot_dimension_numbers<[2], [0], [0, 1], [1], [0, 0, 0, 1, 1, 1], [], []>} : vector<2x8x32xbf16>, vector<32x32xbf16>, vector<2x8x32xf32> -> vector<2x8x32xf32>
    "tpu.trace_stop"() : () -> ()
    %233 = vector.shape_cast %231 : vector<1x32xf32> to vector<1x1x32xf32>
    %234 = vector.broadcast %233 : vector<1x1x32xf32> to vector<2x8x32xf32>
    %235 = arith.addf %232, %234 : vector<2x8x32xf32>
    %c1_101 = arith.constant 1 : index
    %c0_102 = arith.constant 0 : index
    %c0_103 = arith.constant 0 : index
    %236 = vector.load %arg4[%c1_101, %c0_102, %c0_103] : memref<2x32x32xbf16, #tpu.memory_space<vmem>>, vector<1x32x32xbf16>
    %237 = vector.shape_cast %236 : vector<1x32x32xbf16> to vector<32x32xbf16>
    %c1_104 = arith.constant 1 : index
    %c0_105 = arith.constant 0 : index
    %c0_106 = arith.constant 0 : index
    %238 = vector.load %arg5[%c1_104, %c0_105, %c0_106] : memref<2x1x32xf32, #tpu.memory_space<vmem>>, vector<1x1x32xf32>
    %239 = vector.shape_cast %238 : vector<1x1x32xf32> to vector<1x32xf32>
    "tpu.trace_start"() <{level = 10 : i32, message = "bld,de->ble"}> : () -> ()
    %cst_107 = arith.constant dense<0.000000e+00> : vector<2x8x32xf32>
    %240 = tpu.matmul %227, %237, %cst_107 {dimension_numbers = #tpu.dot_dimension_numbers<[2], [0], [0, 1], [1], [0, 0, 0, 1, 1, 1], [], []>} : vector<2x8x32xbf16>, vector<32x32xbf16>, vector<2x8x32xf32> -> vector<2x8x32xf32>
    "tpu.trace_stop"() : () -> ()
    %241 = vector.shape_cast %239 : vector<1x32xf32> to vector<1x1x32xf32>
    %242 = vector.broadcast %241 : vector<1x1x32xf32> to vector<2x8x32xf32>
    %243 = arith.addf %240, %242 : vector<2x8x32xf32>
    %c1_108 = arith.constant 1 : index
    %c0_109 = arith.constant 0 : index
    %c0_110 = arith.constant 0 : index
    %244 = vector.load %arg6[%c1_108, %c0_109, %c0_110] : memref<2x32x32xbf16, #tpu.memory_space<vmem>>, vector<1x32x32xbf16>
    %245 = vector.shape_cast %244 : vector<1x32x32xbf16> to vector<32x32xbf16>
    %c1_111 = arith.constant 1 : index
    %c0_112 = arith.constant 0 : index
    %c0_113 = arith.constant 0 : index
    %246 = vector.load %arg7[%c1_111, %c0_112, %c0_113] : memref<2x1x32xf32, #tpu.memory_space<vmem>>, vector<1x1x32xf32>
    %247 = vector.shape_cast %246 : vector<1x1x32xf32> to vector<1x32xf32>
    "tpu.trace_start"() <{level = 10 : i32, message = "bld,de->ble"}> : () -> ()
    %cst_114 = arith.constant dense<0.000000e+00> : vector<2x8x32xf32>
    %248 = tpu.matmul %227, %245, %cst_114 {dimension_numbers = #tpu.dot_dimension_numbers<[2], [0], [0, 1], [1], [0, 0, 0, 1, 1, 1], [], []>} : vector<2x8x32xbf16>, vector<32x32xbf16>, vector<2x8x32xf32> -> vector<2x8x32xf32>
    "tpu.trace_stop"() : () -> ()
    %249 = vector.shape_cast %247 : vector<1x32xf32> to vector<1x1x32xf32>
    %250 = vector.broadcast %249 : vector<1x1x32xf32> to vector<2x8x32xf32>
    %251 = arith.addf %248, %250 : vector<2x8x32xf32>
    %c1_115 = arith.constant 1 : index
    %c0_116 = arith.constant 0 : index
    %c0_117 = arith.constant 0 : index
    %252 = vector.load %arg8[%c1_115, %c0_116, %c0_117] : memref<2x32x32xbf16, #tpu.memory_space<vmem>>, vector<1x32x32xbf16>
    %253 = vector.shape_cast %252 : vector<1x32x32xbf16> to vector<32x32xbf16>
    %cst_118 = arith.constant 0.000000e+00 : f32
    %254 = vector.broadcast %cst_118 : f32 to vector<2x8x32xf32>
    %255 = vector.extract_strided_slice %235 {offsets = [0, 0, 0], sizes = [2, 8, 8], strides = [1, 1, 1]} : vector<2x8x32xf32> to vector<2x8x8xf32>
    %256 = arith.truncf %255 : vector<2x8x8xf32> to vector<2x8x8xbf16>
    %257 = vector.extract_strided_slice %243 {offsets = [0, 0, 0], sizes = [2, 8, 8], strides = [1, 1, 1]} : vector<2x8x32xf32> to vector<2x8x8xf32>
    %258 = arith.truncf %257 : vector<2x8x8xf32> to vector<2x8x8xbf16>
    %259 = vector.extract_strided_slice %251 {offsets = [0, 0, 0], sizes = [2, 8, 8], strides = [1, 1, 1]} : vector<2x8x32xf32> to vector<2x8x8xf32>
    %260 = arith.truncf %259 : vector<2x8x8xf32> to vector<2x8x8xbf16>
    "tpu.trace_start"() <{level = 10 : i32, message = "bqd,bkd->bqk"}> : () -> ()
    %cst_119 = arith.constant dense<0.000000e+00> : vector<2x8x8xf32>
    %261 = tpu.matmul %256, %258, %cst_119 {dimension_numbers = #tpu.dot_dimension_numbers<[2], [2], [1], [1], [0, 0, 0, 1, 1, 1], [0], [0]>} : vector<2x8x8xbf16>, vector<2x8x8xbf16>, vector<2x8x8xf32> -> vector<2x8x8xf32>
    "tpu.trace_stop"() : () -> ()
    %cst_120 = arith.constant 0.353553385 : f32
    %262 = vector.broadcast %cst_120 : f32 to vector<2x8x8xf32>
    %263 = arith.mulf %261, %262 : vector<2x8x8xf32>
    %264 = vector.broadcast %7 : vector<2x1x8xf32> to vector<2x8x8xf32>
    %265 = arith.addf %263, %264 : vector<2x8x8xf32>
    %cst_121 = arith.constant dense<0xFF800000> : vector<2x8xf32>
    %266 = vector.multi_reduction <maximumf>, %265, %cst_121 [2] : vector<2x8x8xf32> to vector<2x8xf32>
    %267 = vector.shape_cast %266 : vector<2x8xf32> to vector<2x8x1xf32>
    %268 = vector.broadcast %267 : vector<2x8x1xf32> to vector<2x8x8xf32>
    %269 = arith.subf %265, %268 : vector<2x8x8xf32>
    %270 = math.exp %269 : vector<2x8x8xf32>
    %cst_122 = arith.constant dense<0.000000e+00> : vector<2x8xf32>
    %271 = vector.multi_reduction <add>, %270, %cst_122 [2] : vector<2x8x8xf32> to vector<2x8xf32>
    %272 = vector.shape_cast %271 : vector<2x8xf32> to vector<2x8x1xf32>
    %273 = arith.truncf %270 : vector<2x8x8xf32> to vector<2x8x8xbf16>
    "tpu.trace_start"() <{level = 10 : i32, message = "bqk,bkd->bqd"}> : () -> ()
    %cst_123 = arith.constant dense<0.000000e+00> : vector<2x8x8xf32>
    %274 = tpu.matmul %273, %260, %cst_123 {dimension_numbers = #tpu.dot_dimension_numbers<[2], [1], [1], [2], [0, 0, 0, 1, 1, 2], [0], [0]>} : vector<2x8x8xbf16>, vector<2x8x8xbf16>, vector<2x8x8xf32> -> vector<2x8x8xf32>
    "tpu.trace_stop"() : () -> ()
    %275 = tpu.reciprocal %272 {approx = true} : vector<2x8x1xf32> -> vector<2x8x1xf32>
    %276 = vector.broadcast %275 : vector<2x8x1xf32> to vector<2x8x8xf32>
    %277 = arith.mulf %274, %276 : vector<2x8x8xf32>
    %278 = arith.truncf %277 : vector<2x8x8xf32> to vector<2x8x8xbf16>
    %279 = vector.extract_strided_slice %253 {offsets = [0, 0], sizes = [8, 32], strides = [1, 1]} : vector<32x32xbf16> to vector<8x32xbf16>
    "tpu.trace_start"() <{level = 10 : i32, message = "bqd,de->bqe"}> : () -> ()
    %cst_124 = arith.constant dense<0.000000e+00> : vector<2x8x32xf32>
    %280 = tpu.matmul %278, %279, %cst_124 {dimension_numbers = #tpu.dot_dimension_numbers<[2], [0], [0, 1], [1], [0, 0, 0, 1, 1, 1], [], []>} : vector<2x8x8xbf16>, vector<8x32xbf16>, vector<2x8x32xf32> -> vector<2x8x32xf32>
    "tpu.trace_stop"() : () -> ()
    %281 = arith.addf %254, %280 : vector<2x8x32xf32>
    %282 = vector.extract_strided_slice %235 {offsets = [0, 0, 8], sizes = [2, 8, 8], strides = [1, 1, 1]} : vector<2x8x32xf32> to vector<2x8x8xf32>
    %283 = arith.truncf %282 : vector<2x8x8xf32> to vector<2x8x8xbf16>
    %284 = vector.extract_strided_slice %243 {offsets = [0, 0, 8], sizes = [2, 8, 8], strides = [1, 1, 1]} : vector<2x8x32xf32> to vector<2x8x8xf32>
    %285 = arith.truncf %284 : vector<2x8x8xf32> to vector<2x8x8xbf16>
    %286 = vector.extract_strided_slice %251 {offsets = [0, 0, 8], sizes = [2, 8, 8], strides = [1, 1, 1]} : vector<2x8x32xf32> to vector<2x8x8xf32>
    %287 = arith.truncf %286 : vector<2x8x8xf32> to vector<2x8x8xbf16>
    "tpu.trace_start"() <{level = 10 : i32, message = "bqd,bkd->bqk"}> : () -> ()
    %cst_125 = arith.constant dense<0.000000e+00> : vector<2x8x8xf32>
    %288 = tpu.matmul %283, %285, %cst_125 {dimension_numbers = #tpu.dot_dimension_numbers<[2], [2], [1], [1], [0, 0, 0, 1, 1, 1], [0], [0]>} : vector<2x8x8xbf16>, vector<2x8x8xbf16>, vector<2x8x8xf32> -> vector<2x8x8xf32>
    "tpu.trace_stop"() : () -> ()
    %cst_126 = arith.constant 0.353553385 : f32
    %289 = vector.broadcast %cst_126 : f32 to vector<2x8x8xf32>
    %290 = arith.mulf %288, %289 : vector<2x8x8xf32>
    %291 = vector.broadcast %7 : vector<2x1x8xf32> to vector<2x8x8xf32>
    %292 = arith.addf %290, %291 : vector<2x8x8xf32>
    %cst_127 = arith.constant dense<0xFF800000> : vector<2x8xf32>
    %293 = vector.multi_reduction <maximumf>, %292, %cst_127 [2] : vector<2x8x8xf32> to vector<2x8xf32>
    %294 = vector.shape_cast %293 : vector<2x8xf32> to vector<2x8x1xf32>
    %295 = vector.broadcast %294 : vector<2x8x1xf32> to vector<2x8x8xf32>
    %296 = arith.subf %292, %295 : vector<2x8x8xf32>
    %297 = math.exp %296 : vector<2x8x8xf32>
    %cst_128 = arith.constant dense<0.000000e+00> : vector<2x8xf32>
    %298 = vector.multi_reduction <add>, %297, %cst_128 [2] : vector<2x8x8xf32> to vector<2x8xf32>
    %299 = vector.shape_cast %298 : vector<2x8xf32> to vector<2x8x1xf32>
    %300 = arith.truncf %297 : vector<2x8x8xf32> to vector<2x8x8xbf16>
    "tpu.trace_start"() <{level = 10 : i32, message = "bqk,bkd->bqd"}> : () -> ()
    %cst_129 = arith.constant dense<0.000000e+00> : vector<2x8x8xf32>
    %301 = tpu.matmul %300, %287, %cst_129 {dimension_numbers = #tpu.dot_dimension_numbers<[2], [1], [1], [2], [0, 0, 0, 1, 1, 2], [0], [0]>} : vector<2x8x8xbf16>, vector<2x8x8xbf16>, vector<2x8x8xf32> -> vector<2x8x8xf32>
    "tpu.trace_stop"() : () -> ()
    %302 = tpu.reciprocal %299 {approx = true} : vector<2x8x1xf32> -> vector<2x8x1xf32>
    %303 = vector.broadcast %302 : vector<2x8x1xf32> to vector<2x8x8xf32>
    %304 = arith.mulf %301, %303 : vector<2x8x8xf32>
    %305 = arith.truncf %304 : vector<2x8x8xf32> to vector<2x8x8xbf16>
    %306 = vector.extract_strided_slice %253 {offsets = [8, 0], sizes = [8, 32], strides = [1, 1]} : vector<32x32xbf16> to vector<8x32xbf16>
    "tpu.trace_start"() <{level = 10 : i32, message = "bqd,de->bqe"}> : () -> ()
    %cst_130 = arith.constant dense<0.000000e+00> : vector<2x8x32xf32>
    %307 = tpu.matmul %305, %306, %cst_130 {dimension_numbers = #tpu.dot_dimension_numbers<[2], [0], [0, 1], [1], [0, 0, 0, 1, 1, 1], [], []>} : vector<2x8x8xbf16>, vector<8x32xbf16>, vector<2x8x32xf32> -> vector<2x8x32xf32>
    "tpu.trace_stop"() : () -> ()
    %308 = arith.addf %281, %307 : vector<2x8x32xf32>
    %309 = vector.extract_strided_slice %235 {offsets = [0, 0, 16], sizes = [2, 8, 8], strides = [1, 1, 1]} : vector<2x8x32xf32> to vector<2x8x8xf32>
    %310 = arith.truncf %309 : vector<2x8x8xf32> to vector<2x8x8xbf16>
    %311 = vector.extract_strided_slice %243 {offsets = [0, 0, 16], sizes = [2, 8, 8], strides = [1, 1, 1]} : vector<2x8x32xf32> to vector<2x8x8xf32>
    %312 = arith.truncf %311 : vector<2x8x8xf32> to vector<2x8x8xbf16>
    %313 = vector.extract_strided_slice %251 {offsets = [0, 0, 16], sizes = [2, 8, 8], strides = [1, 1, 1]} : vector<2x8x32xf32> to vector<2x8x8xf32>
    %314 = arith.truncf %313 : vector<2x8x8xf32> to vector<2x8x8xbf16>
    "tpu.trace_start"() <{level = 10 : i32, message = "bqd,bkd->bqk"}> : () -> ()
    %cst_131 = arith.constant dense<0.000000e+00> : vector<2x8x8xf32>
    %315 = tpu.matmul %310, %312, %cst_131 {dimension_numbers = #tpu.dot_dimension_numbers<[2], [2], [1], [1], [0, 0, 0, 1, 1, 1], [0], [0]>} : vector<2x8x8xbf16>, vector<2x8x8xbf16>, vector<2x8x8xf32> -> vector<2x8x8xf32>
    "tpu.trace_stop"() : () -> ()
    %cst_132 = arith.constant 0.353553385 : f32
    %316 = vector.broadcast %cst_132 : f32 to vector<2x8x8xf32>
    %317 = arith.mulf %315, %316 : vector<2x8x8xf32>
    %318 = vector.broadcast %7 : vector<2x1x8xf32> to vector<2x8x8xf32>
    %319 = arith.addf %317, %318 : vector<2x8x8xf32>
    %cst_133 = arith.constant dense<0xFF800000> : vector<2x8xf32>
    %320 = vector.multi_reduction <maximumf>, %319, %cst_133 [2] : vector<2x8x8xf32> to vector<2x8xf32>
    %321 = vector.shape_cast %320 : vector<2x8xf32> to vector<2x8x1xf32>
    %322 = vector.broadcast %321 : vector<2x8x1xf32> to vector<2x8x8xf32>
    %323 = arith.subf %319, %322 : vector<2x8x8xf32>
    %324 = math.exp %323 : vector<2x8x8xf32>
    %cst_134 = arith.constant dense<0.000000e+00> : vector<2x8xf32>
    %325 = vector.multi_reduction <add>, %324, %cst_134 [2] : vector<2x8x8xf32> to vector<2x8xf32>
    %326 = vector.shape_cast %325 : vector<2x8xf32> to vector<2x8x1xf32>
    %327 = arith.truncf %324 : vector<2x8x8xf32> to vector<2x8x8xbf16>
    "tpu.trace_start"() <{level = 10 : i32, message = "bqk,bkd->bqd"}> : () -> ()
    %cst_135 = arith.constant dense<0.000000e+00> : vector<2x8x8xf32>
    %328 = tpu.matmul %327, %314, %cst_135 {dimension_numbers = #tpu.dot_dimension_numbers<[2], [1], [1], [2], [0, 0, 0, 1, 1, 2], [0], [0]>} : vector<2x8x8xbf16>, vector<2x8x8xbf16>, vector<2x8x8xf32> -> vector<2x8x8xf32>
    "tpu.trace_stop"() : () -> ()
    %329 = tpu.reciprocal %326 {approx = true} : vector<2x8x1xf32> -> vector<2x8x1xf32>
    %330 = vector.broadcast %329 : vector<2x8x1xf32> to vector<2x8x8xf32>
    %331 = arith.mulf %328, %330 : vector<2x8x8xf32>
    %332 = arith.truncf %331 : vector<2x8x8xf32> to vector<2x8x8xbf16>
    %333 = vector.extract_strided_slice %253 {offsets = [16, 0], sizes = [8, 32], strides = [1, 1]} : vector<32x32xbf16> to vector<8x32xbf16>
    "tpu.trace_start"() <{level = 10 : i32, message = "bqd,de->bqe"}> : () -> ()
    %cst_136 = arith.constant dense<0.000000e+00> : vector<2x8x32xf32>
    %334 = tpu.matmul %332, %333, %cst_136 {dimension_numbers = #tpu.dot_dimension_numbers<[2], [0], [0, 1], [1], [0, 0, 0, 1, 1, 1], [], []>} : vector<2x8x8xbf16>, vector<8x32xbf16>, vector<2x8x32xf32> -> vector<2x8x32xf32>
    "tpu.trace_stop"() : () -> ()
    %335 = arith.addf %308, %334 : vector<2x8x32xf32>
    %336 = vector.extract_strided_slice %235 {offsets = [0, 0, 24], sizes = [2, 8, 8], strides = [1, 1, 1]} : vector<2x8x32xf32> to vector<2x8x8xf32>
    %337 = arith.truncf %336 : vector<2x8x8xf32> to vector<2x8x8xbf16>
    %338 = vector.extract_strided_slice %243 {offsets = [0, 0, 24], sizes = [2, 8, 8], strides = [1, 1, 1]} : vector<2x8x32xf32> to vector<2x8x8xf32>
    %339 = arith.truncf %338 : vector<2x8x8xf32> to vector<2x8x8xbf16>
    %340 = vector.extract_strided_slice %251 {offsets = [0, 0, 24], sizes = [2, 8, 8], strides = [1, 1, 1]} : vector<2x8x32xf32> to vector<2x8x8xf32>
    %341 = arith.truncf %340 : vector<2x8x8xf32> to vector<2x8x8xbf16>
    "tpu.trace_start"() <{level = 10 : i32, message = "bqd,bkd->bqk"}> : () -> ()
    %cst_137 = arith.constant dense<0.000000e+00> : vector<2x8x8xf32>
    %342 = tpu.matmul %337, %339, %cst_137 {dimension_numbers = #tpu.dot_dimension_numbers<[2], [2], [1], [1], [0, 0, 0, 1, 1, 1], [0], [0]>} : vector<2x8x8xbf16>, vector<2x8x8xbf16>, vector<2x8x8xf32> -> vector<2x8x8xf32>
    "tpu.trace_stop"() : () -> ()
    %cst_138 = arith.constant 0.353553385 : f32
    %343 = vector.broadcast %cst_138 : f32 to vector<2x8x8xf32>
    %344 = arith.mulf %342, %343 : vector<2x8x8xf32>
    %345 = vector.broadcast %7 : vector<2x1x8xf32> to vector<2x8x8xf32>
    %346 = arith.addf %344, %345 : vector<2x8x8xf32>
    %cst_139 = arith.constant dense<0xFF800000> : vector<2x8xf32>
    %347 = vector.multi_reduction <maximumf>, %346, %cst_139 [2] : vector<2x8x8xf32> to vector<2x8xf32>
    %348 = vector.shape_cast %347 : vector<2x8xf32> to vector<2x8x1xf32>
    %349 = vector.broadcast %348 : vector<2x8x1xf32> to vector<2x8x8xf32>
    %350 = arith.subf %346, %349 : vector<2x8x8xf32>
    %351 = math.exp %350 : vector<2x8x8xf32>
    %cst_140 = arith.constant dense<0.000000e+00> : vector<2x8xf32>
    %352 = vector.multi_reduction <add>, %351, %cst_140 [2] : vector<2x8x8xf32> to vector<2x8xf32>
    %353 = vector.shape_cast %352 : vector<2x8xf32> to vector<2x8x1xf32>
    %354 = arith.truncf %351 : vector<2x8x8xf32> to vector<2x8x8xbf16>
    "tpu.trace_start"() <{level = 10 : i32, message = "bqk,bkd->bqd"}> : () -> ()
    %cst_141 = arith.constant dense<0.000000e+00> : vector<2x8x8xf32>
    %355 = tpu.matmul %354, %341, %cst_141 {dimension_numbers = #tpu.dot_dimension_numbers<[2], [1], [1], [2], [0, 0, 0, 1, 1, 2], [0], [0]>} : vector<2x8x8xbf16>, vector<2x8x8xbf16>, vector<2x8x8xf32> -> vector<2x8x8xf32>
    "tpu.trace_stop"() : () -> ()
    %356 = tpu.reciprocal %353 {approx = true} : vector<2x8x1xf32> -> vector<2x8x1xf32>
    %357 = vector.broadcast %356 : vector<2x8x1xf32> to vector<2x8x8xf32>
    %358 = arith.mulf %355, %357 : vector<2x8x8xf32>
    %359 = arith.truncf %358 : vector<2x8x8xf32> to vector<2x8x8xbf16>
    %360 = vector.extract_strided_slice %253 {offsets = [24, 0], sizes = [8, 32], strides = [1, 1]} : vector<32x32xbf16> to vector<8x32xbf16>
    "tpu.trace_start"() <{level = 10 : i32, message = "bqd,de->bqe"}> : () -> ()
    %cst_142 = arith.constant dense<0.000000e+00> : vector<2x8x32xf32>
    %361 = tpu.matmul %359, %360, %cst_142 {dimension_numbers = #tpu.dot_dimension_numbers<[2], [0], [0, 1], [1], [0, 0, 0, 1, 1, 1], [], []>} : vector<2x8x8xbf16>, vector<8x32xbf16>, vector<2x8x32xf32> -> vector<2x8x32xf32>
    "tpu.trace_stop"() : () -> ()
    %362 = arith.addf %335, %361 : vector<2x8x32xf32>
    %c1_143 = arith.constant 1 : index
    %c0_144 = arith.constant 0 : index
    %c0_145 = arith.constant 0 : index
    %363 = vector.load %arg9[%c1_143, %c0_144, %c0_145] : memref<2x1x32xf32, #tpu.memory_space<vmem>>, vector<1x1x32xf32>
    %364 = vector.shape_cast %363 : vector<1x1x32xf32> to vector<1x32xf32>
    %365 = vector.shape_cast %364 : vector<1x32xf32> to vector<1x1x32xf32>
    %366 = vector.broadcast %365 : vector<1x1x32xf32> to vector<2x8x32xf32>
    %367 = arith.addf %362, %366 : vector<2x8x32xf32>
    %368 = arith.addf %226, %367 : vector<2x8x32xf32>
    %c1_146 = arith.constant 1 : index
    %c0_147 = arith.constant 0 : index
    %c0_148 = arith.constant 0 : index
    %369 = vector.load %arg14[%c1_146, %c0_147, %c0_148] : memref<2x1x32xf32, #tpu.memory_space<vmem>>, vector<1x1x32xf32>
    %370 = vector.shape_cast %369 : vector<1x1x32xf32> to vector<1x32xf32>
    %c1_149 = arith.constant 1 : index
    %c0_150 = arith.constant 0 : index
    %c0_151 = arith.constant 0 : index
    %371 = vector.load %arg15[%c1_149, %c0_150, %c0_151] : memref<2x1x32xf32, #tpu.memory_space<vmem>>, vector<1x1x32xf32>
    %372 = vector.shape_cast %371 : vector<1x1x32xf32> to vector<1x32xf32>
    %cst_152 = arith.constant dense<0.000000e+00> : vector<2x8xf32>
    %373 = vector.multi_reduction <add>, %368, %cst_152 [2] : vector<2x8x32xf32> to vector<2x8xf32>
    %374 = vector.shape_cast %373 : vector<2x8xf32> to vector<2x8x1xf32>
    %cst_153 = arith.constant 3.200000e+01 : f32
    %375 = vector.broadcast %cst_153 : f32 to vector<2x8x1xf32>
    %376 = arith.divf %374, %375 : vector<2x8x1xf32>
    %377 = vector.broadcast %376 : vector<2x8x1xf32> to vector<2x8x32xf32>
    %378 = arith.subf %368, %377 : vector<2x8x32xf32>
    %379 = arith.mulf %378, %378 : vector<2x8x32xf32>
    %cst_154 = arith.constant dense<0.000000e+00> : vector<2x8xf32>
    %380 = vector.multi_reduction <add>, %379, %cst_154 [2] : vector<2x8x32xf32> to vector<2x8xf32>
    %381 = vector.shape_cast %380 : vector<2x8xf32> to vector<2x8x1xf32>
    %cst_155 = arith.constant 3.200000e+01 : f32
    %382 = vector.broadcast %cst_155 : f32 to vector<2x8x1xf32>
    %383 = arith.divf %381, %382 : vector<2x8x1xf32>
    %384 = vector.broadcast %376 : vector<2x8x1xf32> to vector<2x8x32xf32>
    %385 = arith.subf %368, %384 : vector<2x8x32xf32>
    %cst_156 = arith.constant 9.99999974E-6 : f32
    %386 = vector.broadcast %cst_156 : f32 to vector<2x8x1xf32>
    %387 = arith.addf %383, %386 : vector<2x8x1xf32>
    %388 = math.rsqrt %387 : vector<2x8x1xf32>
    %389 = vector.broadcast %388 : vector<2x8x1xf32> to vector<2x8x32xf32>
    %390 = arith.mulf %385, %389 : vector<2x8x32xf32>
    %391 = vector.shape_cast %370 : vector<1x32xf32> to vector<1x1x32xf32>
    %392 = vector.broadcast %391 : vector<1x1x32xf32> to vector<2x8x32xf32>
    %393 = arith.mulf %390, %392 : vector<2x8x32xf32>
    %394 = vector.shape_cast %372 : vector<1x32xf32> to vector<1x1x32xf32>
    %395 = vector.broadcast %394 : vector<1x1x32xf32> to vector<2x8x32xf32>
    %396 = arith.addf %393, %395 : vector<2x8x32xf32>
    %397 = arith.truncf %396 : vector<2x8x32xf32> to vector<2x8x32xbf16>
    %c1_157 = arith.constant 1 : index
    %c0_158 = arith.constant 0 : index
    %c0_159 = arith.constant 0 : index
    %398 = vector.load %arg10[%c1_157, %c0_158, %c0_159] : memref<2x32x32xbf16, #tpu.memory_space<vmem>>, vector<1x32x32xbf16>
    %399 = vector.shape_cast %398 : vector<1x32x32xbf16> to vector<32x32xbf16>
    %c1_160 = arith.constant 1 : index
    %c0_161 = arith.constant 0 : index
    %c0_162 = arith.constant 0 : index
    %400 = vector.load %arg11[%c1_160, %c0_161, %c0_162] : memref<2x1x32xf32, #tpu.memory_space<vmem>>, vector<1x1x32xf32>
    %401 = vector.shape_cast %400 : vector<1x1x32xf32> to vector<1x32xf32>
    "tpu.trace_start"() <{level = 10 : i32, message = "bld,de->ble"}> : () -> ()
    %cst_163 = arith.constant dense<0.000000e+00> : vector<2x8x32xf32>
    %402 = tpu.matmul %397, %399, %cst_163 {dimension_numbers = #tpu.dot_dimension_numbers<[2], [0], [0, 1], [1], [0, 0, 0, 1, 1, 1], [], []>} : vector<2x8x32xbf16>, vector<32x32xbf16>, vector<2x8x32xf32> -> vector<2x8x32xf32>
    "tpu.trace_stop"() : () -> ()
    %403 = vector.shape_cast %401 : vector<1x32xf32> to vector<1x1x32xf32>
    %404 = vector.broadcast %403 : vector<1x1x32xf32> to vector<2x8x32xf32>
    %405 = arith.addf %402, %404 : vector<2x8x32xf32>
    %cst_164 = arith.constant 0.000000e+00 : f32
    %406 = vector.broadcast %cst_164 : f32 to vector<2x8x32xf32>
    %407 = arith.maximumf %405, %406 : vector<2x8x32xf32>
    %408 = arith.truncf %407 : vector<2x8x32xf32> to vector<2x8x32xbf16>
    %c1_165 = arith.constant 1 : index
    %c0_166 = arith.constant 0 : index
    %c0_167 = arith.constant 0 : index
    %409 = vector.load %arg12[%c1_165, %c0_166, %c0_167] : memref<2x32x32xbf16, #tpu.memory_space<vmem>>, vector<1x32x32xbf16>
    %410 = vector.shape_cast %409 : vector<1x32x32xbf16> to vector<32x32xbf16>
    %c1_168 = arith.constant 1 : index
    %c0_169 = arith.constant 0 : index
    %c0_170 = arith.constant 0 : index
    %411 = vector.load %arg13[%c1_168, %c0_169, %c0_170] : memref<2x1x32xf32, #tpu.memory_space<vmem>>, vector<1x1x32xf32>
    %412 = vector.shape_cast %411 : vector<1x1x32xf32> to vector<1x32xf32>
    "tpu.trace_start"() <{level = 10 : i32, message = "bld,de->ble"}> : () -> ()
    %cst_171 = arith.constant dense<0.000000e+00> : vector<2x8x32xf32>
    %413 = tpu.matmul %408, %410, %cst_171 {dimension_numbers = #tpu.dot_dimension_numbers<[2], [0], [0, 1], [1], [0, 0, 0, 1, 1, 1], [], []>} : vector<2x8x32xbf16>, vector<32x32xbf16>, vector<2x8x32xf32> -> vector<2x8x32xf32>
    "tpu.trace_stop"() : () -> ()
    %414 = vector.shape_cast %412 : vector<1x32xf32> to vector<1x1x32xf32>
    %415 = vector.broadcast %414 : vector<1x1x32xf32> to vector<2x8x32xf32>
    %416 = arith.addf %413, %415 : vector<2x8x32xf32>
    %417 = arith.addf %396, %416 : vector<2x8x32xf32>
    %c1_172 = arith.constant 1 : index
    %c0_173 = arith.constant 0 : index
    %c0_174 = arith.constant 0 : index
    %418 = vector.load %arg16[%c1_172, %c0_173, %c0_174] : memref<2x1x32xf32, #tpu.memory_space<vmem>>, vector<1x1x32xf32>
    %419 = vector.shape_cast %418 : vector<1x1x32xf32> to vector<1x32xf32>
    %c1_175 = arith.constant 1 : index
    %c0_176 = arith.constant 0 : index
    %c0_177 = arith.constant 0 : index
    %420 = vector.load %arg17[%c1_175, %c0_176, %c0_177] : memref<2x1x32xf32, #tpu.memory_space<vmem>>, vector<1x1x32xf32>
    %421 = vector.shape_cast %420 : vector<1x1x32xf32> to vector<1x32xf32>
    %cst_178 = arith.constant dense<0.000000e+00> : vector<2x8xf32>
    %422 = vector.multi_reduction <add>, %417, %cst_178 [2] : vector<2x8x32xf32> to vector<2x8xf32>
    %423 = vector.shape_cast %422 : vector<2x8xf32> to vector<2x8x1xf32>
    %cst_179 = arith.constant 3.200000e+01 : f32
    %424 = vector.broadcast %cst_179 : f32 to vector<2x8x1xf32>
    %425 = arith.divf %423, %424 : vector<2x8x1xf32>
    %426 = vector.broadcast %425 : vector<2x8x1xf32> to vector<2x8x32xf32>
    %427 = arith.subf %417, %426 : vector<2x8x32xf32>
    %428 = arith.mulf %427, %427 : vector<2x8x32xf32>
    %cst_180 = arith.constant dense<0.000000e+00> : vector<2x8xf32>
    %429 = vector.multi_reduction <add>, %428, %cst_180 [2] : vector<2x8x32xf32> to vector<2x8xf32>
    %430 = vector.shape_cast %429 : vector<2x8xf32> to vector<2x8x1xf32>
    %cst_181 = arith.constant 3.200000e+01 : f32
    %431 = vector.broadcast %cst_181 : f32 to vector<2x8x1xf32>
    %432 = arith.divf %430, %431 : vector<2x8x1xf32>
    %433 = vector.broadcast %425 : vector<2x8x1xf32> to vector<2x8x32xf32>
    %434 = arith.subf %417, %433 : vector<2x8x32xf32>
    %cst_182 = arith.constant 9.99999974E-6 : f32
    %435 = vector.broadcast %cst_182 : f32 to vector<2x8x1xf32>
    %436 = arith.addf %432, %435 : vector<2x8x1xf32>
    %437 = math.rsqrt %436 : vector<2x8x1xf32>
    %438 = vector.broadcast %437 : vector<2x8x1xf32> to vector<2x8x32xf32>
    %439 = arith.mulf %434, %438 : vector<2x8x32xf32>
    %440 = vector.shape_cast %419 : vector<1x32xf32> to vector<1x1x32xf32>
    %441 = vector.broadcast %440 : vector<1x1x32xf32> to vector<2x8x32xf32>
    %442 = arith.mulf %439, %441 : vector<2x8x32xf32>
    %443 = vector.shape_cast %421 : vector<1x32xf32> to vector<1x1x32xf32>
    %444 = vector.broadcast %443 : vector<1x1x32xf32> to vector<2x8x32xf32>
    %445 = arith.addf %442, %444 : vector<2x8x32xf32>
    %446 = arith.truncf %0 : vector<2x8x32xf32> to vector<2x8x32xbf16>
    %c0_183 = arith.constant 0 : index
    %c0_184 = arith.constant 0 : index
    %447 = vector.load %arg18[%c0_183, %c0_184] : memref<32x32xbf16, #tpu.memory_space<vmem>>, vector<32x32xbf16>
    %c0_185 = arith.constant 0 : index
    %c0_186 = arith.constant 0 : index
    %448 = vector.load %arg19[%c0_185, %c0_186] : memref<1x32xf32, #tpu.memory_space<vmem>>, vector<1x32xf32>
    "tpu.trace_start"() <{level = 10 : i32, message = "bld,de->ble"}> : () -> ()
    %cst_187 = arith.constant dense<0.000000e+00> : vector<2x8x32xf32>
    %449 = tpu.matmul %446, %447, %cst_187 {dimension_numbers = #tpu.dot_dimension_numbers<[2], [0], [0, 1], [1], [0, 0, 0, 1, 1, 1], [], []>} : vector<2x8x32xbf16>, vector<32x32xbf16>, vector<2x8x32xf32> -> vector<2x8x32xf32>
    "tpu.trace_stop"() : () -> ()
    %450 = vector.shape_cast %448 : vector<1x32xf32> to vector<1x1x32xf32>
    %451 = vector.broadcast %450 : vector<1x1x32xf32> to vector<2x8x32xf32>
    %452 = arith.addf %449, %451 : vector<2x8x32xf32>
    %453 = tpu.iota {dimensions = array<i32: 1>} : vector<1x8x1xi32>
    %454 = arith.truncf %452 : vector<2x8x32xf32> to vector<2x8x32xbf16>
    %c0_188 = arith.constant 0 : index
    %c0_189 = arith.constant 0 : index
    %c0_190 = arith.constant 0 : index
    %455 = vector.load %arg22[%c0_188, %c0_189, %c0_190] : memref<2x32x192xbf16, #tpu.memory_space<vmem>>, vector<1x32x192xbf16>
    %456 = vector.shape_cast %455 : vector<1x32x192xbf16> to vector<32x192xbf16>
    "tpu.trace_start"() <{level = 10 : i32, message = "blc,co->blo"}> : () -> ()
    %cst_191 = arith.constant dense<0.000000e+00> : vector<2x8x192xf32>
    %457 = tpu.matmul %454, %456, %cst_191 {dimension_numbers = #tpu.dot_dimension_numbers<[2], [0], [0, 1], [1], [0, 0, 0, 1, 1, 1], [], []>} : vector<2x8x32xbf16>, vector<32x192xbf16>, vector<2x8x192xf32> -> vector<2x8x192xf32>
    %cst_192 = arith.constant 0.000000e+00 : f32
    "tpu.trace_stop"() : () -> ()
    %458 = vector.broadcast %cst_192 : f32 to vector<2x8x64xf32>
    %459 = vector.extract_strided_slice %457 {offsets = [0, 0, 0], sizes = [2, 8, 64], strides = [1, 1, 1]} : vector<2x8x192xf32> to vector<2x8x64xf32>
    %c1_i32 = arith.constant 1 : i32
    %460 = tpu.dynamic_rotate %459 by %c1_i32 dim 1 : vector<2x8x64xf32>, i32 -> vector<2x8x64xf32>
    %c-1_i32 = arith.constant -1 : i32
    %461 = vector.broadcast %c-1_i32 : i32 to vector<1x8x1xi32>
    %462 = arith.addi %453, %461 : vector<1x8x1xi32>
    %c0_i32 = arith.constant 0 : i32
    %463 = vector.broadcast %c0_i32 : i32 to vector<1x8x1xi32>
    %464 = arith.cmpi sge, %462, %463 : vector<1x8x1xi32>
    %c-1_i32_193 = arith.constant -1 : i32
    %465 = vector.broadcast %c-1_i32_193 : i32 to vector<1x8x1xi32>
    %466 = arith.addi %453, %465 : vector<1x8x1xi32>
    %c7_i32 = arith.constant 7 : i32
    %467 = vector.broadcast %c7_i32 : i32 to vector<1x8x1xi32>
    %468 = arith.cmpi sle, %466, %467 : vector<1x8x1xi32>
    %469 = arith.andi %464, %468 : vector<1x8x1xi1>
    %cst_194 = arith.constant 0.000000e+00 : f32
    %470 = vector.shape_cast %469 : vector<1x8x1xi1> to vector<1x8x1xi1>
    %471 = vector.broadcast %470 : vector<1x8x1xi1> to vector<2x8x64xi1>
    %472 = vector.broadcast %cst_194 : f32 to vector<2x8x64xf32>
    %473 = arith.select %471, %460, %472 : vector<2x8x64xi1>, vector<2x8x64xf32>
    %474 = arith.addf %458, %473 : vector<2x8x64xf32>
    %475 = vector.extract_strided_slice %457 {offsets = [0, 0, 64], sizes = [2, 8, 64], strides = [1, 1, 1]} : vector<2x8x192xf32> to vector<2x8x64xf32>
    %476 = arith.addf %474, %475 : vector<2x8x64xf32>
    %477 = vector.extract_strided_slice %457 {offsets = [0, 0, 128], sizes = [2, 8, 64], strides = [1, 1, 1]} : vector<2x8x192xf32> to vector<2x8x64xf32>
    %c7_i32_195 = arith.constant 7 : i32
    %478 = tpu.dynamic_rotate %477 by %c7_i32_195 dim 1 : vector<2x8x64xf32>, i32 -> vector<2x8x64xf32>
    %c1_i32_196 = arith.constant 1 : i32
    %479 = vector.broadcast %c1_i32_196 : i32 to vector<1x8x1xi32>
    %480 = arith.addi %453, %479 : vector<1x8x1xi32>
    %c0_i32_197 = arith.constant 0 : i32
    %481 = vector.broadcast %c0_i32_197 : i32 to vector<1x8x1xi32>
    %482 = arith.cmpi sge, %480, %481 : vector<1x8x1xi32>
    %c1_i32_198 = arith.constant 1 : i32
    %483 = vector.broadcast %c1_i32_198 : i32 to vector<1x8x1xi32>
    %484 = arith.addi %453, %483 : vector<1x8x1xi32>
    %c7_i32_199 = arith.constant 7 : i32
    %485 = vector.broadcast %c7_i32_199 : i32 to vector<1x8x1xi32>
    %486 = arith.cmpi sle, %484, %485 : vector<1x8x1xi32>
    %487 = arith.andi %482, %486 : vector<1x8x1xi1>
    %cst_200 = arith.constant 0.000000e+00 : f32
    %488 = vector.shape_cast %487 : vector<1x8x1xi1> to vector<1x8x1xi1>
    %489 = vector.broadcast %488 : vector<1x8x1xi1> to vector<2x8x64xi1>
    %490 = vector.broadcast %cst_200 : f32 to vector<2x8x64xf32>
    %491 = arith.select %489, %478, %490 : vector<2x8x64xi1>, vector<2x8x64xf32>
    %492 = arith.addf %476, %491 : vector<2x8x64xf32>
    %c0_201 = arith.constant 0 : index
    %c0_202 = arith.constant 0 : index
    %c0_203 = arith.constant 0 : index
    %493 = vector.load %arg23[%c0_201, %c0_202, %c0_203] : memref<2x1x64xf32, #tpu.memory_space<vmem>>, vector<1x1x64xf32>
    %494 = vector.shape_cast %493 : vector<1x1x64xf32> to vector<1x64xf32>
    %495 = vector.shape_cast %494 : vector<1x64xf32> to vector<1x1x64xf32>
    %496 = vector.broadcast %495 : vector<1x1x64xf32> to vector<2x8x64xf32>
    %497 = arith.addf %492, %496 : vector<2x8x64xf32>
    %498 = vector.extract_strided_slice %497 {offsets = [0, 0, 0], sizes = [2, 8, 32], strides = [1, 1, 1]} : vector<2x8x64xf32> to vector<2x8x32xf32>
    %499 = vector.extract_strided_slice %497 {offsets = [0, 0, 32], sizes = [2, 8, 32], strides = [1, 1, 1]} : vector<2x8x64xf32> to vector<2x8x32xf32>
    %500 = arith.negf %499 : vector<2x8x32xf32>
    %501 = math.exp %500 : vector<2x8x32xf32>
    %cst_204 = arith.constant 1.000000e+00 : f32
    %502 = vector.broadcast %cst_204 : f32 to vector<2x8x32xf32>
    %503 = arith.addf %502, %501 : vector<2x8x32xf32>
    %504 = arith.divf %502, %503 : vector<2x8x32xf32>
    %505 = arith.mulf %498, %504 : vector<2x8x32xf32>
    %506 = arith.addf %505, %452 : vector<2x8x32xf32>
    %cst_205 = arith.constant 0.707106769 : f32
    %507 = vector.broadcast %cst_205 : f32 to vector<2x8x32xf32>
    %508 = arith.mulf %506, %507 : vector<2x8x32xf32>
    %509 = arith.truncf %508 : vector<2x8x32xf32> to vector<2x8x32xbf16>
    %c1_206 = arith.constant 1 : index
    %c0_207 = arith.constant 0 : index
    %c0_208 = arith.constant 0 : index
    %510 = vector.load %arg22[%c1_206, %c0_207, %c0_208] : memref<2x32x192xbf16, #tpu.memory_space<vmem>>, vector<1x32x192xbf16>
    %511 = vector.shape_cast %510 : vector<1x32x192xbf16> to vector<32x192xbf16>
    "tpu.trace_start"() <{level = 10 : i32, message = "blc,co->blo"}> : () -> ()
    %cst_209 = arith.constant dense<0.000000e+00> : vector<2x8x192xf32>
    %512 = tpu.matmul %509, %511, %cst_209 {dimension_numbers = #tpu.dot_dimension_numbers<[2], [0], [0, 1], [1], [0, 0, 0, 1, 1, 1], [], []>} : vector<2x8x32xbf16>, vector<32x192xbf16>, vector<2x8x192xf32> -> vector<2x8x192xf32>
    %cst_210 = arith.constant 0.000000e+00 : f32
    "tpu.trace_stop"() : () -> ()
    %513 = vector.broadcast %cst_210 : f32 to vector<2x8x64xf32>
    %514 = vector.extract_strided_slice %512 {offsets = [0, 0, 0], sizes = [2, 8, 64], strides = [1, 1, 1]} : vector<2x8x192xf32> to vector<2x8x64xf32>
    %c1_i32_211 = arith.constant 1 : i32
    %515 = tpu.dynamic_rotate %514 by %c1_i32_211 dim 1 : vector<2x8x64xf32>, i32 -> vector<2x8x64xf32>
    %c-1_i32_212 = arith.constant -1 : i32
    %516 = vector.broadcast %c-1_i32_212 : i32 to vector<1x8x1xi32>
    %517 = arith.addi %453, %516 : vector<1x8x1xi32>
    %c0_i32_213 = arith.constant 0 : i32
    %518 = vector.broadcast %c0_i32_213 : i32 to vector<1x8x1xi32>
    %519 = arith.cmpi sge, %517, %518 : vector<1x8x1xi32>
    %c-1_i32_214 = arith.constant -1 : i32
    %520 = vector.broadcast %c-1_i32_214 : i32 to vector<1x8x1xi32>
    %521 = arith.addi %453, %520 : vector<1x8x1xi32>
    %c7_i32_215 = arith.constant 7 : i32
    %522 = vector.broadcast %c7_i32_215 : i32 to vector<1x8x1xi32>
    %523 = arith.cmpi sle, %521, %522 : vector<1x8x1xi32>
    %524 = arith.andi %519, %523 : vector<1x8x1xi1>
    %cst_216 = arith.constant 0.000000e+00 : f32
    %525 = vector.shape_cast %524 : vector<1x8x1xi1> to vector<1x8x1xi1>
    %526 = vector.broadcast %525 : vector<1x8x1xi1> to vector<2x8x64xi1>
    %527 = vector.broadcast %cst_216 : f32 to vector<2x8x64xf32>
    %528 = arith.select %526, %515, %527 : vector<2x8x64xi1>, vector<2x8x64xf32>
    %529 = arith.addf %513, %528 : vector<2x8x64xf32>
    %530 = vector.extract_strided_slice %512 {offsets = [0, 0, 64], sizes = [2, 8, 64], strides = [1, 1, 1]} : vector<2x8x192xf32> to vector<2x8x64xf32>
    %531 = arith.addf %529, %530 : vector<2x8x64xf32>
    %532 = vector.extract_strided_slice %512 {offsets = [0, 0, 128], sizes = [2, 8, 64], strides = [1, 1, 1]} : vector<2x8x192xf32> to vector<2x8x64xf32>
    %c7_i32_217 = arith.constant 7 : i32
    %533 = tpu.dynamic_rotate %532 by %c7_i32_217 dim 1 : vector<2x8x64xf32>, i32 -> vector<2x8x64xf32>
    %c1_i32_218 = arith.constant 1 : i32
    %534 = vector.broadcast %c1_i32_218 : i32 to vector<1x8x1xi32>
    %535 = arith.addi %453, %534 : vector<1x8x1xi32>
    %c0_i32_219 = arith.constant 0 : i32
    %536 = vector.broadcast %c0_i32_219 : i32 to vector<1x8x1xi32>
    %537 = arith.cmpi sge, %535, %536 : vector<1x8x1xi32>
    %c1_i32_220 = arith.constant 1 : i32
    %538 = vector.broadcast %c1_i32_220 : i32 to vector<1x8x1xi32>
    %539 = arith.addi %453, %538 : vector<1x8x1xi32>
    %c7_i32_221 = arith.constant 7 : i32
    %540 = vector.broadcast %c7_i32_221 : i32 to vector<1x8x1xi32>
    %541 = arith.cmpi sle, %539, %540 : vector<1x8x1xi32>
    %542 = arith.andi %537, %541 : vector<1x8x1xi1>
    %cst_222 = arith.constant 0.000000e+00 : f32
    %543 = vector.shape_cast %542 : vector<1x8x1xi1> to vector<1x8x1xi1>
    %544 = vector.broadcast %543 : vector<1x8x1xi1> to vector<2x8x64xi1>
    %545 = vector.broadcast %cst_222 : f32 to vector<2x8x64xf32>
    %546 = arith.select %544, %533, %545 : vector<2x8x64xi1>, vector<2x8x64xf32>
    %547 = arith.addf %531, %546 : vector<2x8x64xf32>
    %c1_223 = arith.constant 1 : index
    %c0_224 = arith.constant 0 : index
    %c0_225 = arith.constant 0 : index
    %548 = vector.load %arg23[%c1_223, %c0_224, %c0_225] : memref<2x1x64xf32, #tpu.memory_space<vmem>>, vector<1x1x64xf32>
    %549 = vector.shape_cast %548 : vector<1x1x64xf32> to vector<1x64xf32>
    %550 = vector.shape_cast %549 : vector<1x64xf32> to vector<1x1x64xf32>
    %551 = vector.broadcast %550 : vector<1x1x64xf32> to vector<2x8x64xf32>
    %552 = arith.addf %547, %551 : vector<2x8x64xf32>
    %553 = vector.extract_strided_slice %552 {offsets = [0, 0, 0], sizes = [2, 8, 32], strides = [1, 1, 1]} : vector<2x8x64xf32> to vector<2x8x32xf32>
    %554 = vector.extract_strided_slice %552 {offsets = [0, 0, 32], sizes = [2, 8, 32], strides = [1, 1, 1]} : vector<2x8x64xf32> to vector<2x8x32xf32>
    %555 = arith.negf %554 : vector<2x8x32xf32>
    %556 = math.exp %555 : vector<2x8x32xf32>
    %cst_226 = arith.constant 1.000000e+00 : f32
    %557 = vector.broadcast %cst_226 : f32 to vector<2x8x32xf32>
    %558 = arith.addf %557, %556 : vector<2x8x32xf32>
    %559 = arith.divf %557, %558 : vector<2x8x32xf32>
    %560 = arith.mulf %553, %559 : vector<2x8x32xf32>
    %561 = arith.addf %560, %508 : vector<2x8x32xf32>
    %cst_227 = arith.constant 0.707106769 : f32
    %562 = vector.broadcast %cst_227 : f32 to vector<2x8x32xf32>
    %563 = arith.mulf %561, %562 : vector<2x8x32xf32>
    %564 = arith.truncf %563 : vector<2x8x32xf32> to vector<2x8x32xbf16>
    %c0_228 = arith.constant 0 : index
    %c0_229 = arith.constant 0 : index
    %565 = vector.load %arg20[%c0_228, %c0_229] : memref<32x32xbf16, #tpu.memory_space<vmem>>, vector<32x32xbf16>
    %c0_230 = arith.constant 0 : index
    %c0_231 = arith.constant 0 : index
    %566 = vector.load %arg21[%c0_230, %c0_231] : memref<1x32xf32, #tpu.memory_space<vmem>>, vector<1x32xf32>
    "tpu.trace_start"() <{level = 10 : i32, message = "bld,de->ble"}> : () -> ()
    %cst_232 = arith.constant dense<0.000000e+00> : vector<2x8x32xf32>
    %567 = tpu.matmul %564, %565, %cst_232 {dimension_numbers = #tpu.dot_dimension_numbers<[2], [0], [0, 1], [1], [0, 0, 0, 1, 1, 1], [], []>} : vector<2x8x32xbf16>, vector<32x32xbf16>, vector<2x8x32xf32> -> vector<2x8x32xf32>
    "tpu.trace_stop"() : () -> ()
    %568 = vector.shape_cast %566 : vector<1x32xf32> to vector<1x1x32xf32>
    %569 = vector.broadcast %568 : vector<1x1x32xf32> to vector<2x8x32xf32>
    %570 = arith.addf %567, %569 : vector<2x8x32xf32>
    %571 = arith.addf %445, %570 : vector<2x8x32xf32>
    %c0_233 = arith.constant 0 : index
    %c0_234 = arith.constant 0 : index
    %c0_235 = arith.constant 0 : index
    %572 = vector.load %arg24[%c0_233, %c0_234, %c0_235] : memref<2x8x32xf32, #tpu.memory_space<vmem>>, vector<2x8x32xf32>
    tpu.vector_store %arg24[%c0_233, %c0_234, %c0_235], %571 {strides = array<i32>} : memref<2x8x32xf32, #tpu.memory_space<vmem>>, vector<2x8x32xf32>,
    return
  }
}

</mosaic_0001>

<bundles_post_ra>
// kernel: encoder_forward.1
= control target key start
LH: loop header
LB: loop body
LE: loop exit
PB: predicated region body
PF: predicated region fallthrough
CT: control target
= control target key end

     0   :  { %s3622_s0 = inlined_call_operand.vmem [shape: f32[2,8,32], index: 0, kind: input, shape index: {}]   ;;  %s3623_s1 = inlined_call_operand.vmem [shape: f32[2,8], index: 1, kind: input, shape index: {}]   ;;  %s3624_s2 = inlined_call_operand.vmem [shape: bf16[2,32,32], index: 2, kind: input, shape index: {}]   ;;  %s3625_s3 = inlined_call_operand.vmem [shape: f32[2,1,32], index: 3, kind: input, shape index: {}]   ;;  %s3626_s4 = inlined_call_operand.vmem [shape: bf16[2,32,32], index: 4, kind: input, shape index: {}]   ;;  %s3627_s5 = inlined_call_operand.vmem [shape: f32[2,1,32], index: 5, kind: input, shape index: {}]   ;;  %s3628_s6 = inlined_call_operand.vmem [shape: bf16[2,32,32], index: 6, kind: input, shape index: {}]   ;;  %s3629_s7 = inlined_call_operand.vmem [shape: f32[2,1,32], index: 7, kind: input, shape index: {}]   ;;  %s3630_s8 = inlined_call_operand.vmem [shape: bf16[2,32,32], index: 8, kind: input, shape index: {}]   ;;  %s3631_s9 = inlined_call_operand.vmem [shape: f32[2,1,32], index: 9, kind: input, shape index: {}]   ;;  %s3632_s10 = inlined_call_operand.vmem [shape: bf16[2,32,32], index: 10, kind: input, shape index: {}]   ;;  %s3633_s11 = inlined_call_operand.vmem [shape: f32[2,1,32], index: 11, kind: input, shape index: {}]   ;;  %s3634_s12 = inlined_call_operand.vmem [shape: bf16[2,32,32], index: 12, kind: input, shape index: {}]   ;;  %s3635_s13 = inlined_call_operand.vmem [shape: f32[2,1,32], index: 13, kind: input, shape index: {}]   ;;  %s3636_s14 = inlined_call_operand.vmem [shape: f32[2,1,32], index: 14, kind: input, shape index: {}]   ;;  %s3637_s15 = inlined_call_operand.vmem [shape: f32[2,1,32], index: 15, kind: input, shape index: {}]   ;;  %s3638_s16 = inlined_call_operand.hbm [shape: f32[2,1,32], index: 16, kind: input, shape index: {}]   ;;  %s3639_s17 = inlined_call_operand.vmem [shape: f32[2,1,32], index: 17, kind: input, shape index: {}]   ;;  %s3640_s18 = inlined_call_operand.vmem [shape: bf16[32,32], index: 18, kind: input, shape index: {}]   ;;  %s3641_s19 = inlined_call_operand.vmem [shape: f32[1,32], index: 19, kind: input, shape index: {}]   ;;  %s3642_s20 = inlined_call_operand.vmem [shape: bf16[32,32], index: 20, kind: input, shape index: {}]   ;;  %s3643_s21 = inlined_call_operand.hbm [shape: f32[1,32], index: 21, kind: input, shape index: {}]   ;;  %s3644_s22 = inlined_call_operand.vmem [shape: bf16[2,32,192], index: 22, kind: input, shape index: {}]   ;;  %s3645_s23 = inlined_call_operand.vmem [shape: f32[2,1,64], index: 23, kind: input, shape index: {}]   ;;  %s3646_s24 = inlined_call_operand.hbm [shape: f32[2,8,32], index: 24, kind: output, shape index: {}]  }
   0x1   :  { %3661 = sst [smem:[#allocation11_spill]] %s3622_s0 }
   0x2   :  { %3662 = sst [smem:[#allocation12_spill]] %s3623_s1 }
   0x3   :  { %3663 = sst [smem:[#allocation13_spill]] %s3624_s2 }
   0x4   :  { %3664 = sst [smem:[#allocation14_spill]] %s3625_s3 }
   0x5   :  { %3665 = sst [smem:[#allocation15_spill]] %s3626_s4 }
   0x6   :  { %3666 = sst [smem:[#allocation16_spill]] %s3627_s5 }
   0x7   :  { %3667 = sst [smem:[#allocation17_spill]] %s3628_s6 }
   0x8   :  { %3668 = sst [smem:[#allocation18_spill]] %s3629_s7 }
   0x9   :  { %3669 = sst [smem:[#allocation19_spill]] %s3630_s8 }
   0xa   :  { %29 = vsyncpa [#allocation3], 0 }
   0xb   :  { %30 = vsyncpa [#allocation6], 0 }
   0xc   :  { %31 = vsyncpa [#allocation4], 0  ;;  %s68_s27 = sshll.u32 %s3638_s16, 4  ;;  %s2852_s28 = smov [#allocation2]   ;;  %s69_s27 = int_to_ptr.hbm [resolvable:$true] %s68_s27 }
   0xd   :  { %s70_s6 = sshll.u32 %s2852_s28, 4  ;;  %s90_s0 = sshll.u32 %s3643_s21, 4  ;;  %s71_s6 = int_to_ptr.vmem [resolvable:$true] %s70_s6  ;;  %s91_s0 = int_to_ptr.hbm [resolvable:$true] %s90_s0 }
   0xe   :  { %s2853_s7 = smov 16   ;;  %s2854_s30 = smov 1  }
   0xf   :  { %76 = dma.hbm_to_vmem [thread:$0]  %s69_s27, 32, %s71_s6, [#allocation3], %s2853_s7, %s2853_s7, %s2854_s30  }
  0x10   :  { %s2855_s3 = smov [#allocation5]  }
  0x11   :  { %s92_s25 = sshll.u32 %s2855_s3, 4  ;;  %s93_s25 = int_to_ptr.vmem [resolvable:$true] %s92_s25 }
  0x12   :  { %95 = dma.hbm_to_vmem [thread:$0]  %s91_s0, 16, %s93_s25, [#allocation6]  }
  0x13   :  { %2846 = dma.done.wait [#allocation3], 32  }
  0x14   :  { %2847 = vsyncadd [#allocation3], 4294967264 }
  0x15   :  { %2848 = dma.done.wait [#allocation6], 16  }
  0x16   :  { %2849 = vsyncadd [#allocation6], 4294967280  ;;  %s3670_s4 = sld [smem:[#allocation13_spill]]  ;;  %vm143_vm0 = vcmask 261120   ;;  %vm239_vm1 = vcmask 64512   ;;  %s3659_s30 = smov 120  }
  0x17   :  { %s3671_s26 = sld [smem:[#allocation15_spill]]  ;;  %s3657_s3 = smov 112   ;;  %v2858_v50 = vmov -1e+09   ;;  %vm309_vm3 = vcmask 1043456  }
  0x18   :  { %s3672_s2 = sld [smem:[#allocation11_spill]]  ;;  %s3655_s5 = smov 104  }
  0x19   :  { %s3673_s16 = sld [smem:[#allocation17_spill]] }
  0x1a   :  { %s3674_s28 = sld [smem:[#allocation14_spill]] }
  0x1b   :  { %s3676_s7 = sld [smem:[#allocation18_spill]] }
  0x1c   :  { %v2607_v0 = vld [vmem:[%s3670_s4 + $0x8] sm:$0xff]  ;;  %v2606_v2 = vld [vmem:[%s3670_s4] sm:$0xff]  ;;  %s3677_s1 = sld [smem:[#allocation12_spill]] }
  0x1d   :  { %v2609_v1 = vld [vmem:[%s3671_s26 + $0x8] sm:$0xff]  ;;  %153 = vmatpush.bf16.msra.mxu0 %v2607_v0  ;;  %v2608_v5 = vld [vmem:[%s3671_s26] sm:$0xff]  ;;  %s3678_s6 = sld [smem:[#allocation19_spill]] }
  0x1e   :  { %v3009_v3 = vld [vmem:[%s3672_s2] sm:$0xff]  ;;  %v3014_v4 = vld [vmem:[%s3672_s2 + $0x8] sm:$0xff]  ;;  %187 = vmatpush.bf16.msra.mxu1 %v2609_v1  ;;  %s3675_s2 = sld [smem:[#allocation16_spill]] }
  0x1f   :  { %v116_v6 = vpack.c.bf16 %v3009_v3, %v3009_v3  ;;  %v117_v7 = vpack.c.bf16 %v3014_v4, %v3014_v4  ;;  %v2611_v8 = vld [vmem:[%s3673_s16 + $0x8] sm:$0xff]  ;;  %v2610_v9 = vld [vmem:[%s3673_s16] sm:$0xff] }
  0x20   :  { %221 = vmatpush.bf16.msra.mxu2 %v2611_v8  ;;  %v2652_v13 = vld [vmem:[%s3674_s28] ss:$0 sm:$0xff] }
  0x21   :  { %v128_v10 = vunpack.c.l.b16 %v116_v6  ;;  %v129_v11 = vunpack.c.l.b16 %v117_v7  ;;  %154 = vmatpush.bf16.msra.mxu0 %v2606_v2  ;;  %v2654_v23 = vld [vmem:[%s3676_s7] ss:$0 sm:$0xff] }
  0x22   :  { %188 = vmatpush.bf16.msra.mxu1 %v2608_v5  ;;  %v111_v48 = vld [vmem:[%s3677_s1] sm:$0x3] }
  0x23   :  { %v3029_v12 = vpack.c.b16 %v129_v11, %v128_v10  ;;  %vm112_vm2 = vcmp.gt.f32.partialorder %v111_v48, 0.0 }
  0x24   :  { %222 = vmatpush.bf16.msra.mxu2 %v2610_v9  ;;  %v2653_v14 = vld [vmem:[%s3675_s2] ss:$0 sm:$0xff]  ;;  %v113_v51 = vsel %vm112_vm2, 0.0, %v2858_v50 }
  0x25   :  { %2388 = vmatmul.msk.bf16.vlgmr.msra.gmra.mxu0 %vm143_vm0, %v3029_v12  ;;  %2397 = vmatmul.msk.bf16.vlgmr.msra.gmra.mxu1 %vm143_vm0, %v3029_v12  ;;  %v3085_v52 = vperm.slane %v113_v51, 0  ;;  %v115_v5 = vrot.slane %v113_v51, 1 }
  0x27   :  { %2406 = vmatmul.msk.bf16.vlgmr.msra.gmra.mxu2 %vm143_vm0, %v3029_v12 }
  0xa2   :  { %v156_v15 = vpop.f32.mrf.mxu0  ;;  %v190_v16 = vpop.f32.mrf.mxu1 }
  0xa3   :  { %v157_v17 = vadd.f32 %v2652_v13, %v156_v15  ;;  %v191_v18 = vadd.f32 %v2653_v14, %v190_v16 }
  0xa5   :  { %v235_v19 = vpack.c.bf16 %v191_v18, %v191_v18  ;;  %v233_v20 = vpack.c.bf16 %v157_v17, %v157_v17 }
  0xa7   :  { %v357_v21 = vunpack.c.l.b16 %v235_v19  ;;  %v244_v22 = vsel %vm239_vm1, %v235_v19, 0  ;;  %v352_v27 = vunpack.c.l.b16 %v233_v20 }
  0xa8   :  { %253 = vmatpush.bf16.xpose.msra.mxu3 %v244_v22 }
  0xa9   :  { %v3047_v24 = vpack.c.b16 %v357_v21, %v357_v21  ;;  %v3051_v33 = vpack.c.b16 %v352_v27, %v352_v27 }
  0xaa   :  { %v158_v25 = vpop.f32.mrf.mxu0  ;;  %v192_v26 = vpop.f32.mrf.mxu1 }
  0xab   :  { %v193_v28 = vadd.f32 %v2653_v14, %v192_v26  ;;  %359 = vrot.lane.b32.xlu0 %v3047_v24, %s3659_s30  ;;  %v224_v29 = vpop.f32.mrf.mxu2  ;;  %v159_v31 = vadd.f32 %v2652_v13, %v158_v25  ;;  %v3093_v14 = vperm.slane %v115_v5, 0 }
  0xac   :  { %v225_v30 = vadd.f32 %v2654_v23, %v224_v29 }
  0xad   :  { %v236_v32 = vpack.c.bf16 %v193_v28, %v193_v28  ;;  %v234_v37 = vpack.c.bf16 %v159_v31, %v159_v31  ;;  %v230_v31 = vld [vmem:[%s3678_s6 + $0x4] sm:$0xf] }
  0xae   :  { %v237_v36 = vpack.c.bf16 %v225_v30, %v225_v30 }
  0xaf   :  { %v386_v34 = vunpack.c.l.b16 %v236_v32  ;;  %2407 = vmatmul.msk.bf16.vlgmr.msra.gmra.mxu3 %vm239_vm1, %v233_v20  ;;  %v263_v35 = vsel %vm239_vm1, %v236_v32, 0  ;;  %v381_v40 = vunpack.c.l.b16 %v234_v37  ;;  %v496_v32 = vsel %vm309_vm3, %v230_v31, 0 }
  0xb0   :  { %272 = vmatpush.bf16.xpose.msrb.mxu0 %v263_v35  ;;  %v434_v39 = vunpack.c.l.b16 %v237_v36  ;;  %v311_v1 = vsel %vm309_vm3, %v237_v36, 0 }
  0xb1   :  { %v3055_v38 = vpack.c.b16 %v386_v34, %v386_v34  ;;  %v3064_v42 = vpack.c.b16 %v381_v40, %v381_v40  ;;  %320 = vmatpush.bf16.msrb.mxu1 %v311_v1 }
  0xb2   :  { %v3061_v41 = vpack.c.b16 %v434_v39, %v434_v39 }
  0xb3   :  { %388 = vrot.lane.b32.xlu1 %v3055_v38, %s3659_s30  ;;  %354 = vrot.lane.b32.xlu0 %v3051_v33, %s3659_s30  ;;  %v226_v60 = vpop.f32.mrf.mxu2 }
  0xb4   :  { %v227_v62 = vadd.f32 %v2654_v23, %v226_v60 }
  0xb6   :  { %v238_v0 = vpack.c.bf16 %v227_v62, %v227_v62 }
  0xb7   :  { %2408 = vmatmul.msk.bf16.vlgmr.msrb.gmra.mxu0 %vm239_vm1, %v234_v37 }
  0xb8   :  { %v330_v2 = vsel %vm309_vm3, %v238_v0, 0  ;;  %v458_v29 = vunpack.c.l.b16 %v238_v0 }
  0xb9   :  { %339 = vmatpush.bf16.msrb.mxu2 %v330_v2 }
  0xba   :  { %v459_v30 = vpack.c.b16 %v458_v29, %v458_v29  ;;  %v229_v29 = vld [vmem:[%s3678_s6] sm:$0xf] }
  0xbb   :  { %383 = vrot.lane.b32.xlu1 %v3064_v42, %s3659_s30  ;;  %436 = vrot.lane.b32.xlu0 %v3061_v41, %s3659_s30  ;;  %v521_v31 = vsel %vm309_vm3, %v229_v29, 0 }
  0xc3   :  { %539 = vrot.lane.b32.xlu1 %v3047_v24, %s3657_s3  ;;  %537 = vrot.lane.b32.xlu0 %v3051_v33, %s3657_s3 }
  0xcb   :  { %562 = vrot.lane.b32.xlu0 %v3055_v38, %s3657_s3 }
  0xd3   :  { %560 = vrot.lane.b32.xlu0 %v3064_v42, %s3657_s3 }
 0x11d   :  { %v360_v43 = vpop.permute.xlu0 %359 }
 0x11e   :  { %v365_v44 = vsel %vm239_vm1, %v360_v43, 0 }
 0x11f   :  { %374 = vmatpush.bf16.xpose.msrb.mxu3 %v365_v44 }
 0x125   :  { %v389_v45 = vpop.permute.xlu1 %388  ;;  %v355_v46 = vpop.permute.xlu0 %354 }
 0x126   :  { %v394_v47 = vsel %vm239_vm1, %v389_v45, 0  ;;  %2411 = vmatmul.msk.bf16.vlgmr.msrb.gmra.mxu3 %vm239_vm1, %v355_v46 }
 0x127   :  { %403 = vmatpush.bf16.xpose.msra.mxu0 %v394_v47  ;;  %505 = vmatpush.bf16.msra.mxu3 %v496_v32 }
 0x12d   :  { %v384_v49 = vpop.permute.xlu1 %383  ;;  %v437_v61 = vpop.permute.xlu0 %436 }
 0x12e   :  { %2412 = vmatmul.msk.bf16.vlgmr.msra.gmra.mxu0 %vm239_vm1, %v384_v49  ;;  %v442_v63 = vsel %vm309_vm3, %v437_v61, 0 }
 0x12f   :  { %451 = vmatpush.bf16.msra.mxu1 %v442_v63  ;;  %530 = vmatpush.bf16.msrb.mxu0 %v521_v31 }
 0x132   :  { %v255_v53 = vpop.f32.mrf.mxu3 }
 0x133   :  { %v278_v54 = vmul.f32 0.35355338, %v255_v53 }
 0x134   :  { %v274_v55 = vpop.f32.mrf.mxu0 }
 0x135   :  { %v284_v56 = vadd.f32 %v3085_v52, %v278_v54  ;;  %v279_v15 = vmul.f32 0.35355338, %v274_v55  ;;  %v540_v25 = vpop.permute.xlu1 %539  ;;  %v538_v44 = vpop.permute.xlu0 %537 }
 0x136   :  { %v545_v28 = vsel %vm239_vm1, %v540_v25, 0 }
 0x137   :  { %v286_v57 = vsel %vm239_vm1, %v284_v56, -inf  ;;  %v285_v21 = vadd.f32 %v3093_v14, %v279_v15 }
 0x138   :  { %287 = vmax.xlane.f32.xlu2 %v286_v57 }
 0x139   :  { %v289_v26 = vsel %vm239_vm1, %v285_v21, -inf }
 0x13a   :  { %v257_v58 = vpop.f32.mrf.mxu3 }
 0x13c   :  { %v276_v59 = vpop.f32.mrf.mxu0 }
 0x13d   :  { %v563_v55 = vpop.permute.xlu0 %562 }
 0x13e   :  { %v568_v58 = vsel %vm239_vm1, %v563_v55, 0 }
 0x145   :  { %v561_v63 = vpop.permute.xlu0 %560 }
 0x1a9   :  { %v376_v6 = vpop.f32.mrf.mxu3 }
 0x1aa   :  { %v409_v7 = vmul.f32 0.35355338, %v376_v6 }
 0x1ab   :  { %v405_v8 = vpop.f32.mrf.mxu0  ;;  %v288_v9 = vpop.xlane.xlu2 %287 }
 0x1ac   :  { %v410_v10 = vmul.f32 0.35355338, %v405_v8  ;;  %v292_v11 = vsub.f32 %v284_v56, %v288_v9  ;;  %v411_v13 = vadd.f32 %v409_v7, %v3085_v52 }
 0x1ae   :  { %v294_v16 = vmul.f32 1.442695, %v292_v11  ;;  %v413_v17 = vsel %vm239_vm1, %v411_v13, -inf  ;;  %v412_v18 = vadd.f32 %v410_v10, %v3093_v14 }
 0x1af   :  { %414 = vmax.xlane.f32.xlu2 %v413_v17 }
 0x1b0   :  { %2676 = vpow2.f32 %v294_v16  ;;  %v416_v19 = vsel %vm239_vm1, %v412_v18, -inf }
 0x1b1   :  { %417 = vmax.xlane.f32.xlu1 %v416_v19  ;;  %v378_v20 = vpop.f32.mrf.mxu3 }
 0x1b3   :  { %v407_v22 = vpop.f32.mrf.mxu0 }
 0x1b6   :  { %v2677_v23 = vpop.eup %2676 }
 0x1b7   :  { %290 = vmax.xlane.f32.xlu2 %v289_v26  ;;  %v304_v27 = vpack.c.bf16 %v2677_v23, %v2677_v23  ;;  %v298_v0 = vsel %vm239_vm1, %v2677_v23, 0.0 }
 0x1b9   :  { %2409 = vmatmul.msk.bf16.vlgmr.msrb.gmra.mxu1 %vm239_vm1, %v304_v27 }
 0x1ba   :  { %554 = vmatpush.bf16.xpose.msrb.mxu1 %v545_v28 }
 0x1ca   :  { %607 = vrot.lane.b32.xlu1 %v3061_v41, %s3657_s3 }
 0x1cf   :  { %460 = vrot.lane.b32.xlu2 %v459_v30, %s3659_s30  ;;  %s2865_s30 = smov 8  }
 0x1d2   :  { %682 = vrot.lane.b32.xlu1 %v3051_v33, %s3655_s5 }
 0x222   :  { %v415_v34 = vpop.xlane.xlu2 %414 }
 0x223   :  { %v419_v35 = vsub.f32 %v411_v13, %v415_v34 }
 0x224   :  { %v418_v36 = vpop.xlane.xlu1 %417 }
 0x225   :  { %v421_v37 = vmul.f32 1.442695, %v419_v35  ;;  %v420_v39 = vsub.f32 %v412_v18, %v418_v36  ;;  %v231_v36 = vld [vmem:[%s3678_s6 + $0x8] sm:$0xf] }
 0x227   :  { %2678 = vpow2.f32 %v421_v37  ;;  %v423_v40 = vmul.f32 1.442695, %v420_v39  ;;  %v664_v37 = vsel %vm309_vm3, %v231_v36, 0 }
 0x229   :  { %2680 = vpow2.f32 %v423_v40 }
 0x22a   :  { %v291_v43 = vpop.xlane.xlu2 %290 }
 0x22b   :  { %v293_v45 = vsub.f32 %v285_v21, %v291_v43 }
 0x22d   :  { %v2679_v46 = vpop.eup %2678  ;;  %v296_v33 = vmul.f32 1.442695, %v293_v45 }
 0x22e   :  { %v431_v47 = vpack.c.bf16 %v2679_v46, %v2679_v46  ;;  %v425_v48 = vsel %vm239_vm1, %v2679_v46, 0.0 }
 0x22f   :  { %v2681_v49 = vpop.eup %2680  ;;  %2682 = vpow2.f32 %v296_v33  ;;  %426 = vadd.xlane.f32.xlu0 %v425_v48 }
 0x230   :  { %2413 = vmatmul.msk.bf16.vlgmr.msra.gmra.mxu1 %vm239_vm1, %v431_v47  ;;  %v428_v50 = vsel %vm239_vm1, %v2681_v49, 0.0  ;;  %v432_v62 = vpack.c.bf16 %v2681_v49, %v2681_v49 }
 0x231   :  { %429 = vadd.xlane.f32.xlu2 %v428_v50  ;;  %673 = vmatpush.bf16.msra.mxu1 %v664_v37 }
 0x232   :  { %v461_v51 = vpop.permute.xlu2 %460 }
 0x233   :  { %v466_v53 = vsel %vm309_vm3, %v461_v51, 0 }
 0x234   :  { %475 = vmatpush.bf16.msra.mxu2 %v466_v53 }
 0x235   :  { %v2683_v54 = vpop.eup %2682 }
 0x236   :  { %v3115_v56 = vpop.f32.mrf.mxu1  ;;  %v305_v57 = vpack.c.bf16 %v2683_v54, %v2683_v54  ;;  %v301_v1 = vsel %vm239_vm1, %v2683_v54, 0.0 }
 0x238   :  { %2410 = vmatmul.msk.bf16.vlgmr.msrb.gmra.mxu2 %vm239_vm1, %v305_v57 }
 0x239   :  { %577 = vmatpush.bf16.xpose.msrb.mxu2 %v568_v58 }
 0x23c   :  { %v608_v59 = vpop.permute.xlu1 %607 }
 0x23d   :  { %v613_v60 = vsel %vm309_vm3, %v608_v59, 0 }
 0x23e   :  { %v324_v61 = vpop.f32.mrf.mxu1  ;;  %622 = vmatpush.bf16.msrb.mxu3 %v613_v60 }
 0x240   :  { %2417 = vmatmul.msk.bf16.vlgmr.msrb.gmra.mxu1 %vm239_vm1, %v538_v44 }
 0x243   :  { %707 = vrot.lane.b32.xlu0 %v3055_v38, %s3655_s5 }
 0x248   :  { %2414 = vmatmul.msk.bf16.vlgmr.msra.gmra.mxu2 %vm239_vm1, %v432_v62 }
 0x249   :  { %684 = vrot.lane.b32.xlu2 %v3047_v24, %s3655_s5  ;;  %v683_v24 = vpop.permute.xlu1 %682 }
 0x258   :  { %2418 = vmatmul.msk.bf16.vlgmr.msrb.gmra.mxu2 %vm239_vm1, %v561_v63 }
 0x26d   :  { %299 = vadd.xlane.f32.xlu0 %v298_v0 }
 0x272   :  { %302 = vadd.xlane.f32.xlu2 %v301_v1 }
 0x281   :  { %628 = vrot.lane.b32.xlu0 %v459_v30, %s3657_s3 }
 0x289   :  { %773 = vrot.lane.b32.xlu0 %v459_v30, %s3655_s5 }
 0x2a2   :  { %v427_v10 = vpop.xlane.xlu0 %426 }
 0x2a3   :  { %2684 = vrcp.f32 %v427_v10 }
 0x2a4   :  { %v430_v38 = vpop.xlane.xlu2 %429 }
 0x2a5   :  { %2686 = vrcp.f32 %v430_v38 }
 0x2a9   :  { %v2685_v18 = vpop.eup %2684 }
 0x2ab   :  { %v2687_v20 = vpop.eup %2686 }
 0x2ac   :  { %v685_v2 = vpop.permute.xlu2 %684 }
 0x2ad   :  { %v690_v5 = vsel %vm239_vm1, %v685_v2, 0  ;;  %v453_v6 = vpop.f32.mrf.mxu1 }
 0x2ae   :  { %699 = vmatpush.bf16.xpose.msra.mxu2 %v690_v5  ;;  %v483_v19 = vmul.f32 %v2685_v18, %v453_v6 }
 0x2b0   :  { %v485_v22 = vpack.c.bf16 %v483_v19, %v483_v19 }
 0x2b2   :  { %v489_v26 = vunpack.c.l.b16 %v485_v22 }
 0x2b5   :  { %v455_v7 = vpop.f32.mrf.mxu1  ;;  %2422 = vmatmul.msk.bf16.vlgmr.msra.gmra.mxu2 %vm239_vm1, %v683_v24  ;;  %v708_v28 = vpop.permute.xlu0 %707 }
 0x2b6   :  { %v713_v34 = vsel %vm239_vm1, %v708_v28, 0 }
 0x2bb   :  { %v341_v8 = vpop.f32.mrf.mxu2 }
 0x2bd   :  { %v556_v9 = vpop.f32.mrf.mxu1 }
 0x2be   :  { %v583_v11 = vmul.f32 0.35355338, %v556_v9 }
 0x2c0   :  { %v585_v13 = vadd.f32 %v583_v11, %v3085_v52 }
 0x2c2   :  { %v587_v15 = vsel %vm239_vm1, %v585_v13, -inf }
 0x2c3   :  { %588 = vmax.xlane.f32.xlu1 %v587_v15  ;;  %v343_v16 = vpop.f32.mrf.mxu2 }
 0x2c5   :  { %v558_v17 = vpop.f32.mrf.mxu1 }
 0x2cb   :  { %v477_v21 = vpop.f32.mrf.mxu2 }
 0x2cc   :  { %v484_v23 = vmul.f32 %v2687_v20, %v477_v21 }
 0x2ce   :  { %v486_v25 = vpack.c.bf16 %v484_v23, %v484_v23 }
 0x2d0   :  { %v490_v27 = vunpack.c.l.b16 %v486_v25 }
 0x2d2   :  { %v491_v30 = vpack.c.b16 %v490_v27, %v489_v26 }
 0x2d3   :  { %v479_v32 = vpop.f32.mrf.mxu2 }
 0x2d4   :  { %2415 = vmatmul.msk.bf16.vlgmr.msra.gmra.mxu3 %vm239_vm1, %v491_v30 }
 0x2d5   :  { %722 = vmatpush.bf16.xpose.msra.mxu3 %v713_v34 }
 0x2db   :  { %v579_v35 = vpop.f32.mrf.mxu2 }
 0x2dc   :  { %705 = vrot.lane.b32.xlu1 %v3064_v42, %s3655_s5  ;;  %v584_v57 = vmul.f32 0.35355338, %v579_v35 }
 0x2e0   :  { %v300_v39 = vpop.xlane.xlu0 %299 }
 0x2e1   :  { %2688 = vrcp.f32 %v300_v39 }
 0x2e3   :  { %v581_v40 = vpop.f32.mrf.mxu2 }
 0x2e5   :  { %v303_v43 = vpop.xlane.xlu2 %302 }
 0x2e6   :  { %2690 = vrcp.f32 %v303_v43 }
 0x2e7   :  { %v2689_v44 = vpop.eup %2688 }
 0x2e8   :  { %v347_v45 = vmul.f32 %v2689_v44, %v3115_v56  ;;  %v586_v56 = vadd.f32 %v584_v57, %v3093_v14 }
 0x2ea   :  { %v349_v33 = vpack.c.bf16 %v347_v45, %v347_v45  ;;  %v590_v58 = vsel %vm239_vm1, %v586_v56, -inf }
 0x2ec   :  { %v2691_v46 = vpop.eup %2690  ;;  %v514_v49 = vunpack.c.l.b16 %v349_v33 }
 0x2ed   :  { %v348_v47 = vmul.f32 %v2691_v46, %v341_v8 }
 0x2ef   :  { %v350_v48 = vpack.c.bf16 %v348_v47, %v348_v47 }
 0x2f1   :  { %v515_v50 = vunpack.c.l.b16 %v350_v48 }
 0x2f3   :  { %v516_v51 = vpack.c.b16 %v515_v50, %v514_v49  ;;  %v629_v53 = vpop.permute.xlu0 %628 }
 0x2f4   :  { %v634_v42 = vsel %vm309_vm3, %v629_v53, 0 }
 0x2f5   :  { %2416 = vmatmul.msk.bf16.vlgmr.msrb.gmra.mxu0 %vm239_vm1, %v516_v51 }
 0x2f6   :  { %643 = vmatpush.bf16.msra.mxu0 %v634_v42 }
 0x2fb   :  { %v774_v54 = vpop.permute.xlu0 %773 }
 0x2fc   :  { %v779_v55 = vsel %vm309_vm3, %v774_v54, 0 }
 0x2fd   :  { %788 = vmatpush.bf16.msrb.mxu1 %v779_v55 }
 0x306   :  { %591 = vmax.xlane.f32.xlu1 %v590_v58 }
 0x336   :  { %v589_v59 = vpop.xlane.xlu1 %588 }
 0x337   :  { %v593_v60 = vsub.f32 %v585_v13, %v589_v59 }
 0x338   :  { %v701_v61 = vpop.f32.mrf.mxu2 }
 0x339   :  { %v595_v62 = vmul.f32 1.442695, %v593_v60  ;;  %v728_v38 = vmul.f32 0.35355338, %v701_v61  ;;  %v232_v61 = vld [vmem:[%s3678_s6 + $0xc] sm:$0xf] }
 0x33b   :  { %2692 = vpow2.f32 %v595_v62  ;;  %v730_v5 = vadd.f32 %v728_v38, %v3085_v52  ;;  %v809_v62 = vsel %vm309_vm3, %v232_v61, 0 }
 0x33c   :  { %818 = vmatpush.bf16.msrb.mxu2 %v809_v62 }
 0x33d   :  { %v732_v6 = vsel %vm239_vm1, %v730_v5, -inf }
 0x340   :  { %v703_v63 = vpop.f32.mrf.mxu2 }
 0x341   :  { %v2693_v0 = vpop.eup %2692 }
 0x342   :  { %v605_v1 = vpack.c.bf16 %v2693_v0, %v2693_v0  ;;  %v599_v2 = vsel %vm239_vm1, %v2693_v0, 0.0 }
 0x343   :  { %600 = vadd.xlane.f32.xlu2 %v599_v2 }
 0x344   :  { %2419 = vmatmul.msk.bf16.vlgmr.msrb.gmra.mxu3 %vm239_vm1, %v605_v1 }
 0x34b   :  { %733 = vmax.xlane.f32.xlu2 %v732_v6 }
 0x34e   :  { %v706_v24 = vpop.permute.xlu1 %705 }
 0x354   :  { %2423 = vmatmul.msk.bf16.vlgmr.msra.gmra.mxu3 %vm239_vm1, %v706_v24 }
 0x357   :  { %v507_v7 = vpop.f32.mrf.mxu3 }
 0x35f   :  { %v3162_v20 = vpop.f32.mrf.mxu3 }
 0x363   :  { %752 = vrot.lane.b32.xlu2 %v3061_v41, %s3655_s5 }
 0x372   :  { %v532_v8 = vpop.f32.mrf.mxu0 }
 0x373   :  { %v533_v9 = vadd.f32 %v532_v8, %v507_v7 }
 0x379   :  { %v592_v10 = vpop.xlane.xlu1 %591 }
 0x37a   :  { %v594_v11 = vsub.f32 %v586_v56, %v592_v10  ;;  %v534_v37 = vpop.f32.mrf.mxu0 }
 0x37c   :  { %v597_v13 = vmul.f32 1.442695, %v594_v11 }
 0x37e   :  { %2694 = vpow2.f32 %v597_v13 }
 0x384   :  { %v2695_v15 = vpop.eup %2694 }
 0x385   :  { %v606_v16 = vpack.c.bf16 %v2695_v15, %v2695_v15  ;;  %v602_v17 = vsel %vm239_vm1, %v2695_v15, 0.0  ;;  %v2655_v15 = vld [vmem:[%s3631_s9] ss:$0 sm:$0xff] }
 0x386   :  { %603 = vadd.xlane.f32.xlu1 %v602_v17 }
 0x387   :  { %2420 = vmatmul.msk.bf16.vlgmr.msra.gmra.mxu0 %vm239_vm1, %v606_v16 }
 0x3b6   :  { %v601_v18 = vpop.xlane.xlu2 %600 }
 0x3be   :  { %v734_v19 = vpop.xlane.xlu2 %733 }
 0x3bf   :  { %v738_v21 = vsub.f32 %v730_v5, %v734_v19  ;;  %v535_v19 = vadd.f32 %v534_v37, %v3162_v20 }
 0x3c1   :  { %v740_v41 = vmul.f32 1.442695, %v738_v21 }
 0x3c3   :  { %2696 = vpow2.f32 %v740_v41 }
 0x3c4   :  { %2698 = vrcp.f32 %v601_v18 }
 0x3c6   :  { %v753_v22 = vpop.permute.xlu2 %752 }
 0x3c7   :  { %v758_v23 = vsel %vm309_vm3, %v753_v22, 0  ;;  %v624_v25 = vpop.f32.mrf.mxu3 }
 0x3c8   :  { %767 = vmatpush.bf16.msrb.mxu0 %v758_v23 }
 0x3c9   :  { %v2697_v26 = vpop.eup %2696 }
 0x3ca   :  { %v750_v27 = vpack.c.bf16 %v2697_v26, %v2697_v26  ;;  %v744_v35 = vsel %vm239_vm1, %v2697_v26, 0.0  ;;  %v2699_v39 = vpop.eup %2698 }
 0x3cb   :  { %v651_v40 = vmul.f32 %v2699_v39, %v624_v25 }
 0x3cc   :  { %2424 = vmatmul.msk.bf16.vlgmr.msrb.gmra.mxu0 %vm239_vm1, %v750_v27 }
 0x3cd   :  { %v653_v45 = vpack.c.bf16 %v651_v40, %v651_v40 }
 0x3cf   :  { %v626_v28 = vpop.f32.mrf.mxu3  ;;  %v657_v47 = vunpack.c.l.b16 %v653_v45 }
 0x3d7   :  { %v724_v29 = vpop.f32.mrf.mxu3 }
 0x3d8   :  { %v729_v30 = vmul.f32 0.35355338, %v724_v29  ;;  %v2860_v29 = vmov 32.0  }
 0x3da   :  { %v731_v31 = vadd.f32 %v729_v30, %v3093_v14 }
 0x3dc   :  { %v735_v32 = vsel %vm239_vm1, %v731_v31, -inf }
 0x3dd   :  { %736 = vmax.xlane.f32.xlu1 %v735_v32 }
 0x3df   :  { %v726_v34 = vpop.f32.mrf.mxu3 }
 0x3e5   :  { %745 = vadd.xlane.f32.xlu1 %v744_v35 }
 0x3f9   :  { %v604_v36 = vpop.xlane.xlu1 %603 }
 0x3fa   :  { %2700 = vrcp.f32 %v604_v36 }
 0x400   :  { %v2701_v43 = vpop.eup %2700 }
 0x404   :  { %v645_v44 = vpop.f32.mrf.mxu0 }
 0x405   :  { %v652_v46 = vmul.f32 %v2701_v43, %v645_v44 }
 0x407   :  { %v654_v33 = vpack.c.bf16 %v652_v46, %v652_v46 }
 0x409   :  { %v658_v48 = vunpack.c.l.b16 %v654_v33 }
 0x40b   :  { %v659_v49 = vpack.c.b16 %v658_v48, %v657_v47 }
 0x40c   :  { %v647_v50 = vpop.f32.mrf.mxu0 }
 0x40d   :  { %2421 = vmatmul.msk.bf16.vlgmr.msra.gmra.mxu1 %vm239_vm1, %v659_v49  ;;  %v2613_v49 = vld [vmem:[%s3632_s10 + $0x8] sm:$0xff]  ;;  %v2612_v50 = vld [vmem:[%s3632_s10] sm:$0xff] }
 0x40e   :  { %934 = vmatpush.bf16.msrb.mxu3 %v2613_v49 }
 0x412   :  { %935 = vmatpush.bf16.msrb.mxu3 %v2612_v50 }
 0x449   :  { %v769_v51 = vpop.f32.mrf.mxu0 }
 0x450   :  { %v737_v53 = vpop.xlane.xlu1 %736 }
 0x451   :  { %v739_v42 = vsub.f32 %v731_v31, %v737_v53  ;;  %v771_v54 = vpop.f32.mrf.mxu0 }
 0x453   :  { %v742_v55 = vmul.f32 1.442695, %v739_v42 }
 0x455   :  { %2702 = vpow2.f32 %v742_v55 }
 0x458   :  { %v746_v63 = vpop.xlane.xlu1 %745 }
 0x459   :  { %2704 = vrcp.f32 %v746_v63 }
 0x45b   :  { %v2703_v57 = vpop.eup %2702 }
 0x45c   :  { %v751_v56 = vpack.c.bf16 %v2703_v57, %v2703_v57  ;;  %v747_v58 = vsel %vm239_vm1, %v2703_v57, 0.0 }
 0x45d   :  { %748 = vadd.xlane.f32.xlu0 %v747_v58 }
 0x45e   :  { %2425 = vmatmul.msk.bf16.vlgmr.msrb.gmra.mxu1 %vm239_vm1, %v751_v56 }
 0x45f   :  { %v2705_v38 = vpop.eup %2704 }
 0x460   :  { %v796_v2 = vmul.f32 %v2705_v38, %v769_v51 }
 0x462   :  { %v798_v7 = vpack.c.bf16 %v796_v2, %v796_v2 }
 0x48a   :  { %v675_v59 = vpop.f32.mrf.mxu1 }
 0x48b   :  { %v680_v60 = vadd.f32 %v675_v59, %v533_v9  ;;  %v802_v9 = vunpack.c.l.b16 %v798_v7 }
 0x492   :  { %v677_v1 = vpop.f32.mrf.mxu1 }
 0x493   :  { %v681_v41 = vadd.f32 %v677_v1, %v535_v19  ;;  %v2615_v19 = vld [vmem:[%s3634_s12 + $0x8] sm:$0xff] }
 0x494   :  { %980 = vmatpush.bf16.msra.mxu0 %v2615_v19 }
 0x4d0   :  { %v749_v0 = vpop.xlane.xlu0 %748 }
 0x4d1   :  { %2706 = vrcp.f32 %v749_v0  ;;  %v2656_v0 = vld [vmem:[%s3636_s14] ss:$0 sm:$0xff] }
 0x4d2   :  { %2708 = vrcp.f32 %v2860_v29 }
 0x4d7   :  { %v2707_v5 = vpop.eup %2706 }
 0x4d8   :  { %v2709_v30 = vpop.eup %2708 }
 0x4d9   :  { %v844_v31 = vmul.f32 32.0, %v2709_v30  ;;  %vm848_vm4 = vweird.f32 %v2709_v30 }
 0x4db   :  { %v790_v6 = vpop.f32.mrf.mxu1  ;;  %v845_v32 = vsub.f32 1.0, %v844_v31 }
 0x4dc   :  { %v797_v24 = vmul.f32 %v2707_v5, %v790_v6  ;;  %v2657_v5 = vld [vmem:[%s3637_s15] ss:$0 sm:$0xff] }
 0x4dd   :  { %v846_v20 = vmul.f32 %v2709_v30, %v845_v32 }
 0x4de   :  { %v799_v8 = vpack.c.bf16 %v797_v24, %v797_v24 }
 0x4df   :  { %v847_v34 = vadd.f32 %v2709_v30, %v846_v20 }
 0x4e0   :  { %v803_v10 = vunpack.c.l.b16 %v799_v8 }
 0x4e2   :  { %v804_v11 = vpack.c.b16 %v803_v10, %v802_v9 }
 0x4e3   :  { %v792_v13 = vpop.f32.mrf.mxu1 }
 0x4e4   :  { %2426 = vmatmul.msk.bf16.vlgmr.msrb.gmra.mxu2 %vm239_vm1, %v804_v11 }
 0x567   :  { %v820_v16 = vpop.f32.mrf.mxu2 }
 0x568   :  { %v825_v17 = vadd.f32 %v820_v16, %v680_v60 }
 0x56a   :  { %v831_v18 = vadd.f32 %v2655_v15, %v825_v17 }
 0x56c   :  { %v833_v21 = vadd.f32 %v831_v18, %v3009_v3  ;;  %v3185_v3 = vsel %vm848_vm4, %v2709_v30, %v847_v34  ;;  %v2659_v34 = vld [vmem:[%s3635_s13] ss:$0 sm:$0xff] }
 0x56e   :  { %v837_v22 = vsel %vm143_vm0, %v833_v21, 0.0 }
 0x56f   :  { %838 = vadd.xlane.f32.xlu1 %v837_v22  ;;  %v822_v23 = vpop.f32.mrf.mxu2 }
 0x570   :  { %v826_v25 = vadd.f32 %v822_v23, %v681_v41  ;;  %v2658_v41 = vld [vmem:[%s3633_s11] ss:$0 sm:$0xff] }
 0x572   :  { %v832_v26 = vadd.f32 %v2655_v15, %v826_v25 }
 0x574   :  { %v834_v27 = vadd.f32 %v832_v26, %v3014_v4 }
 0x576   :  { %v840_v28 = vsel %vm143_vm0, %v834_v27, 0.0 }
 0x577   :  { %841 = vadd.xlane.f32.xlu1 %v840_v28 }
 0x5e2   :  { %v839_v35 = vpop.xlane.xlu1 %838 }
 0x5e3   :  { %v850_v36 = vmul.f32 %v3185_v3, %v839_v35 }
 0x5e5   :  { %v852_v37 = vsub.f32 %v833_v21, %v850_v36  ;;  %v2614_v21 = vld [vmem:[%s3634_s12] sm:$0xff] }
 0x5e6   :  { %981 = vmatpush.bf16.msra.mxu0 %v2614_v21 }
 0x5e7   :  { %v854_v39 = vmul.f32 %v852_v37, %v852_v37 }
 0x5e9   :  { %v856_v4 = vsel %vm143_vm0, %v854_v39, 0.0 }
 0x5ea   :  { %857 = vadd.xlane.f32.xlu2 %v856_v4  ;;  %v842_v40 = vpop.xlane.xlu1 %841 }
 0x5eb   :  { %v851_v43 = vmul.f32 %v3185_v3, %v842_v40 }
 0x5ed   :  { %v853_v44 = vsub.f32 %v834_v27, %v851_v43 }
 0x5ef   :  { %v855_v45 = vmul.f32 %v853_v44, %v853_v44 }
 0x5f1   :  { %v859_v46 = vsel %vm143_vm0, %v855_v45, 0.0 }
 0x5f2   :  { %860 = vadd.xlane.f32.xlu1 %v859_v46 }
 0x65d   :  { %v858_v33 = vpop.xlane.xlu2 %857 }
 0x65e   :  { %v862_v47 = vmul.f32 %v858_v33, %v3185_v3 }
 0x660   :  { %v864_v48 = vadd.f32 1e-05, %v862_v47 }
 0x662   :  { %2710 = vrsqrt.f32 %v864_v48  ;;  %vm872_vm6 = vweird.f32 %v864_v48 }
 0x665   :  { %v861_v51 = vpop.xlane.xlu1 %860 }
 0x666   :  { %v863_v53 = vmul.f32 %v861_v51, %v3185_v3 }
 0x668   :  { %v2711_v42 = vpop.eup %2710  ;;  %v865_v54 = vadd.f32 1e-05, %v863_v53 }
 0x669   :  { %v867_v55 = vmul.f32 %v2711_v42, %v864_v48  ;;  %vm873_vm5 = vweird.f32 %v2711_v42 }
 0x66a   :  { %2712 = vrsqrt.f32 %v865_v54  ;;  %vm874_vm7 = vmor %vm872_vm6, %vm873_vm5  ;;  %vm882_vm9 = vweird.f32 %v865_v54 }
 0x66b   :  { %v868_v57 = vmul.f32 %v2711_v42, %v867_v55 }
 0x66d   :  { %v869_v56 = vmul.f32 0.5, %v868_v57 }
 0x66f   :  { %v870_v58 = vsub.f32 1.5, %v869_v56  ;;  %v2617_v56 = vld [vmem:[%s3670_s4 + $0x18] sm:$0xff] }
 0x670   :  { %v2713_v59 = vpop.eup %2712  ;;  %1084 = vmatpush.bf16.msra.mxu1 %v2617_v56 }
 0x671   :  { %v871_v60 = vmul.f32 %v2711_v42, %v870_v58  ;;  %v877_v61 = vmul.f32 %v2713_v59, %v865_v54  ;;  %vm883_vm8 = vweird.f32 %v2713_v59  ;;  %v2619_v58 = vld [vmem:[%s3671_s26 + $0x18] sm:$0xff] }
 0x672   :  { %vm884_vm10 = vmor %vm882_vm9, %vm883_vm8  ;;  %1120 = vmatpush.bf16.msra.mxu2 %v2619_v58 }
 0x673   :  { %v875_v62 = vsel %vm874_vm7, %v2711_v42, %v871_v60  ;;  %v878_v63 = vmul.f32 %v2713_v59, %v877_v61  ;;  %v2616_v60 = vld [vmem:[%s3670_s4 + $0x10] sm:$0xff]  ;;  %s2862_s4 = smov 96  }
 0x674   :  { %v886_v1 = vmul.f32 %v875_v62, %v852_v37  ;;  %v2618_v61 = vld [vmem:[%s3671_s26 + $0x10] sm:$0xff]  ;;  %1085 = vmatpush.bf16.msra.mxu1 %v2616_v60  ;;  %s2366_s26 = sshll.u32 %s3646_s24, 4  ;;  %s2367_s26 = int_to_ptr.hbm [resolvable:$true] %s2366_s26 }
 0x675   :  { %v879_v38 = vmul.f32 0.5, %v878_v63  ;;  %v2620_v62 = vld [vmem:[%s3673_s16 + $0x10] sm:$0xff] }
 0x676   :  { %v891_v6 = vmul.f32 %v2656_v0, %v886_v1  ;;  %1121 = vmatpush.bf16.msra.mxu2 %v2618_v61 }
 0x677   :  { %v880_v2 = vsub.f32 1.5, %v879_v38 }
 0x678   :  { %v896_v8 = vadd.f32 %v2657_v5, %v891_v6 }
 0x679   :  { %v881_v24 = vmul.f32 %v2713_v59, %v880_v2 }
 0x67a   :  { %v898_v13 = vpack.c.bf16 %v896_v8, %v896_v8 }
 0x67b   :  { %v885_v7 = vsel %vm884_vm10, %v2713_v59, %v881_v24  ;;  %v2621_v59 = vld [vmem:[%s3673_s16 + $0x18] sm:$0xff]  ;;  %s2864_s16 = smov 128  }
 0x67c   :  { %v887_v9 = vmul.f32 %v885_v7, %v853_v44  ;;  %v910_v16 = vunpack.c.l.b16 %v898_v13  ;;  %1156 = vmatpush.bf16.msra.mxu3 %v2621_v59  ;;  %v2660_v13 = vld [vmem:[#allocation2] ss:$0 sm:$0xff] }
 0x67e   :  { %v892_v10 = vmul.f32 %v2656_v0, %v887_v9 }
 0x680   :  { %v897_v11 = vadd.f32 %v2657_v5, %v892_v10  ;;  %1157 = vmatpush.bf16.msra.mxu3 %v2620_v62 }
 0x682   :  { %v899_v15 = vpack.c.bf16 %v897_v11, %v897_v11 }
 0x684   :  { %v911_v17 = vunpack.c.l.b16 %v899_v15 }
 0x686   :  { %v912_v18 = vpack.c.b16 %v911_v17, %v910_v16 }
 0x688   :  { %2435 = vmatmul.msk.bf16.vlgmr.msrb.gmra.mxu3 %vm143_vm0, %v912_v18  ;;  %v2661_v18 = vld [vmem:[%s3639_s17] ss:$0 sm:$0xff] }
 0x70b   :  { %v937_v22 = vpop.f32.mrf.mxu3 }
 0x70c   :  { %v938_v23 = vadd.f32 %v2658_v41, %v937_v22 }
 0x70e   :  { %v942_v25 = vmax.f32 %v938_v23, 0.0 }
 0x710   :  { %v944_v28 = vpack.c.bf16 %v942_v25, %v942_v25 }
 0x712   :  { %v956_v31 = vunpack.c.l.b16 %v944_v28 }
 0x713   :  { %v939_v26 = vpop.f32.mrf.mxu3 }
 0x714   :  { %v940_v27 = vadd.f32 %v2658_v41, %v939_v26 }
 0x716   :  { %v943_v29 = vmax.f32 %v940_v27, 0.0 }
 0x718   :  { %v945_v30 = vpack.c.bf16 %v943_v29, %v943_v29 }
 0x71a   :  { %v957_v32 = vunpack.c.l.b16 %v945_v30 }
 0x71c   :  { %v958_v20 = vpack.c.b16 %v957_v32, %v956_v31  ;;  %v2662_v32 = vld [vmem:[%s3674_s28 + $0x1] ss:$0 sm:$0xff]  ;;  %s3679_s28 = smov 120  }
 0x71e   :  { %2444 = vmatmul.msk.bf16.vlgmr.msra.gmra.mxu0 %vm143_vm0, %v958_v20 }
 0x79b   :  { %v983_v35 = vpop.f32.mrf.mxu0 }
 0x79c   :  { %v984_v36 = vadd.f32 %v2659_v34, %v983_v35 }
 0x79e   :  { %v988_v37 = vadd.f32 %v984_v36, %v896_v8  ;;  %v2663_v36 = vld [vmem:[%s3675_s2 + $0x1] ss:$0 sm:$0xff]  ;;  %s3680_s2 = smov 112  }
 0x7a0   :  { %v992_v39 = vsel %vm143_vm0, %v988_v37, 0.0 }
 0x7a1   :  { %993 = vadd.xlane.f32.xlu1 %v992_v39 }
 0x7a3   :  { %v985_v4 = vpop.f32.mrf.mxu0 }
 0x7a4   :  { %v986_v40 = vadd.f32 %v2659_v34, %v985_v4 }
 0x7a6   :  { %v989_v43 = vadd.f32 %v986_v40, %v897_v11 }
 0x7a8   :  { %v995_v44 = vsel %vm143_vm0, %v989_v43, 0.0 }
 0x7a9   :  { %996 = vadd.xlane.f32.xlu1 %v995_v44 }
 0x814   :  { %v994_v45 = vpop.xlane.xlu1 %993 }
 0x815   :  { %v998_v46 = vmul.f32 %v994_v45, %v3185_v3 }
 0x817   :  { %v1000_v33 = vsub.f32 %v988_v37, %v998_v46  ;;  %v2664_v37 = vld [vmem:[%s3676_s7 + $0x1] ss:$0 sm:$0xff]  ;;  %s3681_s7 = smov 104  }
 0x819   :  { %v1002_v47 = vmul.f32 %v1000_v33, %v1000_v33 }
 0x81b   :  { %v1004_v48 = vsel %vm143_vm0, %v1002_v47, 0.0 }
 0x81c   :  { %1005 = vadd.xlane.f32.xlu1 %v1004_v48  ;;  %v997_v49 = vpop.xlane.xlu1 %996 }
 0x81d   :  { %v999_v50 = vmul.f32 %v997_v49, %v3185_v3 }
 0x81f   :  { %v1001_v51 = vsub.f32 %v989_v43, %v999_v50 }
 0x821   :  { %v1003_v53 = vmul.f32 %v1001_v51, %v1001_v51 }
 0x823   :  { %v1007_v42 = vsel %vm143_vm0, %v1003_v53, 0.0 }
 0x824   :  { %1008 = vadd.xlane.f32.xlu0 %v1007_v42 }
 0x88f   :  { %v1006_v54 = vpop.xlane.xlu1 %1005 }
 0x890   :  { %v1010_v55 = vmul.f32 %v1006_v54, %v3185_v3 }
 0x892   :  { %v1012_v57 = vadd.f32 1e-05, %v1010_v55 }
 0x894   :  { %2714 = vrsqrt.f32 %v1012_v57  ;;  %vm1020_vm12 = vweird.f32 %v1012_v57 }
 0x897   :  { %v1009_v63 = vpop.xlane.xlu0 %1008 }
 0x898   :  { %v1011_v0 = vmul.f32 %v1009_v63, %v3185_v3 }
 0x89a   :  { %v2715_v1 = vpop.eup %2714  ;;  %v1013_v38 = vadd.f32 1e-05, %v1011_v0 }
 0x89b   :  { %v1015_v2 = vmul.f32 %v2715_v1, %v1012_v57  ;;  %vm1021_vm11 = vweird.f32 %v2715_v1 }
 0x89c   :  { %2716 = vrsqrt.f32 %v1013_v38  ;;  %vm1022_vm13 = vmor %vm1020_vm12, %vm1021_vm11  ;;  %vm1030_vm15 = vweird.f32 %v1013_v38 }
 0x89d   :  { %v1016_v5 = vmul.f32 %v2715_v1, %v1015_v2 }
 0x89f   :  { %v1017_v6 = vmul.f32 0.5, %v1016_v5 }
 0x8a1   :  { %v1018_v24 = vsub.f32 1.5, %v1017_v6 }
 0x8a2   :  { %v2717_v7 = vpop.eup %2716 }
 0x8a3   :  { %v1019_v8 = vmul.f32 %v2715_v1, %v1018_v24  ;;  %v1025_v9 = vmul.f32 %v2717_v7, %v1013_v38  ;;  %vm1031_vm14 = vweird.f32 %v2717_v7 }
 0x8a4   :  { %vm1032_vm2 = vmor %vm1030_vm15, %vm1031_vm14 }
 0x8a5   :  { %v1023_v10 = vsel %vm1022_vm13, %v2715_v1, %v1019_v8  ;;  %v1026_v11 = vmul.f32 %v2717_v7, %v1025_v9 }
 0x8a6   :  { %v1034_v15 = vmul.f32 %v1023_v10, %v1000_v33 }
 0x8a7   :  { %v1027_v16 = vmul.f32 0.5, %v1026_v11 }
 0x8a8   :  { %v1039_v19 = vmul.f32 %v2660_v13, %v1034_v15 }
 0x8a9   :  { %v1028_v17 = vsub.f32 1.5, %v1027_v16 }
 0x8aa   :  { %v3248_v22 = vadd.f32 %v2661_v18, %v1039_v19 }
 0x8ab   :  { %v1029_v21 = vmul.f32 %v2717_v7, %v1028_v17 }
 0x8ac   :  { %v1046_v27 = vpack.c.bf16 %v3248_v22, %v3248_v22 }
 0x8ad   :  { %v1033_v41 = vsel %vm1032_vm2, %v2717_v7, %v1029_v21 }
 0x8ae   :  { %v1035_v23 = vmul.f32 %v1033_v41, %v1001_v51  ;;  %v1060_v29 = vunpack.c.l.b16 %v1046_v27  ;;  %v2488_v27 = vld [vmem:[%s3678_s6 + $0x14] sm:$0xf] }
 0x8b0   :  { %v1040_v25 = vmul.f32 %v2660_v13, %v1035_v23 }
 0x8b2   :  { %v3250_v26 = vadd.f32 %v2661_v18, %v1040_v25 }
 0x8b4   :  { %v1047_v28 = vpack.c.bf16 %v3250_v26, %v3250_v26 }
 0x8b6   :  { %v1061_v30 = vunpack.c.l.b16 %v1047_v28  ;;  %v1426_v28 = vsel %vm309_vm3, %v2488_v27, 0 }
 0x8b8   :  { %v1062_v31 = vpack.c.b16 %v1061_v30, %v1060_v29 }
 0x8ba   :  { %2458 = vmatmul.msk.bf16.vlgmr.msra.gmra.mxu1 %vm143_vm0, %v1062_v31  ;;  %2472 = vmatmul.msk.bf16.vlgmr.msra.gmra.mxu2 %vm143_vm0, %v1062_v31 }
 0x8bb   :  { %2486 = vmatmul.msk.bf16.vlgmr.msra.gmra.mxu3 %vm143_vm0, %v1062_v31 }
 0x937   :  { %v1087_v20 = vpop.f32.mrf.mxu1 }
 0x938   :  { %v1088_v34 = vadd.f32 %v2662_v32, %v1087_v20 }
 0x93a   :  { %v1169_v35 = vpack.c.bf16 %v1088_v34, %v1088_v34 }
 0x93c   :  { %v1282_v39 = vunpack.c.l.b16 %v1169_v35 }
 0x93d   :  { %v1123_v4 = vpop.f32.mrf.mxu2 }
 0x93e   :  { %v3268_v40 = vpack.c.b16 %v1282_v39, %v1282_v39  ;;  %v1124_v43 = vadd.f32 %v2663_v36, %v1123_v4  ;;  %v1159_v44 = vpop.f32.mrf.mxu3 }
 0x93f   :  { %v1160_v45 = vadd.f32 %v2664_v37, %v1159_v44  ;;  %v1089_v46 = vpop.f32.mrf.mxu1 }
 0x940   :  { %v1171_v33 = vpack.c.bf16 %v1124_v43, %v1124_v43  ;;  %v1090_v47 = vadd.f32 %v2662_v32, %v1089_v46  ;;  %1284 = vrot.lane.b32.xlu0 %v3268_v40, %s3679_s28 }
 0x941   :  { %v1173_v48 = vpack.c.bf16 %v1160_v45, %v1160_v45 }
 0x942   :  { %v1179_v49 = vsel %vm239_vm1, %v1171_v33, 0  ;;  %v1287_v50 = vunpack.c.l.b16 %v1171_v33  ;;  %v1170_v51 = vpack.c.bf16 %v1090_v47, %v1090_v47 }
 0x943   :  { %v1241_v53 = vsel %vm309_vm3, %v1173_v48, 0  ;;  %1188 = vmatpush.bf16.xpose.msrb.mxu0 %v1179_v49  ;;  %v1364_v38 = vunpack.c.l.b16 %v1173_v48 }
 0x944   :  { %v1288_v42 = vpack.c.b16 %v1287_v50, %v1287_v50  ;;  %v1311_v54 = vunpack.c.l.b16 %v1170_v51  ;;  %1250 = vmatpush.bf16.msrb.mxu2 %v1241_v53 }
 0x945   :  { %v1125_v55 = vpop.f32.mrf.mxu2  ;;  %v3290_v2 = vpack.c.b16 %v1364_v38, %v1364_v38 }
 0x946   :  { %v3274_v57 = vpack.c.b16 %v1311_v54, %v1311_v54  ;;  %v1126_v56 = vadd.f32 %v2663_v36, %v1125_v55  ;;  %v1161_v58 = vpop.f32.mrf.mxu3  ;;  %1289 = vrot.lane.b32.xlu1 %v1288_v42, %s3679_s28 }
 0x947   :  { %v1162_v59 = vadd.f32 %v2664_v37, %v1161_v58 }
 0x948   :  { %v1172_v60 = vpack.c.bf16 %v1126_v56, %v1126_v56  ;;  %1313 = vrot.lane.b32.xlu0 %v3274_v57, %s3679_s28 }
 0x949   :  { %v3279_v61 = vpack.c.bf16 %v1162_v59, %v1162_v59 }
 0x94a   :  { %v1198_v62 = vsel %vm239_vm1, %v1172_v60, 0  ;;  %v1316_v63 = vunpack.c.l.b16 %v1172_v60  ;;  %2491 = vmatmul.msk.bf16.vlgmr.msrb.gmra.mxu0 %vm239_vm1, %v1169_v35 }
 0x94b   :  { %v1260_v0 = vsel %vm309_vm3, %v3279_v61, 0  ;;  %1207 = vmatpush.bf16.xpose.msrb.mxu1 %v1198_v62  ;;  %v1388_v54 = vunpack.c.l.b16 %v3279_v61 }
 0x94c   :  { %v3285_v1 = vpack.c.b16 %v1316_v63, %v1316_v63  ;;  %1269 = vmatpush.bf16.msrb.mxu3 %v1260_v0 }
 0x94d   :  { %v3321_v58 = vpack.c.b16 %v1388_v54, %v1388_v54 }
 0x94e   :  { %1318 = vrot.lane.b32.xlu2 %v3285_v1, %s3679_s28 }
 0x952   :  { %2492 = vmatmul.msk.bf16.vlgmr.msrb.gmra.mxu1 %vm239_vm1, %v1170_v51 }
 0x956   :  { %1366 = vrot.lane.b32.xlu2 %v3290_v2, %s3679_s28 }
 0x95e   :  { %1469 = vrot.lane.b32.xlu2 %v1288_v42, %s3680_s2 }
 0x966   :  { %1467 = vrot.lane.b32.xlu2 %v3268_v40, %s3680_s2 }
 0x9a8   :  { %v1319_v5 = vpop.permute.xlu2 %1318 }
 0x9a9   :  { %v1324_v6 = vsel %vm239_vm1, %v1319_v5, 0 }
 0x9aa   :  { %1333 = vmatpush.bf16.xpose.msra.mxu1 %v1324_v6 }
 0x9b0   :  { %v1367_v24 = vpop.permute.xlu2 %1366 }
 0x9b1   :  { %v1372_v7 = vsel %vm309_vm3, %v1367_v24, 0 }
 0x9b2   :  { %1381 = vmatpush.bf16.msra.mxu2 %v1372_v7  ;;  %v1285_v8 = vpop.permute.xlu0 %1284 }
 0x9b8   :  { %v1290_v9 = vpop.permute.xlu1 %1289  ;;  %v1470_v29 = vpop.permute.xlu2 %1469 }
 0x9b9   :  { %v1295_v10 = vsel %vm239_vm1, %v1290_v9, 0  ;;  %v1475_v51 = vsel %vm239_vm1, %v1470_v29, 0 }
 0x9ba   :  { %1304 = vmatpush.bf16.xpose.msra.mxu0 %v1295_v10  ;;  %v1314_v11 = vpop.permute.xlu0 %1313 }
 0x9bb   :  { %2496 = vmatmul.msk.bf16.vlgmr.msra.gmra.mxu1 %vm239_vm1, %v1314_v11 }
 0x9c0   :  { %v1468_v35 = vpop.permute.xlu2 %1467 }
 0x9c1   :  { %2495 = vmatmul.msk.bf16.vlgmr.msra.gmra.mxu0 %vm239_vm1, %v1285_v8 }
 0x9c2   :  { %1435 = vmatpush.bf16.msrb.mxu0 %v1426_v28 }
 0x9c7   :  { %v1190_v13 = vpop.f32.mrf.mxu0 }
 0x9c8   :  { %v1213_v15 = vmul.f32 0.35355338, %v1190_v13 }
 0x9ca   :  { %v1215_v16 = vadd.f32 %v1213_v15, %v3085_v52 }
 0x9cc   :  { %v1217_v17 = vsel %vm239_vm1, %v1215_v16, -inf }
 0x9cd   :  { %1218 = vmax.xlane.f32.xlu1 %v1217_v17 }
 0x9cf   :  { %v1192_v18 = vpop.f32.mrf.mxu0  ;;  %v1209_v19 = vpop.f32.mrf.mxu1 }
 0x9d0   :  { %v1214_v21 = vmul.f32 0.35355338, %v1209_v19 }
 0x9d2   :  { %v1216_v41 = vadd.f32 %v1214_v21, %v3093_v14 }
 0x9d4   :  { %v1220_v23 = vsel %vm239_vm1, %v1216_v41, -inf }
 0x9d5   :  { %1221 = vmax.xlane.f32.xlu2 %v1220_v23 }
 0x9d7   :  { %v1211_v25 = vpop.f32.mrf.mxu1 }
 0x9ed   :  { %1537 = vrot.lane.b32.xlu2 %v3290_v2, %s3680_s2 }
 0x9f5   :  { %1614 = vrot.lane.b32.xlu2 %v1288_v42, %s3681_s7 }
 0xa38   :  { %v1335_v30 = vpop.f32.mrf.mxu1 }
 0xa39   :  { %v1340_v31 = vmul.f32 0.35355338, %v1335_v30 }
 0xa3b   :  { %v1342_v32 = vadd.f32 %v1340_v31, %v3093_v14 }
 0xa3d   :  { %v1346_v20 = vsel %vm239_vm1, %v1342_v32, -inf }
 0xa3e   :  { %1347 = vmax.xlane.f32.xlu1 %v1346_v20  ;;  %v1306_v34 = vpop.f32.mrf.mxu0 }
 0xa3f   :  { %v1339_v36 = vmul.f32 0.35355338, %v1306_v34 }
 0xa40   :  { %v1337_v37 = vpop.f32.mrf.mxu1  ;;  %v1219_v39 = vpop.xlane.xlu1 %1218 }
 0xa41   :  { %v1223_v4 = vsub.f32 %v1215_v16, %v1219_v39  ;;  %v1341_v43 = vadd.f32 %v1339_v36, %v3085_v52 }
 0xa43   :  { %v1225_v44 = vmul.f32 1.442695, %v1223_v4  ;;  %v1343_v45 = vsel %vm239_vm1, %v1341_v43, -inf }
 0xa44   :  { %1344 = vmax.xlane.f32.xlu0 %v1343_v45 }
 0xa45   :  { %2718 = vpow2.f32 %v1225_v44 }
 0xa46   :  { %v1308_v46 = vpop.f32.mrf.mxu0 }
 0xa48   :  { %v1222_v33 = vpop.xlane.xlu2 %1221 }
 0xa49   :  { %v1224_v47 = vsub.f32 %v1216_v41, %v1222_v33 }
 0xa4b   :  { %v2719_v48 = vpop.eup %2718  ;;  %v1227_v49 = vmul.f32 1.442695, %v1224_v47 }
 0xa4c   :  { %v1235_v50 = vpack.c.bf16 %v2719_v48, %v2719_v48  ;;  %v1229_v25 = vsel %vm239_vm1, %v2719_v48, 0.0 }
 0xa4d   :  { %2720 = vpow2.f32 %v1227_v49 }
 0xa4e   :  { %2493 = vmatmul.msk.bf16.vlgmr.msrb.gmra.mxu2 %vm239_vm1, %v1235_v50  ;;  %v2487_v50 = vld [vmem:[%s3678_s6 + $0x10] sm:$0xf] }
 0xa4f   :  { %1484 = vmatpush.bf16.xpose.msrb.mxu2 %v1475_v51  ;;  %v1451_v51 = vsel %vm309_vm3, %v2487_v50, 0 }
 0xa50   :  { %v1538_v53 = vpop.permute.xlu2 %1537  ;;  %1460 = vmatpush.bf16.msrb.mxu1 %v1451_v51 }
 0xa51   :  { %v1543_v42 = vsel %vm309_vm3, %v1538_v53, 0 }
 0xa52   :  { %1552 = vmatpush.bf16.msra.mxu0 %v1543_v42 }
 0xa53   :  { %v2721_v55 = vpop.eup %2720 }
 0xa54   :  { %v1236_v56 = vpack.c.bf16 %v2721_v55, %v2721_v55  ;;  %v1232_v23 = vsel %vm239_vm1, %v2721_v55, 0.0 }
 0xa56   :  { %2494 = vmatmul.msk.bf16.vlgmr.msrb.gmra.mxu3 %vm239_vm1, %v1236_v56 }
 0xa57   :  { %1492 = vrot.lane.b32.xlu1 %v3285_v1, %s3680_s2 }
 0xa58   :  { %1390 = vrot.lane.b32.xlu0 %v3321_v58, %s3679_s28  ;;  %v1615_v11 = vpop.permute.xlu2 %1614 }
 0xa59   :  { %v1620_v16 = vsel %vm239_vm1, %v1615_v11, 0 }
 0xa60   :  { %1490 = vrot.lane.b32.xlu0 %v3274_v57, %s3680_s2 }
 0xab1   :  { %v1348_v59 = vpop.xlane.xlu1 %1347 }
 0xab2   :  { %v1350_v60 = vsub.f32 %v1342_v32, %v1348_v59 }
 0xab4   :  { %v1353_v62 = vmul.f32 1.442695, %v1350_v60 }
 0xab6   :  { %2722 = vpow2.f32 %v1353_v62 }
 0xab7   :  { %v1345_v61 = vpop.xlane.xlu0 %1344 }
 0xab8   :  { %v1349_v63 = vsub.f32 %v1341_v43, %v1345_v61 }
 0xaba   :  { %v1351_v0 = vmul.f32 1.442695, %v1349_v63 }
 0xabc   :  { %v2723_v38 = vpop.eup %2722  ;;  %2724 = vpow2.f32 %v1351_v0 }
 0xabd   :  { %v1358_v5 = vsel %vm239_vm1, %v2723_v38, 0.0  ;;  %v1362_v15 = vpack.c.bf16 %v2723_v38, %v2723_v38 }
 0xabe   :  { %1359 = vadd.xlane.f32.xlu0 %v1358_v5 }
 0xac2   :  { %v2725_v6 = vpop.eup %2724 }
 0xac3   :  { %v1361_v24 = vpack.c.bf16 %v2725_v6, %v2725_v6  ;;  %v1355_v7 = vsel %vm239_vm1, %v2725_v6, 0.0 }
 0xac4   :  { %1356 = vadd.xlane.f32.xlu2 %v1355_v7 }
 0xac5   :  { %2497 = vmatmul.msk.bf16.vlgmr.msra.gmra.mxu2 %vm239_vm1, %v1361_v24 }
 0xac9   :  { %v1493_v8 = vpop.permute.xlu1 %1492 }
 0xaca   :  { %v1391_v9 = vpop.permute.xlu0 %1390  ;;  %v1498_v13 = vsel %vm239_vm1, %v1493_v8, 0 }
 0xacb   :  { %v1396_v10 = vsel %vm309_vm3, %v1391_v9, 0 }
 0xacc   :  { %1405 = vmatpush.bf16.msra.mxu3 %v1396_v10 }
 0xacf   :  { %2498 = vmatmul.msk.bf16.vlgmr.msra.gmra.mxu3 %vm239_vm1, %v1362_v15 }
 0xad0   :  { %1507 = vmatpush.bf16.xpose.msrb.mxu3 %v1498_v13 }
 0xad1   :  { %v1252_v17 = vpop.f32.mrf.mxu2 }
 0xad2   :  { %1612 = vrot.lane.b32.xlu0 %v3268_v40, %s3681_s7  ;;  %v1491_v21 = vpop.permute.xlu0 %1490 }
 0xad5   :  { %2501 = vmatmul.msk.bf16.vlgmr.msrb.gmra.mxu2 %vm239_vm1, %v1468_v35 }
 0xad8   :  { %1629 = vmatpush.bf16.xpose.msra.mxu3 %v1620_v16 }
 0xad9   :  { %v1254_v18 = vpop.f32.mrf.mxu2  ;;  %v1271_v19 = vpop.f32.mrf.mxu3 }
 0xadc   :  { %1637 = vrot.lane.b32.xlu2 %v3285_v1, %s3681_s7 }
 0xadf   :  { %2502 = vmatmul.msk.bf16.vlgmr.msrb.gmra.mxu3 %vm239_vm1, %v1491_v21 }
 0xae1   :  { %v1273_v41 = vpop.f32.mrf.mxu3 }
 0xafc   :  { %1233 = vadd.xlane.f32.xlu0 %v1232_v23 }
 0xb05   :  { %1230 = vadd.xlane.f32.xlu2 %v1229_v25 }
 0xb1d   :  { %1558 = vrot.lane.b32.xlu2 %v3321_v58, %s3680_s2 }
 0xb31   :  { %v1360_v40 = vpop.xlane.xlu0 %1359 }
 0xb37   :  { %v1357_v28 = vpop.xlane.xlu2 %1356 }
 0xb38   :  { %2726 = vrcp.f32 %v1357_v28 }
 0xb39   :  { %2728 = vrcp.f32 %v1360_v40 }
 0xb3e   :  { %v2727_v29 = vpop.eup %2726 }
 0xb3f   :  { %v2729_v32 = vpop.eup %2728  ;;  %v1638_v4 = vpop.permute.xlu2 %1637 }
 0xb40   :  { %v1643_v33 = vsel %vm239_vm1, %v1638_v4, 0 }
 0xb44   :  { %v1613_v27 = vpop.permute.xlu0 %1612 }
 0xb45   :  { %2506 = vmatmul.msk.bf16.vlgmr.msra.gmra.mxu3 %vm239_vm1, %v1613_v27 }
 0xb48   :  { %v1383_v1 = vpop.f32.mrf.mxu2 }
 0xb49   :  { %v1413_v30 = vmul.f32 %v2727_v29, %v1383_v1 }
 0xb4b   :  { %v1415_v34 = vpack.c.bf16 %v1413_v30, %v1413_v30 }
 0xb4d   :  { %v1419_v37 = vunpack.c.l.b16 %v1415_v34 }
 0xb50   :  { %v1385_v31 = vpop.f32.mrf.mxu2 }
 0xb52   :  { %v1407_v20 = vpop.f32.mrf.mxu3 }
 0xb53   :  { %v1414_v35 = vmul.f32 %v2729_v32, %v1407_v20 }
 0xb55   :  { %v1416_v36 = vpack.c.bf16 %v1414_v35, %v1414_v35 }
 0xb57   :  { %v1420_v39 = vunpack.c.l.b16 %v1416_v36 }
 0xb58   :  { %v1486_v43 = vpop.f32.mrf.mxu2 }
 0xb59   :  { %v1421_v44 = vpack.c.b16 %v1420_v39, %v1419_v37  ;;  %v1513_v45 = vmul.f32 0.35355338, %v1486_v43 }
 0xb5a   :  { %v1409_v46 = vpop.f32.mrf.mxu3 }
 0xb5b   :  { %2499 = vmatmul.msk.bf16.vlgmr.msrb.gmra.mxu0 %vm239_vm1, %v1421_v44  ;;  %v1515_v47 = vadd.f32 %v1513_v45, %v3085_v52 }
 0xb5c   :  { %1652 = vmatpush.bf16.xpose.msrb.mxu0 %v1643_v33 }
 0xb5d   :  { %v1517_v48 = vsel %vm239_vm1, %v1515_v47, -inf }
 0xb5e   :  { %1518 = vmax.xlane.f32.xlu1 %v1517_v48 }
 0xb60   :  { %v1488_v49 = vpop.f32.mrf.mxu2 }
 0xb62   :  { %v1509_v53 = vpop.f32.mrf.mxu3 }
 0xb63   :  { %v1514_v7 = vmul.f32 0.35355338, %v1509_v53  ;;  %v2489_v53 = vld [vmem:[%s3678_s6 + $0x18] sm:$0xf] }
 0xb6a   :  { %v1511_v42 = vpop.f32.mrf.mxu3 }
 0xb6b   :  { %v1594_v42 = vsel %vm309_vm3, %v2489_v53, 0 }
 0xb6c   :  { %1603 = vmatpush.bf16.msra.mxu2 %v1594_v42 }
 0xb6f   :  { %v1234_v54 = vpop.xlane.xlu0 %1233 }
 0xb70   :  { %2730 = vrcp.f32 %v1234_v54 }
 0xb76   :  { %v2731_v56 = vpop.eup %2730 }
 0xb77   :  { %1635 = vrot.lane.b32.xlu1 %v3274_v57, %s3681_s7  ;;  %v1278_v59 = vmul.f32 %v2731_v56, %v1271_v19  ;;  %v1516_v57 = vadd.f32 %v1514_v7, %v3093_v14 }
 0xb78   :  { %v1231_v55 = vpop.xlane.xlu2 %1230 }
 0xb79   :  { %2732 = vrcp.f32 %v1231_v55  ;;  %v1280_v62 = vpack.c.bf16 %v1278_v59, %v1278_v59  ;;  %v1520_v8 = vsel %vm239_vm1, %v1516_v57, -inf }
 0xb7b   :  { %v1445_v5 = vunpack.c.l.b16 %v1280_v62 }
 0xb7f   :  { %v2733_v60 = vpop.eup %2732 }
 0xb80   :  { %v1277_v61 = vmul.f32 %v2733_v60, %v1252_v17  ;;  %v1559_v63 = vpop.permute.xlu2 %1558 }
 0xb81   :  { %v1564_v0 = vsel %vm309_vm3, %v1559_v63, 0 }
 0xb82   :  { %v1279_v38 = vpack.c.bf16 %v1277_v61, %v1277_v61  ;;  %1573 = vmatpush.bf16.msra.mxu1 %v1564_v0 }
 0xb84   :  { %v1444_v6 = vunpack.c.l.b16 %v1279_v38 }
 0xb86   :  { %v1446_v24 = vpack.c.b16 %v1445_v5, %v1444_v6 }
 0xb88   :  { %2500 = vmatmul.msk.bf16.vlgmr.msrb.gmra.mxu1 %vm239_vm1, %v1446_v24 }
 0xba1   :  { %1521 = vmax.xlane.f32.xlu1 %v1520_v8 }
 0xbc8   :  { %v1631_v9 = vpop.f32.mrf.mxu3 }
 0xbc9   :  { %v1658_v17 = vmul.f32 0.35355338, %v1631_v9 }
 0xbcb   :  { %v1660_v21 = vadd.f32 %v1658_v17, %v3085_v52 }
 0xbcd   :  { %v1662_v41 = vsel %vm239_vm1, %v1660_v21, -inf }
 0xbd0   :  { %v1633_v10 = vpop.f32.mrf.mxu3 }
 0xbd1   :  { %v1519_v11 = vpop.xlane.xlu1 %1518 }
 0xbd2   :  { %v1523_v13 = vsub.f32 %v1515_v47, %v1519_v11 }
 0xbd4   :  { %v1525_v15 = vmul.f32 1.442695, %v1523_v13 }
 0xbd6   :  { %2734 = vpow2.f32 %v1525_v15 }
 0xbd8   :  { %v1437_v25 = vpop.f32.mrf.mxu0 }
 0xbdc   :  { %v2735_v16 = vpop.eup %2734 }
 0xbdd   :  { %v1535_v18 = vpack.c.bf16 %v2735_v16, %v2735_v16  ;;  %v1529_v19 = vsel %vm239_vm1, %v2735_v16, 0.0  ;;  %v2490_v16 = vld [vmem:[%s3678_s6 + $0x1c] sm:$0xf] }
 0xbde   :  { %1530 = vadd.xlane.f32.xlu0 %v1529_v19  ;;  %v1739_v17 = vsel %vm309_vm3, %v2490_v16, 0  ;;  %v2626_v19 = vld [vmem:[%s3640_s18] sm:$0xff]  ;;  %v2622_v16 = vld [vmem:[%s3632_s10 + $0x10] sm:$0xff] }
 0xbdf   :  { %2503 = vmatmul.msk.bf16.vlgmr.msra.gmra.mxu0 %vm239_vm1, %v1535_v18  ;;  %1748 = vmatpush.bf16.msrb.mxu3 %v1739_v17  ;;  %v2627_v18 = vld [vmem:[%s3640_s18 + $0x8] sm:$0xff] }
 0xbe0   :  { %v3373_v20 = vpop.f32.mrf.mxu0 }
 0xbe6   :  { %1663 = vmax.xlane.f32.xlu0 %v1662_v41 }
 0xbe9   :  { %v1636_v23 = vpop.permute.xlu1 %1635 }
 0xbef   :  { %2507 = vmatmul.msk.bf16.vlgmr.msrb.gmra.mxu0 %vm239_vm1, %v1636_v23 }
 0xbfa   :  { %1682 = vrot.lane.b32.xlu0 %v3290_v2, %s3681_s7 }
 0xc05   :  { %v1462_v40 = vpop.f32.mrf.mxu1 }
 0xc06   :  { %v3369_v27 = vadd.f32 %v1462_v40, %v1437_v25 }
 0xc0d   :  { %v3386_v55 = vpop.f32.mrf.mxu1 }
 0xc14   :  { %v1522_v28 = vpop.xlane.xlu1 %1521 }
 0xc15   :  { %v1524_v1 = vsub.f32 %v1516_v57, %v1522_v28 }
 0xc17   :  { %v1527_v29 = vmul.f32 1.442695, %v1524_v1 }
 0xc19   :  { %2736 = vpow2.f32 %v1527_v29 }
 0xc1f   :  { %v2737_v30 = vpop.eup %2736 }
 0xc20   :  { %v1536_v31 = vpack.c.bf16 %v2737_v30, %v2737_v30  ;;  %v1532_v52 = vsel %vm239_vm1, %v2737_v30, 0.0 }
 0xc21   :  { %1533 = vadd.xlane.f32.xlu2 %v1532_v52 }
 0xc22   :  { %2504 = vmatmul.msk.bf16.vlgmr.msra.gmra.mxu1 %vm239_vm1, %v1536_v31 }
 0xc51   :  { %v1531_v32 = vpop.xlane.xlu0 %1530 }
 0xc52   :  { %2738 = vrcp.f32 %v1531_v32 }
 0xc58   :  { %v2739_v35 = vpop.eup %2738 }
 0xc59   :  { %v1664_v2 = vpop.xlane.xlu0 %1663 }
 0xc5a   :  { %v1668_v34 = vsub.f32 %v1660_v21, %v1664_v2 }
 0xc5c   :  { %v1670_v36 = vmul.f32 1.442695, %v1668_v34  ;;  %v1554_v37 = vpop.f32.mrf.mxu0 }
 0xc5d   :  { %v1581_v39 = vmul.f32 %v2739_v35, %v1554_v37  ;;  %v2562_v35 = vld [vmem:[%s3644_s22 + $0x10] sm:$0xf] }
 0xc5e   :  { %2740 = vpow2.f32 %v1670_v36  ;;  %v2631_v36 = vld [vmem:[%s3644_s22 + $0x14] sm:$0xf0] }
 0xc5f   :  { %v1583_v59 = vpack.c.bf16 %v1581_v39, %v1581_v39  ;;  %v2563_v37 = vor.u32 %v2631_v36, %v2562_v35  ;;  %v2554_v39 = vld [vmem:[%s3644_s22] sm:$0xf] }
 0xc60   :  { %v2667_v35 = vld [vmem:[%s3636_s14 + $0x1] ss:$0 sm:$0xff] }
 0xc61   :  { %v1587_v61 = vunpack.c.l.b16 %v1583_v59  ;;  %2054 = vmatpush.bf16.msra.mxu3 %v2563_v37 }
 0xc64   :  { %v2741_v4 = vpop.eup %2740  ;;  %v1556_v43 = vpop.f32.mrf.mxu0 }
 0xc65   :  { %v1674_v44 = vsel %vm239_vm1, %v2741_v4, 0.0  ;;  %v1680_v48 = vpack.c.bf16 %v2741_v4, %v2741_v4  ;;  %v2629_v4 = vld [vmem:[%s3644_s22 + $0x4] sm:$0xf0] }
 0xc66   :  { %1675 = vadd.xlane.f32.xlu0 %v1674_v44  ;;  %v2555_v44 = vor.u32 %v2629_v4, %v2554_v39  ;;  %v2668_v4 = vld [vmem:[%s3637_s15 + $0x1] ss:$0 sm:$0xff] }
 0xc68   :  { %2055 = vmatpush.bf16.msra.mxu3 %v2555_v44 }
 0xc6c   :  { %v1683_v45 = vpop.permute.xlu0 %1682  ;;  %v1654_v46 = vpop.f32.mrf.mxu0 }
 0xc6d   :  { %v1688_v33 = vsel %vm309_vm3, %v1683_v45, 0  ;;  %v1659_v47 = vmul.f32 0.35355338, %v1654_v46 }
 0xc6e   :  { %1697 = vmatpush.bf16.msrb.mxu1 %v1688_v33 }
 0xc6f   :  { %v1661_v49 = vadd.f32 %v1659_v47, %v3093_v14 }
 0xc71   :  { %2508 = vmatmul.msk.bf16.vlgmr.msrb.gmra.mxu1 %vm239_vm1, %v1680_v48  ;;  %v1665_v50 = vsel %vm239_vm1, %v1661_v49, -inf }
 0xc72   :  { %1666 = vmax.xlane.f32.xlu1 %v1665_v50  ;;  %v2665_v50 = vld [vmem:[%s3631_s9 + $0x1] ss:$0 sm:$0xff]  ;;  %s2861_s9 = smov 64  }
 0xc74   :  { %v1656_v51 = vpop.f32.mrf.mxu0 }
 0xc8b   :  { %1703 = vrot.lane.b32.xlu1 %v3321_v58, %s3681_s7 }
 0xc94   :  { %v1534_v54 = vpop.xlane.xlu2 %1533 }
 0xc95   :  { %2742 = vrcp.f32 %v1534_v54 }
 0xc9b   :  { %v2743_v14 = vpop.eup %2742 }
 0xc9f   :  { %v1575_v56 = vpop.f32.mrf.mxu1 }
 0xca0   :  { %v1582_v60 = vmul.f32 %v2743_v14, %v1575_v56  ;;  %v1465_v14 = vadd.f32 %v3386_v55, %v3373_v20 }
 0xca2   :  { %v1584_v62 = vpack.c.bf16 %v1582_v60, %v1582_v60 }
 0xca4   :  { %v1588_v63 = vunpack.c.l.b16 %v1584_v62 }
 0xca6   :  { %v1589_v0 = vpack.c.b16 %v1588_v63, %v1587_v61 }
 0xca7   :  { %v1577_v38 = vpop.f32.mrf.mxu1 }
 0xca8   :  { %2505 = vmatmul.msk.bf16.vlgmr.msra.gmra.mxu2 %vm239_vm1, %v1589_v0 }
 0xcd9   :  { %v1676_v21 = vpop.xlane.xlu0 %1675 }
 0xce5   :  { %v1667_v5 = vpop.xlane.xlu1 %1666 }
 0xce6   :  { %v1669_v6 = vsub.f32 %v1661_v49, %v1667_v5 }
 0xce8   :  { %v1672_v24 = vmul.f32 1.442695, %v1669_v6 }
 0xcea   :  { %2744 = vpow2.f32 %v1672_v24 }
 0xceb   :  { %2746 = vrcp.f32 %v1676_v21 }
 0xcee   :  { %v1699_v58 = vpop.f32.mrf.mxu1 }
 0xcf0   :  { %v2745_v7 = vpop.eup %2744 }
 0xcf1   :  { %v1677_v57 = vsel %vm239_vm1, %v2745_v7, 0.0  ;;  %v1681_v11 = vpack.c.bf16 %v2745_v7, %v2745_v7  ;;  %v2747_v25 = vpop.eup %2746 }
 0xcf2   :  { %1678 = vadd.xlane.f32.xlu1 %v1677_v57  ;;  %v1726_v40 = vmul.f32 %v2747_v25, %v1699_v58 }
 0xcf4   :  { %v1728_v1 = vpack.c.bf16 %v1726_v40, %v1726_v40 }
 0xcf6   :  { %v1701_v8 = vpop.f32.mrf.mxu1  ;;  %v1732_v31 = vunpack.c.l.b16 %v1728_v1 }
 0xcfd   :  { %v1704_v9 = vpop.permute.xlu1 %1703 }
 0xcfe   :  { %v1709_v10 = vsel %vm309_vm3, %v1704_v9, 0 }
 0xcff   :  { %1718 = vmatpush.bf16.msrb.mxu2 %v1709_v10 }
 0xd02   :  { %2509 = vmatmul.msk.bf16.vlgmr.msrb.gmra.mxu2 %vm239_vm1, %v1681_v11 }
 0xd03   :  { %2004 = vmatpush.bf16.msra.mxu2 %v2627_v18 }
 0xd07   :  { %2005 = vmatpush.bf16.msra.mxu2 %v2626_v19 }
 0xd12   :  { %2551 = vmatmul.msk.bf16.vlgmr.msra.gmra.mxu2 %vm143_vm0, %v3029_v12  ;;  %v2666_v12 = vld [vmem:[%s3641_s19] ss:$0 sm:$0xff] }
 0xd2b   :  { %v1605_v13 = vpop.f32.mrf.mxu2 }
 0xd2c   :  { %v1610_v15 = vadd.f32 %v1605_v13, %v3369_v27 }
 0xd33   :  { %v1607_v23 = vpop.f32.mrf.mxu2 }
 0xd34   :  { %v1611_v59 = vadd.f32 %v1607_v23, %v1465_v14  ;;  %v2564_v23 = vld [vmem:[%s3644_s22 + $0x18] sm:$0xf0] }
 0xd65   :  { %v1679_v41 = vpop.xlane.xlu1 %1678 }
 0xd66   :  { %2748 = vrcp.f32 %v1679_v41  ;;  %v2630_v41 = vld [vmem:[%s3644_s22 + $0x14] sm:$0xf] }
 0xd67   :  { %v2567_v40 = vor.u32 %v2630_v41, %v2564_v23 }
 0xd6c   :  { %v2749_v27 = vpop.eup %2748 }
 0xd85   :  { %v1720_v28 = vpop.f32.mrf.mxu2 }
 0xd86   :  { %v1727_v29 = vmul.f32 %v2749_v27, %v1720_v28  ;;  %v2628_v27 = vld [vmem:[%s3644_s22 + $0x4] sm:$0xf]  ;;  %v2556_v28 = vld [vmem:[%s3644_s22 + $0x8] sm:$0xf0] }
 0xd88   :  { %v1729_v30 = vpack.c.bf16 %v1727_v29, %v1727_v29  ;;  %v2559_v29 = vor.u32 %v2628_v27, %v2556_v28 }
 0xd8a   :  { %v1733_v52 = vunpack.c.l.b16 %v1729_v30 }
 0xd8c   :  { %v1734_v32 = vpack.c.b16 %v1733_v52, %v1732_v31 }
 0xd8d   :  { %v1722_v2 = vpop.f32.mrf.mxu2 }
 0xd8e   :  { %2510 = vmatmul.msk.bf16.vlgmr.msrb.gmra.mxu3 %vm239_vm1, %v1734_v32 }
 0xd95   :  { %v2007_v34 = vpop.f32.mrf.mxu2 }
 0xd96   :  { %v3421_v43 = vadd.f32 %v2666_v12, %v2007_v34 }
 0xd98   :  { %v2014_v45 = vpack.c.bf16 %v3421_v43, %v3421_v43 }
 0xd9a   :  { %v2022_v47 = vunpack.c.l.b16 %v2014_v45 }
 0xd9d   :  { %v2009_v46 = vpop.f32.mrf.mxu2 }
 0xd9e   :  { %v3425_v33 = vadd.f32 %v2666_v12, %v2009_v46 }
 0xda0   :  { %v2015_v48 = vpack.c.bf16 %v3425_v33, %v3425_v33 }
 0xda2   :  { %v2023_v49 = vunpack.c.l.b16 %v2015_v48 }
 0xda4   :  { %v3432_v51 = vpack.c.b16 %v2023_v49, %v2022_v47 }
 0xda6   :  { %2568 = vmatmul.msk.bf16.vlgmr.msra.gmra.mxu3 %vm143_vm0, %v3432_v51 }
 0xe11   :  { %v1750_v53 = vpop.f32.mrf.mxu3 }
 0xe12   :  { %v1755_v42 = vadd.f32 %v1750_v53, %v1610_v15  ;;  %v2623_v15 = vld [vmem:[%s3632_s10 + $0x18] sm:$0xff] }
 0xe13   :  { %1862 = vmatpush.bf16.msra.mxu0 %v2623_v15 }
 0xe14   :  { %v1762_v54 = vadd.f32 %v2665_v50, %v1755_v42 }
 0xe16   :  { %v1764_v56 = vadd.f32 %v1762_v54, %v3248_v22 }
 0xe17   :  { %1863 = vmatpush.bf16.msra.mxu0 %v2622_v16 }
 0xe18   :  { %v1770_v60 = vsel %vm143_vm0, %v1764_v56, 0.0 }
 0xe19   :  { %1771 = vadd.xlane.f32.xlu2 %v1770_v60  ;;  %v1752_v62 = vpop.f32.mrf.mxu3  ;;  %v2624_v60 = vld [vmem:[%s3634_s12 + $0x10] sm:$0xff] }
 0xe1a   :  { %v1756_v61 = vadd.f32 %v1752_v62, %v1611_v59  ;;  %v2625_v59 = vld [vmem:[%s3634_s12 + $0x18] sm:$0xff]  ;;  %v2669_v62 = vld [vmem:[%s3633_s11 + $0x1] ss:$0 sm:$0xff] }
 0xe1b   :  { %2068 = vmatpush.bf16.msrb.mxu0 %v2567_v40  ;;  %1910 = vmatpush.bf16.msra.mxu1 %v2625_v59 }
 0xe1c   :  { %v1763_v63 = vadd.f32 %v2665_v50, %v1756_v61  ;;  %v2012_v61 = vlaneseq }
 0xe1e   :  { %v1765_v0 = vadd.f32 %v1763_v63, %v3250_v26 }
 0xe1f   :  { %2069 = vmatpush.bf16.msrb.mxu0 %v2559_v29  ;;  %1911 = vmatpush.bf16.msra.mxu1 %v2624_v60 }
 0xe20   :  { %v1773_v38 = vsel %vm143_vm0, %v1765_v0, 0.0 }
 0xe21   :  { %1774 = vadd.xlane.f32.xlu2 %v1773_v38  ;;  %v2013_v38 = vshrl.u32 %v2012_v61, 7 }
 0xe29   :  { %v3445_v7 = vpop.f32.mrf.mxu3 }
 0xe2a   :  { %2090 = vrot.lane.b32.xlu0 %v3445_v7, %s2861_s9 }
 0xe31   :  { %v3450_v9 = vpop.f32.mrf.mxu3 }
 0xe8c   :  { %v1772_v5 = vpop.xlane.xlu2 %1771 }
 0xe8d   :  { %v1776_v6 = vmul.f32 %v1772_v5, %v3185_v3 }
 0xe8f   :  { %v1778_v24 = vsub.f32 %v1764_v56, %v1776_v6 }
 0xe91   :  { %v1780_v58 = vmul.f32 %v1778_v24, %v1778_v24 }
 0xe93   :  { %v1782_v20 = vsel %vm143_vm0, %v1780_v58, 0.0  ;;  %v2076_v58 = vrot.slane %v3445_v7, 7  ;;  %v2670_v7 = vld [vmem:[%s3645_s23] ss:$0 sm:$0xff] }
 0xe94   :  { %1783 = vadd.xlane.f32.xlu2 %v1782_v20  ;;  %v1775_v22 = vpop.xlane.xlu2 %1774 }
 0xe95   :  { %v1777_v55 = vmul.f32 %v1775_v22, %v3185_v3 }
 0xe97   :  { %v1779_v26 = vsub.f32 %v1765_v0, %v1777_v55  ;;  %v3504_v55 = vadd.s32 1, %v2013_v38 }
 0xe99   :  { %v1781_v57 = vmul.f32 %v1779_v26, %v1779_v26  ;;  %vm2102_vm9 = vcmp.le.s32.totalorder %v3504_v55, 7 }
 0xe9b   :  { %v1785_v8 = vsel %vm143_vm0, %v1781_v57, 0.0 }
 0xe9c   :  { %1786 = vadd.xlane.f32.xlu2 %v1785_v8  ;;  %v2091_v57 = vpop.permute.xlu0 %2090 }
 0xeb4   :  { %2092 = vrot.lane.b32.xlu2 %v3450_v9, %s2861_s9 }
 0xf07   :  { %v1784_v10 = vpop.xlane.xlu2 %1783 }
 0xf08   :  { %v1788_v11 = vmul.f32 %v1784_v10, %v3185_v3 }
 0xf0a   :  { %v1790_v13 = vadd.f32 1e-05, %v1788_v11 }
 0xf0c   :  { %2750 = vrsqrt.f32 %v1790_v13  ;;  %vm1798_vm3 = vweird.f32 %v1790_v13 }
 0xf0f   :  { %v1787_v17 = vpop.xlane.xlu2 %1786 }
 0xf10   :  { %v1789_v18 = vmul.f32 %v1787_v17, %v3185_v3 }
 0xf12   :  { %v2751_v19 = vpop.eup %2750  ;;  %v1791_v21 = vadd.f32 1e-05, %v1789_v18  ;;  %v2077_v18 = vrot.slane %v3450_v9, 7 }
 0xf13   :  { %v1793_v25 = vmul.f32 %v2751_v19, %v1790_v13  ;;  %vm1799_vm1 = vweird.f32 %v2751_v19 }
 0xf14   :  { %2752 = vrsqrt.f32 %v1791_v21  ;;  %vm1800_vm4 = vmor %vm1798_vm3, %vm1799_vm1  ;;  %vm1808_vm6 = vweird.f32 %v1791_v21 }
 0xf15   :  { %v1794_v1 = vmul.f32 %v2751_v19, %v1793_v25 }
 0xf17   :  { %v1795_v30 = vmul.f32 0.5, %v1794_v1  ;;  %v2093_v25 = vpop.permute.xlu2 %2092 }
 0xf19   :  { %v1796_v31 = vsub.f32 1.5, %v1795_v30 }
 0xf1a   :  { %v2753_v52 = vpop.eup %2752 }
 0xf1b   :  { %v1797_v32 = vmul.f32 %v2751_v19, %v1796_v31  ;;  %v1803_v2 = vmul.f32 %v2753_v52, %v1791_v21  ;;  %vm1809_vm5 = vweird.f32 %v2753_v52 }
 0xf1c   :  { %vm1810_vm7 = vmor %vm1808_vm6, %vm1809_vm5 }
 0xf1d   :  { %v1801_v12 = vsel %vm1800_vm4, %v2751_v19, %v1797_v32  ;;  %v1804_v34 = vmul.f32 %v2753_v52, %v1803_v2 }
 0xf1e   :  { %v1812_v36 = vmul.f32 %v1801_v12, %v1778_v24 }
 0xf1f   :  { %v1805_v37 = vmul.f32 0.5, %v1804_v34 }
 0xf20   :  { %v1817_v44 = vmul.f32 %v2667_v35, %v1812_v36 }
 0xf21   :  { %v1806_v39 = vsub.f32 1.5, %v1805_v37 }
 0xf22   :  { %v3480_v47 = vadd.f32 %v2668_v4, %v1817_v44 }
 0xf23   :  { %v1807_v45 = vmul.f32 %v2753_v52, %v1806_v39 }
 0xf24   :  { %v1824_v50 = vpack.c.bf16 %v3480_v47, %v3480_v47 }
 0xf25   :  { %v1811_v46 = vsel %vm1810_vm7, %v2753_v52, %v1807_v45 }
 0xf26   :  { %v1813_v48 = vmul.f32 %v1811_v46, %v1779_v26  ;;  %v1838_v54 = vunpack.c.l.b16 %v1824_v50 }
 0xf28   :  { %v1818_v49 = vmul.f32 %v2667_v35, %v1813_v48 }
 0xf2a   :  { %v3484_v53 = vadd.f32 %v2668_v4, %v1818_v49 }
 0xf2c   :  { %v1825_v42 = vpack.c.bf16 %v3484_v53, %v3484_v53 }
 0xf2e   :  { %v1839_v14 = vunpack.c.l.b16 %v1825_v42 }
 0xf30   :  { %v1840_v56 = vpack.c.b16 %v1839_v14, %v1838_v54 }
 0xf32   :  { %2527 = vmatmul.msk.bf16.vlgmr.msra.gmra.mxu0 %vm143_vm0, %v1840_v56 }
 0xf42   :  { %2569 = vmatmul.msk.bf16.vlgmr.msrb.gmra.mxu0 %vm143_vm0, %v3432_v51  ;;  %v3500_v51 = vadd.s32 4294967295, %v2013_v38  ;;  %v2634_v38 = vld [vmem:[%s3644_s22 + $0x34] sm:$0xf] }
 0xf44   :  { %vm2079_vm8 = vcmp.ge.s32.totalorder %v3500_v51, 0 }
 0xf45   :  { %v2084_v8 = vsel %vm2079_vm8, %v2076_v58, 0.0  ;;  %v2085_v23 = vsel %vm2079_vm8, %v2077_v18, 0.0  ;;  %v2578_v58 = vld [vmem:[%s3644_s22 + $0x20] sm:$0xf] }
 0xf46   :  { %v2096_v17 = vadd.f32 %v2091_v57, %v2084_v8  ;;  %v2097_v1 = vadd.f32 %v2093_v25, %v2085_v23  ;;  %v2580_v57 = vld [vmem:[%s3644_s22 + $0x28] sm:$0xf0] }
 0xfaf   :  { %v1865_v63 = vpop.f32.mrf.mxu0 }
 0xfb0   :  { %v1866_v0 = vadd.f32 %v2669_v62, %v1865_v63  ;;  %v2586_v63 = vld [vmem:[%s3644_s22 + $0x30] sm:$0xf] }
 0xfb2   :  { %v1870_v5 = vmax.f32 %v1866_v0, 0.0  ;;  %v2635_v0 = vld [vmem:[%s3644_s22 + $0x34] sm:$0xf0] }
 0xfb4   :  { %v1872_v20 = vpack.c.bf16 %v1870_v5, %v1870_v5  ;;  %v2587_v5 = vor.u32 %v2635_v0, %v2586_v63 }
 0xfb6   :  { %v1886_v10 = vunpack.c.l.b16 %v1872_v20  ;;  %2209 = vmatpush.bf16.msrb.mxu1 %v2587_v5  ;;  %v2633_v20 = vld [vmem:[%s3644_s22 + $0x24] sm:$0xf0] }
 0xfb7   :  { %v1867_v6 = vpop.f32.mrf.mxu0 }
 0xfb8   :  { %v1868_v24 = vadd.f32 %v2669_v62, %v1867_v6  ;;  %v2588_v6 = vld [vmem:[%s3644_s22 + $0x38] sm:$0xf0] }
 0xfba   :  { %v1871_v22 = vmax.f32 %v1868_v24, 0.0  ;;  %v2591_v24 = vor.u32 %v2634_v38, %v2588_v6 }
 0xfbc   :  { %v1873_v26 = vpack.c.bf16 %v1871_v22, %v1871_v22  ;;  %2223 = vmatpush.bf16.msrb.mxu2 %v2591_v24  ;;  %v2632_v22 = vld [vmem:[%s3644_s22 + $0x24] sm:$0xf] }
 0xfbd   :  { %v2583_v8 = vor.u32 %v2632_v22, %v2580_v57 }
 0xfbe   :  { %v1887_v11 = vunpack.c.l.b16 %v1873_v26  ;;  %v2579_v26 = vor.u32 %v2633_v20, %v2578_v58 }
 0xfbf   :  { %v2071_v13 = vpop.f32.mrf.mxu0 }
 0xfc0   :  { %v1888_v15 = vpack.c.b16 %v1887_v11, %v1886_v10  ;;  %v2098_v16 = vrot.slane %v2071_v13, 1  ;;  %2210 = vmatpush.bf16.msrb.mxu1 %v2579_v26  ;;  %2224 = vmatpush.bf16.msrb.mxu2 %v2583_v8 }
 0xfc2   :  { %v2106_v19 = vsel %vm2102_vm9, %v2098_v16, 0.0  ;;  %2541 = vmatmul.msk.bf16.vlgmr.msra.gmra.mxu1 %vm143_vm0, %v1888_v15 }
 0xfc3   :  { %v2108_v21 = vadd.f32 %v2106_v19, %v2096_v17 }
 0xfc5   :  { %v3516_v41 = vadd.f32 %v2670_v7, %v2108_v21 }
 0xfc7   :  { %v2570_v40 = vmul.f32 -1.442695, %v3516_v41  ;;  %v2073_v27 = vpop.f32.mrf.mxu0 }
 0xfc8   :  { %v2099_v28 = vrot.slane %v2073_v27, 1 }
 0xfc9   :  { %2754 = vpow2.f32 %v2570_v40 }
 0xfca   :  { %v2107_v9 = vsel %vm2102_vm9, %v2099_v28, 0.0  ;;  %v3569_v28 = vld [vmem:[%s3635_s13 + $0x1] ss:$0 sm:$0xff] }
 0xfcb   :  { %v2109_v29 = vadd.f32 %v2107_v9, %v2097_v1 }
 0xfcd   :  { %v2115_v30 = vadd.f32 %v2670_v7, %v2109_v29 }
 0xfcf   :  { %v2755_v31 = vpop.eup %2754  ;;  %v2571_v52 = vmul.f32 -1.442695, %v2115_v30 }
 0xfd0   :  { %v2122_v32 = vadd.f32 1.0, %v2755_v31 }
 0xfd1   :  { %2756 = vpow2.f32 %v2571_v52 }
 0xfd2   :  { %2758 = vrcp.f32 %v2122_v32  ;;  %v2135_v37 = vand.u32 2147483648, %v2122_v32  ;;  %v2133_v4 = vand.u32 2147483647, %v2122_v32  ;;  %vm2129_vm11 = vweird.f32 %v2122_v32 }
 0xfd4   :  { %v2136_v46 = vor.u32 1.1754944e-38, %v2135_v37  ;;  %vm2134_vm13 = vcmp.eq.f32.partialorder %v2133_v4, 8.507059e+37 }
 0xfd7   :  { %v2757_v2 = vpop.eup %2756 }
 0xfd8   :  { %v2759_v12 = vpop.eup %2758  ;;  %v2123_v34 = vadd.f32 1.0, %v2757_v2 }
 0xfd9   :  { %v2125_v35 = vmul.f32 %v2759_v12, %v2122_v32  ;;  %vm2130_vm10 = vweird.f32 %v2759_v12 }
 0xfda   :  { %2760 = vrcp.f32 %v2123_v34  ;;  %vm2131_vm12 = vmor %vm2129_vm11, %vm2130_vm10  ;;  %v2150_v54 = vand.u32 2147483648, %v2123_v34  ;;  %v2148_v56 = vand.u32 2147483647, %v2123_v34  ;;  %vm2144_vm15 = vweird.f32 %v2123_v34 }
 0xfdb   :  { %v2126_v36 = vsub.f32 1.0, %v2125_v35 }
 0xfdc   :  { %v2151_v60 = vor.u32 1.1754944e-38, %v2150_v54  ;;  %vm2149_vm1 = vcmp.eq.f32.partialorder %v2148_v56, 8.507059e+37 }
 0xfdd   :  { %v2127_v39 = vmul.f32 %v2759_v12, %v2126_v36 }
 0xfdf   :  { %v2128_v44 = vadd.f32 %v2759_v12, %v2127_v39 }
 0xfe0   :  { %v2761_v45 = vpop.eup %2760 }
 0xfe1   :  { %v2132_v48 = vsel %vm2131_vm12, %v2759_v12, %v2128_v44  ;;  %v2140_v49 = vmul.f32 %v2761_v45, %v2123_v34  ;;  %vm2145_vm14 = vweird.f32 %v2761_v45  ;;  %v2672_v12 = vld [vmem:[%s3645_s23 + $0x1] ss:$0 sm:$0xff] }
 0xfe2   :  { %v2137_v50 = vsel %vm2134_vm13, %v2136_v46, %v2132_v48  ;;  %vm2146_vm2 = vmor %vm2144_vm15, %vm2145_vm14 }
 0xfe3   :  { %2156 = vrot.lane.b32.xlu1 %v2137_v50, %s2862_s4  ;;  %v2141_v42 = vsub.f32 1.0, %v2140_v49 }
 0xfe5   :  { %v2142_v14 = vmul.f32 %v2761_v45, %v2141_v42 }
 0xfe7   :  { %v2143_v59 = vadd.f32 %v2761_v45, %v2142_v14 }
 0xfe9   :  { %v2147_v62 = vsel %vm2146_vm2, %v2761_v45, %v2143_v59 }
 0xfea   :  { %v2152_v61 = vsel %vm2149_vm1, %v2151_v60, %v2147_v62 }
 0xfeb   :  { %2158 = vrot.lane.b32.xlu0 %v2152_v61, %s2862_s4 }
0x1055   :  { %v2157_v10 = vpop.permute.xlu1 %2156 }
0x1056   :  { %v2162_v11 = vmul.f32 %v2157_v10, %v3516_v41 }
0x1058   :  { %v2164_v13 = vadd.f32 %v2162_v11, %v3421_v43  ;;  %v1913_v43 = vpop.f32.mrf.mxu1 }
0x1059   :  { %v1914_v1 = vadd.f32 %v3569_v28, %v1913_v43 }
0x105a   :  { %v3551_v16 = vmul.f32 0.70710677, %v2164_v13 }
0x105b   :  { %v3573_v9 = vadd.f32 %v1914_v1, %v3480_v47 }
0x105c   :  { %v2168_v18 = vpack.c.bf16 %v3551_v16, %v3551_v16 }
0x105d   :  { %v2159_v15 = vpop.permute.xlu0 %2158  ;;  %v1924_v29 = vsel %vm143_vm0, %v3573_v9, 0.0 }
0x105e   :  { %v2163_v17 = vmul.f32 %v2159_v15, %v2115_v30  ;;  %v2177_v23 = vunpack.c.l.b16 %v2168_v18 }
0x1060   :  { %v2165_v7 = vadd.f32 %v2163_v17, %v3425_v33  ;;  %v3562_v41 = vpop.f32.mrf.mxu1 }
0x1061   :  { %v1916_v17 = vadd.f32 %v3569_v28, %v3562_v41 }
0x1062   :  { %v3556_v19 = vmul.f32 0.70710677, %v2165_v7 }
0x1063   :  { %v1919_v7 = vadd.f32 %v1916_v17, %v3484_v53  ;;  %v2636_v53 = vld [vmem:[%s3642_s20] sm:$0xff] }
0x1064   :  { %v2169_v21 = vpack.c.bf16 %v3556_v19, %v3556_v19 }
0x1065   :  { %v1927_v18 = vsel %vm143_vm0, %v1919_v7, 0.0 }
0x1066   :  { %v2178_v25 = vunpack.c.l.b16 %v2169_v21 }
0x1068   :  { %v2179_v40 = vpack.c.b16 %v2178_v25, %v2177_v23 }
0x106a   :  { %2592 = vmatmul.msk.bf16.vlgmr.msrb.gmra.mxu1 %vm143_vm0, %v2179_v40  ;;  %2593 = vmatmul.msk.bf16.vlgmr.msrb.gmra.mxu2 %vm143_vm0, %v2179_v40 }
0x10e7   :  { %v2212_v27 = vpop.f32.mrf.mxu1 }
0x10e8   :  { %2239 = vrot.lane.b32.xlu2 %v2212_v27, %s2861_s9  ;;  %v2231_v31 = vrot.slane %v2212_v27, 7  ;;  %v2637_v27 = vld [vmem:[%s3642_s20 + $0x8] sm:$0xff] }
0x10e9   :  { %2348 = vmatpush.bf16.msrb.mxu3 %v2637_v27 }
0x10ea   :  { %v2233_v2 = vsel %vm2079_vm8, %v2231_v31, 0.0 }
0x10ed   :  { %v2226_v30 = vpop.f32.mrf.mxu2  ;;  %2349 = vmatpush.bf16.msrb.mxu3 %v2636_v53 }
0x10ee   :  { %v2247_v52 = vrot.slane %v2226_v30, 1 }
0x10ef   :  { %v2214_v33 = vpop.f32.mrf.mxu1 }
0x10f0   :  { %2241 = vrot.lane.b32.xlu0 %v2214_v33, %s2861_s9  ;;  %v2249_v47 = vsel %vm2102_vm9, %v2247_v52, 0.0  ;;  %v2232_v49 = vrot.slane %v2214_v33, 7 }
0x10f2   :  { %v2234_v60 = vsel %vm2079_vm8, %v2232_v49, 0.0 }
0x10f5   :  { %v2228_v46 = vpop.f32.mrf.mxu2 }
0x10f6   :  { %v2248_v14 = vrot.slane %v2228_v46, 1 }
0x10f8   :  { %v2250_v0 = vsel %vm2102_vm9, %v2248_v14, 0.0  ;;  %v2673_v14 = vld [vmem:[#allocation2 + $0x1] ss:$0 sm:$0xff] }
0x111a   :  { %1925 = vadd.xlane.f32.xlu0 %v1924_v29 }
0x1142   :  { %v2240_v32 = vpop.permute.xlu2 %2239 }
0x1143   :  { %v2245_v34 = vadd.f32 %v2240_v32, %v2233_v2 }
0x1145   :  { %v2251_v35 = vadd.f32 %v2249_v47, %v2245_v34 }
0x1147   :  { %v3584_v36 = vadd.f32 %v2672_v12, %v2251_v35 }
0x1149   :  { %v2595_v37 = vmul.f32 -1.442695, %v3584_v36 }
0x114b   :  { %2762 = vpow2.f32 %v2595_v37 }
0x1151   :  { %v2763_v39 = vpop.eup %2762 }
0x1152   :  { %v2266_v4 = vadd.f32 1.0, %v2763_v39 }
0x1154   :  { %2764 = vrcp.f32 %v2266_v4  ;;  %v2279_v50 = vand.u32 2147483648, %v2266_v4  ;;  %v2277_v54 = vand.u32 2147483647, %v2266_v4  ;;  %vm2273_vm4 = vweird.f32 %v2266_v4 }
0x1156   :  { %v2280_v62 = vor.u32 1.1754944e-38, %v2279_v50  ;;  %vm2278_vm6 = vcmp.eq.f32.partialorder %v2277_v54, 8.507059e+37 }
0x115a   :  { %v2765_v44 = vpop.eup %2764 }
0x115b   :  { %v2269_v45 = vmul.f32 %v2765_v44, %v2266_v4  ;;  %vm2274_vm3 = vweird.f32 %v2765_v44 }
0x115c   :  { %vm2275_vm5 = vmor %vm2273_vm4, %vm2274_vm3 }
0x115d   :  { %v2270_v48 = vsub.f32 1.0, %v2269_v45 }
0x115f   :  { %v2271_v42 = vmul.f32 %v2765_v44, %v2270_v48 }
0x1161   :  { %v2272_v56 = vadd.f32 %v2765_v44, %v2271_v42 }
0x1162   :  { %v2242_v59 = vpop.permute.xlu0 %2241 }
0x1163   :  { %v2246_v61 = vadd.f32 %v2242_v59, %v2234_v60  ;;  %v2276_v63 = vsel %vm2275_vm5, %v2765_v44, %v2272_v56  ;;  %v2674_v59 = vld [vmem:[%s3639_s17 + $0x1] ss:$0 sm:$0xff]  ;;  %v2675_v60 = vld [vmem:[#allocation5] ss:$0 sm:$0xff]  ;;  %s2863_s17 = smov [#allocation7]  }
0x1164   :  { %v2281_v38 = vsel %vm2278_vm6, %v2280_v62, %v2276_v63  ;;  %s2364_s11 = sshll.u32 %s2863_s17, 4  ;;  %s2365_s11 = int_to_ptr.vmem [resolvable:$true] %s2364_s11 }
0x1165   :  { %v2252_v5 = vadd.f32 %v2250_v0, %v2246_v61  ;;  %2300 = vrot.lane.b32.xlu1 %v2281_v38, %s2862_s4 }
0x1167   :  { %v2259_v6 = vadd.f32 %v2672_v12, %v2252_v5 }
0x1169   :  { %v2596_v24 = vmul.f32 -1.442695, %v2259_v6 }
0x116b   :  { %2766 = vpow2.f32 %v2596_v24 }
0x1171   :  { %v2767_v58 = vpop.eup %2766 }
0x1172   :  { %v2267_v20 = vadd.f32 1.0, %v2767_v58 }
0x1174   :  { %2768 = vrcp.f32 %v2267_v20  ;;  %v2294_v57 = vand.u32 2147483648, %v2267_v20  ;;  %v2292_v10 = vand.u32 2147483647, %v2267_v20  ;;  %vm2288_vm8 = vweird.f32 %v2267_v20 }
0x1176   :  { %v2295_v55 = vor.u32 1.1754944e-38, %v2294_v57  ;;  %vm2293_vm10 = vcmp.eq.f32.partialorder %v2292_v10, 8.507059e+37 }
0x117a   :  { %v2769_v51 = vpop.eup %2768 }
0x117b   :  { %v2284_v22 = vmul.f32 %v2769_v51, %v2267_v20  ;;  %vm2289_vm7 = vweird.f32 %v2769_v51 }
0x117c   :  { %vm2290_vm9 = vmor %vm2288_vm8, %vm2289_vm7 }
0x117d   :  { %v2285_v26 = vsub.f32 1.0, %v2284_v22 }
0x117f   :  { %v2286_v8 = vmul.f32 %v2769_v51, %v2285_v26 }
0x1181   :  { %v2287_v11 = vadd.f32 %v2769_v51, %v2286_v8 }
0x1183   :  { %v2291_v13 = vsel %vm2290_vm9, %v2769_v51, %v2287_v11 }
0x1184   :  { %v2296_v15 = vsel %vm2293_vm10, %v2295_v55, %v2291_v13 }
0x1185   :  { %2302 = vrot.lane.b32.xlu2 %v2296_v15, %s2862_s4 }
0x118d   :  { %v1926_v21 = vpop.xlane.xlu0 %1925 }
0x118e   :  { %v1930_v23 = vmul.f32 %v1926_v21, %v3185_v3 }
0x118f   :  { %1928 = vadd.xlane.f32.xlu1 %v1927_v18 }
0x1190   :  { %v1932_v25 = vsub.f32 %v3573_v9, %v1930_v23 }
0x1192   :  { %v1934_v40 = vmul.f32 %v1932_v25, %v1932_v25 }
0x1194   :  { %v1936_v43 = vsel %vm143_vm0, %v1934_v40, 0.0 }
0x11ae   :  { %1937 = vadd.xlane.f32.xlu2 %v1936_v43 }
0x11d7   :  { %v2301_v41 = vpop.permute.xlu1 %2300 }
0x11d8   :  { %v2306_v33 = vmul.f32 %v2301_v41, %v3584_v36 }
0x11da   :  { %v2308_v28 = vadd.f32 %v2306_v33, %v3551_v16 }
0x11dc   :  { %v2310_v9 = vmul.f32 0.70710677, %v2308_v28 }
0x11de   :  { %v2312_v31 = vpack.c.bf16 %v2310_v9, %v2310_v9 }
0x11df   :  { %v2303_v1 = vpop.permute.xlu2 %2302 }
0x11e0   :  { %v2307_v29 = vmul.f32 %v2303_v1, %v2259_v6  ;;  %v2324_v2 = vunpack.c.l.b16 %v2312_v31 }
0x11e2   :  { %v2309_v30 = vadd.f32 %v2307_v29, %v3556_v19 }
0x11e4   :  { %v2311_v52 = vmul.f32 0.70710677, %v2309_v30 }
0x11e6   :  { %v2313_v32 = vpack.c.bf16 %v2311_v52, %v2311_v52 }
0x11e8   :  { %v2325_v12 = vunpack.c.l.b16 %v2313_v32 }
0x11ea   :  { %v2326_v34 = vpack.c.b16 %v2325_v12, %v2324_v2 }
0x11ec   :  { %2605 = vmatmul.msk.bf16.vlgmr.msrb.gmra.mxu3 %vm143_vm0, %v2326_v34 }
0x1202   :  { %v1929_v47 = vpop.xlane.xlu1 %1928 }
0x1203   :  { %v1931_v35 = vmul.f32 %v1929_v47, %v3185_v3 }
0x1205   :  { %v1933_v37 = vsub.f32 %v1919_v7, %v1931_v35 }
0x1207   :  { %v1935_v36 = vmul.f32 %v1933_v37, %v1933_v37 }
0x1209   :  { %v1939_v16 = vsel %vm143_vm0, %v1935_v36, 0.0 }
0x120a   :  { %1940 = vadd.xlane.f32.xlu0 %v1939_v16 }
0x1221   :  { %v1938_v39 = vpop.xlane.xlu2 %1937 }
0x1222   :  { %v1942_v4 = vmul.f32 %v1938_v39, %v3185_v3 }
0x1224   :  { %v1944_v19 = vadd.f32 1e-05, %v1942_v4 }
0x1226   :  { %2770 = vrsqrt.f32 %v1944_v19  ;;  %vm1952_vm12 = vweird.f32 %v1944_v19 }
0x122c   :  { %v2771_v44 = vpop.eup %2770 }
0x122d   :  { %v1947_v45 = vmul.f32 %v2771_v44, %v1944_v19  ;;  %vm1953_vm11 = vweird.f32 %v2771_v44 }
0x122e   :  { %vm1954_vm13 = vmor %vm1952_vm12, %vm1953_vm11 }
0x122f   :  { %v1948_v46 = vmul.f32 %v2771_v44, %v1947_v45 }
0x1231   :  { %v1949_v48 = vmul.f32 0.5, %v1948_v46 }
0x1233   :  { %v1950_v49 = vsub.f32 1.5, %v1949_v48 }
0x1235   :  { %v1951_v50 = vmul.f32 %v2771_v44, %v1950_v49 }
0x1237   :  { %v1955_v42 = vsel %vm1954_vm13, %v2771_v44, %v1951_v50 }
0x1238   :  { %v1966_v54 = vmul.f32 %v1955_v42, %v1932_v25 }
0x123a   :  { %v1971_v56 = vmul.f32 %v2673_v14, %v1966_v54 }
0x123c   :  { %v1976_v61 = vadd.f32 %v2674_v59, %v1971_v56 }
0x126f   :  { %v2351_v62 = vpop.f32.mrf.mxu3 }
0x1270   :  { %v2352_v63 = vadd.f32 %v2675_v60, %v2351_v62 }
0x1272   :  { %v2356_v0 = vadd.f32 %v2352_v63, %v1976_v61 }
0x1274   :  { %2358 = vst.msk [vmem:[#allocation7] sm:$0xff] %vm143_vm0, %v2356_v0 }
0x1277   :  { %v2353_v10 = vpop.f32.mrf.mxu3 }
0x127d   :  { %v1941_v38 = vpop.xlane.xlu0 %1940 }
0x127e   :  { %v1943_v5 = vmul.f32 %v1941_v38, %v3185_v3  ;;  %v2354_v3 = vadd.f32 %v2675_v60, %v2353_v10 }
0x1280   :  { %v1945_v6 = vadd.f32 1e-05, %v1943_v5 }
0x1282   :  { %2772 = vrsqrt.f32 %v1945_v6  ;;  %vm1962_vm15 = vweird.f32 %v1945_v6 }
0x1288   :  { %v2773_v24 = vpop.eup %2772 }
0x1289   :  { %v1957_v58 = vmul.f32 %v2773_v24, %v1945_v6  ;;  %vm1963_vm14 = vweird.f32 %v2773_v24 }
0x128a   :  { %vm1964_vm2 = vmor %vm1962_vm15, %vm1963_vm14 }
0x128b   :  { %v1958_v20 = vmul.f32 %v2773_v24, %v1957_v58 }
0x128d   :  { %v1959_v51 = vmul.f32 0.5, %v1958_v20 }
0x128f   :  { %v1960_v22 = vsub.f32 1.5, %v1959_v51 }
0x1291   :  { %v1961_v26 = vmul.f32 %v2773_v24, %v1960_v22 }
0x1293   :  { %v1965_v57 = vsel %vm1964_vm2, %v2773_v24, %v1961_v26 }
0x1294   :  { %v1967_v8 = vmul.f32 %v1965_v57, %v1933_v37 }
0x1296   :  { %v1972_v11 = vmul.f32 %v2673_v14, %v1967_v8 }
0x1298   :  { %v1977_v55 = vadd.f32 %v2674_v59, %v1972_v11 }
0x129a   :  { %v2357_v13 = vadd.f32 %v2354_v3, %v1977_v55 }
0x129c   :  { %2359 = vst.msk [vmem:[#allocation7 + $0x8] sm:$0xff] %vm143_vm0, %v2357_v13 }
0x129d   :  { %2372 = dma.vmem_to_hbm [thread:$0]  %s2365_s11, 256, %s2367_s26, [#allocation4], %s2864_s16, %s2864_s16, %s2865_s30  }
0x129e   :  { %2850 = dma.done.wait [#allocation4], 256  }
0x129f   :  { %2851 = vsyncadd [#allocation4], 4294967040 }
0x12a0   :  { %2377 = vsyncpa [#allocation3], 1 }
0x12a1   :  { %2378 = vsyncpa [#allocation6], 1 }
0x12a2   :  { %2379 = vsyncpa [#allocation4], 1 }

</bundles_post_ra>
